<compile_context>
chip_gen: v7x
topology: tpu7x:2x2x1
jax: 0.10.0
libtpu: 0.0.40
codegen_flags: <defaults>
</compile_context>

<pallas_src>
import math
from functools import partial

import numpy as np
import jax
import jax.numpy as jnp
from jax.experimental import pallas as pl
from jax.experimental.pallas import tpu as pltpu


def _round_up(x, m):
    return ((x + m - 1) // m) * m


def conv3d_output_size(img_size, padding, kernel_size, stride):
    return tuple(
        int(math.floor((img_size[i] + 2 * padding[i] - (kernel_size[i] - 1) - 1)
                       / stride[i] + 1))
        for i in range(3))


class SarNet3DConfig:
    def __init__(self, t_dim=3, img_x=33, img_y=33,
                 fc_hidden1=64, fc_hidden2=32, num_classes=2):
        self.t_dim, self.img_x, self.img_y = t_dim, img_x, img_y
        self.fc_hidden1, self.fc_hidden2 = fc_hidden1, fc_hidden2
        self.num_classes = num_classes
        self.ch1, self.ch2, self.ch3 = 32, 64, 128
        self.k1, self.k2, self.k3 = (3, 5, 5), (1, 3, 3), (1, 3, 3)
        self.s1, self.s2, self.s3 = (1, 2, 2), (1, 2, 2), (1, 2, 2)
        self.pd = (0, 0, 0)
        self.conv1_out = conv3d_output_size((t_dim, img_x, img_y), self.pd, self.k1, self.s1)
        self.conv2_out = conv3d_output_size(self.conv1_out, self.pd, self.k2, self.s2)
        self.conv3_out = conv3d_output_size(self.conv2_out, self.pd, self.k3, self.s3)
        self.flat = self.ch3 * self.conv3_out[0] * self.conv3_out[1] * self.conv3_out[2]

    @property
    def fold_time_into_channels(self):
        # conv1 consumes the full temporal extent in one step (t_out == 1), so
        # the time axis behaves exactly like input channels -> fewer row taps.
        return self.t_dim == self.k1[0] and self.conv1_out[0] == 1


# --------------------------------------------------------------------------
# The single fused Pallas kernel: one grid step == one batch sample.
# --------------------------------------------------------------------------
def _sarnet_kernel(x_ref,
                   rs1_ref, rm1_ref, sh1_ref,
                   rs2_ref, rm2_ref, sh2_ref,
                   rs3_ref, rm3_ref, sh3_ref,
                   pick_ref, w1_ref, b1_ref,
                   w2_ref, b2_ref, w3_ref, b3_ref,
                   o_ref):
    f32, bf16 = jnp.float32, jnp.bfloat16

    def conv_bn_relu(act, rs_ref, rm_ref, sh_ref):
        # act: (in_rows, Win*Cin) bf16, channels-last rows x lane-groups layout.
        out_rows = rs_ref.shape[1]
        out_cols = rm_ref.shape[2]
        acc = jnp.zeros((out_rows, out_cols), f32)
        for t in range(rs_ref.shape[0]):                       # static tap loop
            # 0/1 row-selection matmul == strided window gather, done on the MXU
            rows = jnp.dot(rs_ref[t], act, preferred_element_type=f32)
            # RightMat folds W-taps + channel mixing + BN scale
            acc = acc + jnp.dot(rows.astype(bf16), rm_ref[t],
                                preferred_element_type=f32)
        return jnp.maximum(acc + sh_ref[...], 0.0).astype(bf16)

    act = x_ref[0]                                             # (rows, cols) bf16
    act = conv_bn_relu(act, rs1_ref, rm1_ref, sh1_ref)         # conv1 + bn1 + relu
    act = conv_bn_relu(act, rs2_ref, rm2_ref, sh2_ref)         # conv2 + bn2 + relu
    act = conv_bn_relu(act, rs3_ref, rm3_ref, sh3_ref)         # conv3 + bn3 + relu

    # fc1: contract the channels-last (rows, W*C) activation against the
    # pre-permuted fc1 weight, one (W*C, F1) slab per activation row.
    h = jnp.zeros((1, w1_ref.shape[2]), f32)
    for r in range(pick_ref.shape[0]):
        row = jnp.dot(pick_ref[r], act, preferred_element_type=f32).astype(bf16)
        h = h + jnp.dot(row, w1_ref[r], preferred_element_type=f32)
    h = jnp.maximum(h + b1_ref[...], 0.0).astype(bf16)
    h = jnp.maximum(jnp.dot(h, w2_ref[...], preferred_element_type=f32)
                    + b2_ref[...], 0.0).astype(bf16)
    o_ref[0] = jnp.dot(h, w3_ref[...], preferred_element_type=f32) + b3_ref[...]


# --------------------------------------------------------------------------
# One-time host-side folding of the PyTorch parameters into the kernel operands
# --------------------------------------------------------------------------
def _fold_conv(w, scale, in_shape, out_shape, stride):
    """Conv3d(valid)+BN-scale -> per-row-tap (rowsel, rightmat) for the
    2-D channels-last activation layout (D*H, W*C)."""
    Cout, Cin, kd, kh, kw = w.shape
    sd, sh, sw = stride
    Din, Hin, Win = in_shape
    Dout, Hout, Wout = out_shape
    T = kd * kh
    rowsel = np.zeros((T, Dout * Hout, Din * Hin), np.float32)
    rightm = np.zeros((T, Win * Cin, Wout * Cout), np.float32)
    ws = np.asarray(w, np.float32) * np.asarray(scale, np.float32)[:, None, None, None, None]
    for dz in range(kd):
        for dy in range(kh):
            t = dz * kh + dy
            for do in range(Dout):
                for ho in range(Hout):
                    rowsel[t, do * Hout + ho, (do * sd + dz) * Hin + ho * sh + dy] = 1.0
            for wo in range(Wout):
                for dx in range(kw):
                    win = wo * sw + dx
                    rightm[t, win * Cin:(win + 1) * Cin,
                           wo * Cout:(wo + 1) * Cout] = ws[:, :, dz, dy, dx].T
    return rowsel, rightm


def prepare_params(cfg, p, eps=1e-5):
    def bn_fold(g, be, m, v, b):
        g, be, m, v, b = (np.asarray(a, np.float32) for a in (g, be, m, v, b))
        s = g / np.sqrt(v + eps)
        return s, be + s * (b - m)

    w1 = np.asarray(p["w1"], np.float32)
    if cfg.fold_time_into_channels:
        w1_eff = w1[:, 0][:, :, None, :, :]            # (Cout, Cin=kd, 1, kh, kw)
        in_shape1 = (1, cfg.img_x, cfg.img_y)
    else:
        w1_eff = w1
        in_shape1 = (cfg.t_dim, cfg.img_x, cfg.img_y)

    convs = [
        (w1_eff, p["b1"], p["g1"], p["be1"], p["m1"], p["v1"],
         in_shape1, cfg.conv1_out, cfg.s1),
        (np.asarray(p["w2"], np.float32), p["b2"], p["g2"], p["be2"], p["m2"], p["v2"],
         cfg.conv1_out, cfg.conv2_out, cfg.s2),
        (np.asarray(p["w3"], np.float32), p["b3"], p["g3"], p["be3"], p["m3"], p["v3"],
         cfg.conv2_out, cfg.conv3_out, cfg.s3),
    ]
    arrays = []
    for (w, b, g, be, m, v, ish, osh, s) in convs:
        scale, shift = bn_fold(g, be, m, v, b)
        rs, rm = _fold_conv(w, scale, ish, osh, s)
        sh_row = np.tile(shift, osh[2]).reshape(1, osh[2] * w.shape[0])
        arrays += [jnp.asarray(rs, jnp.bfloat16),
                   jnp.asarray(rm, jnp.bfloat16),
                   jnp.asarray(sh_row, jnp.float32)]

    # FC head: fc1 pre-permuted so the channels-last (rows, W*C) activation
    # contracts exactly like PyTorch's x.view(B, -1) on the NCDHW tensor.
    D3, H3, W3 = cfg.conv3_out
    C3, F1, F2, NC = cfg.ch3, cfg.fc_hidden1, cfg.fc_hidden2, cfg.num_classes
    fw1 = np.asarray(p["fw1"], np.float32).reshape(F1, C3, D3, H3, W3)
    w1r = np.transpose(fw1, (2, 3, 4, 1, 0)).reshape(D3 * H3, W3 * C3, F1)
    pick = np.eye(D3 * H3, dtype=np.float32).reshape(D3 * H3, 1, D3 * H3)
    w2m = np.asarray(p["fw2"], np.float32).T
    nc_pad = _round_up(NC, 128)                         # lane-dense logits store
    w3m = np.zeros((F2, nc_pad), np.float32)
    w3m[:, :NC] = np.asarray(p["fw3"], np.float32).T
    b3 = np.zeros((1, nc_pad), np.float32)
    b3[0, :NC] = np.asarray(p["fb3"], np.float32)

    arrays += [jnp.asarray(pick, jnp.bfloat16),
               jnp.asarray(w1r, jnp.bfloat16),
               jnp.asarray(np.asarray(p["fb1"], np.float32).reshape(1, F1)),
               jnp.asarray(w2m, jnp.bfloat16),
               jnp.asarray(np.asarray(p["fb2"], np.float32).reshape(1, F2)),
               jnp.asarray(w3m, jnp.bfloat16),
               jnp.asarray(b3)]
    return tuple(arrays)


def _to_kernel_layout(cfg, x_ncdhw):
    """(B, 1, D, H, W) f32 -> (B, rows, cols) bf16 channels-last 2-D layout."""
    B = x_ncdhw.shape[0]
    if cfg.fold_time_into_channels:
        x0 = jnp.transpose(x_ncdhw[:, 0], (0, 2, 3, 1)).reshape(
            B, cfg.img_x, cfg.img_y * cfg.t_dim)        # time frames -> channels
    else:
        x0 = x_ncdhw.reshape(B, cfg.t_dim * cfg.img_x, cfg.img_y)
    return x0.astype(jnp.bfloat16)


# --------------------------------------------------------------------------
# Forward: a couple of tiny XLA reshape/cast ops + ONE pallas_call
# --------------------------------------------------------------------------
def sarnet3d_forward(cfg, prep, x_ncdhw):
    B = x_ncdhw.shape[0]
    x0 = _to_kernel_layout(cfg, x_ncdhw)
    _, in_rows, in_cols = x0.shape
    nc_pad = prep[-2].shape[1]

    def const_map(ndim):
        return lambda b: (0,) * ndim

    in_specs = [pl.BlockSpec((1, in_rows, in_cols), lambda b: (b, 0, 0))]
    in_specs += [pl.BlockSpec(a.shape, const_map(a.ndim)) for a in prep]

    macs = 0
    for rs, rm in ((prep[0], prep[1]), (prep[3], prep[4]),
                   (prep[6], prep[7]), (prep[9], prep[10])):
        T, orows, irows = rs.shape
        macs += T * orows * (irows * rm.shape[1] + rm.shape[1] * rm.shape[2])
    macs += prep[12].shape[0] * prep[12].shape[1] + prep[14].shape[0] * prep[14].shape[1]
    bytes_acc = int(sum(a.size * a.dtype.itemsize for a in prep)
                    + x0.size * x0.dtype.itemsize + B * nc_pad * 4)

    out = pl.pallas_call(
        _sarnet_kernel,
        out_shape=jax.ShapeDtypeStruct((B, 1, nc_pad), jnp.float32),
        grid=(B,),
        in_specs=in_specs,
        out_specs=pl.BlockSpec((1, 1, nc_pad), lambda b: (b, 0, 0)),
        compiler_params=pltpu.CompilerParams(
            dimension_semantics=("parallel",)),          # v7x: one sample per TC
        cost_estimate=pl.CostEstimate(flops=int(2 * B * macs), transcendentals=0,
                                      bytes_accessed=bytes_acc),
    )(x0, *prep)
    return out[:, 0, :cfg.num_classes]


# --------------------------------------------------------------------------
# References
# --------------------------------------------------------------------------
def sarnet3d_folded_ref(cfg, prep, x_ncdhw):
    """Plain-JAX replay of exactly the kernel's matmul sequence (tight check)."""
    (rs1, rm1, sh1, rs2, rm2, sh2, rs3, rm3, sh3,
     pick, w1r, b1, w2m, b2, w3m, b3) = prep
    x0 = _to_kernel_layout(cfg, x_ncdhw)

    def one(x):
        def conv(a, rs, rm, sh):
            acc = sum(jnp.dot(jnp.dot(rs[t], a, preferred_element_type=jnp.float32)
                              .astype(jnp.bfloat16), rm[t],
                              preferred_element_type=jnp.float32)
                      for t in range(rs.shape[0]))
            return jnp.maximum(acc + sh, 0.0).astype(jnp.bfloat16)
        a = conv(x, rs1, rm1, sh1)
        a = conv(a, rs2, rm2, sh2)
        a = conv(a, rs3, rm3, sh3)
        h = sum(jnp.dot(jnp.dot(pick[r], a, preferred_element_type=jnp.float32)
                        .astype(jnp.bfloat16), w1r[r],
                        preferred_element_type=jnp.float32)
                for r in range(pick.shape[0]))
        h = jnp.maximum(h + b1, 0.0).astype(jnp.bfloat16)
        h = jnp.maximum(jnp.dot(h, w2m, preferred_element_type=jnp.float32) + b2,
                        0.0).astype(jnp.bfloat16)
        return jnp.dot(h, w3m, preferred_element_type=jnp.float32) + b3

    out = jax.vmap(one)(x0)
    return out[:, 0, :cfg.num_classes]


def sarnet3d_reference_f32(cfg, p, x):
    """Direct f32 conv/BN/FC reference (semantic check, looser tolerance)."""
    def conv_bn_relu(x, w, b, g, be, m, v, stride):
        y = jax.lax.conv_general_dilated(
            x, w, window_strides=stride, padding="VALID",
            dimension_numbers=("NCDHW", "OIDHW", "NCDHW"))
        scale = g / jnp.sqrt(v + 1e-5)
        shift = be + scale * (b - m)
        y = y * scale.reshape(1, -1, 1, 1, 1) + shift.reshape(1, -1, 1, 1, 1)
        return jnp.maximum(y, 0.0)

    x = conv_bn_relu(x, p["w1"], p["b1"], p["g1"], p["be1"], p["m1"], p["v1"], cfg.s1)
    x = conv_bn_relu(x, p["w2"], p["b2"], p["g2"], p["be2"], p["m2"], p["v2"], cfg.s2)
    x = conv_bn_relu(x, p["w3"], p["b3"], p["g3"], p["be3"], p["m3"], p["v3"], cfg.s3)
    x = x.reshape(x.shape[0], -1)
    x = jnp.maximum(x @ p["fw1"].T + p["fb1"], 0.0)
    x = jnp.maximum(x @ p["fw2"].T + p["fb2"], 0.0)
    return x @ p["fw3"].T + p["fb3"]


# --------------------------------------------------------------------------
def init_params(cfg, key):
    ks = list(jax.random.split(key, 24))
    it = iter(ks)

    def conv_w(cout, cin, kern):
        fan_in = cin * kern[0] * kern[1] * kern[2]
        bound = 1.0 / math.sqrt(fan_in)
        return jax.random.uniform(next(it), (cout, cin) + kern, jnp.float32, -bound, bound)

    def vec(n, lo, hi):
        return jax.random.uniform(next(it), (n,), jnp.float32, lo, hi)

    p = {}
    for idx, (cout, cin, kern) in enumerate(
            [(cfg.ch1, 1, cfg.k1), (cfg.ch2, cfg.ch1, cfg.k2), (cfg.ch3, cfg.ch2, cfg.k3)], 1):
        p[f"w{idx}"] = conv_w(cout, cin, kern)
        p[f"b{idx}"] = vec(cout, -0.1, 0.1)
        p[f"g{idx}"] = vec(cout, 0.8, 1.2)
        p[f"be{idx}"] = vec(cout, -0.1, 0.1)
        p[f"m{idx}"] = vec(cout, -0.1, 0.1)
        p[f"v{idx}"] = vec(cout, 0.9, 1.1)

    def lin(fout, fin):
        bound = 1.0 / math.sqrt(fin)
        return (jax.random.uniform(next(it), (fout, fin), jnp.float32, -bound, bound),
                jax.random.uniform(next(it), (fout,), jnp.float32, -bound, bound))

    p["fw1"], p["fb1"] = lin(cfg.fc_hidden1, cfg.flat)
    p["fw2"], p["fb2"] = lin(cfg.fc_hidden2, cfg.fc_hidden1)
    p["fw3"], p["fb3"] = lin(cfg.num_classes, cfg.fc_hidden2)
    return p


if __name__ == "__main__":
    cfg = SarNet3DConfig(t_dim=3, img_x=33, img_y=33,
                         fc_hidden1=64, fc_hidden2=32, num_classes=2)
    key = jax.random.PRNGKey(0)
    kx, kp = jax.random.split(key)
    params = init_params(cfg, kp)
    prep = prepare_params(cfg, params)       # one-time host-side weight folding

    # input: (batch=2, channels=1, t=3, x=33, y=33) -- PyTorch NCDHW
    x = jax.random.normal(kx, (2, 1, cfg.t_dim, cfg.img_x, cfg.img_y), jnp.float32)

    fwd = jax.jit(partial(sarnet3d_forward, cfg))
    out = jax.block_until_ready(fwd(prep, x))

    ref_folded = jax.block_until_ready(sarnet3d_folded_ref(cfg, prep, x))
    ref_f32 = jax.block_until_ready(sarnet3d_reference_f32(cfg, params, x))

    assert out.shape == (2, cfg.num_classes)
    # tight: same bf16/f32 math replayed in plain JAX (validates the Pallas lowering)
    assert jnp.allclose(out, ref_folded, atol=2e-3, rtol=2e-3), (out, ref_folded)
    # loose: direct f32 convolution reference (validates the weight folding / semantics)
    assert jnp.allclose(out, ref_f32, atol=5e-2, rtol=5e-2), (out, ref_f32)

    print("KERNEL_OK")
</pallas_src>

<mosaic_0001>
module attributes {stable_mosaic.version = 11 : i64} {
  func.func @_sarnet_kernel(%arg0: i32, %arg1: memref<1x33x99xbf16, #tpu.memory_space<vmem>>, %arg2: memref<5x15x33xbf16, #tpu.memory_space<vmem>>, %arg3: memref<5x99x480xbf16, #tpu.memory_space<vmem>>, %arg4: memref<1x480xf32, #tpu.memory_space<vmem>>, %arg5: memref<3x7x15xbf16, #tpu.memory_space<vmem>>, %arg6: memref<3x480x448xbf16, #tpu.memory_space<vmem>>, %arg7: memref<1x448xf32, #tpu.memory_space<vmem>>, %arg8: memref<3x3x7xbf16, #tpu.memory_space<vmem>>, %arg9: memref<3x448x384xbf16, #tpu.memory_space<vmem>>, %arg10: memref<1x384xf32, #tpu.memory_space<vmem>>, %arg11: memref<3x1x3xbf16, #tpu.memory_space<vmem>>, %arg12: memref<3x384x64xbf16, #tpu.memory_space<vmem>>, %arg13: memref<1x64xf32, #tpu.memory_space<vmem>>, %arg14: memref<64x32xbf16, #tpu.memory_space<vmem>>, %arg15: memref<1x32xf32, #tpu.memory_space<vmem>>, %arg16: memref<32x128xbf16, #tpu.memory_space<vmem>>, %arg17: memref<1x128xf32, #tpu.memory_space<vmem>>, %arg18: memref<1x1x128xf32, #tpu.memory_space<vmem>>) attributes {dimension_semantics = [#tpu.dimension_semantics<parallel>], iteration_bounds = array<i64: 2>, scalar_prefetch = 0 : i64, scratch_operands = 0 : i64, tpu.core_type = #tpu.core_type<tc>, window_params = [{transform_indices = @transform_0, window_bounds = array<i64: 1, 33, 99>}, {pipeline_mode = #tpu.pipeline_mode<synchronous>, transform_indices = @transform_1, window_bounds = array<i64: 5, 15, 33>}, {pipeline_mode = #tpu.pipeline_mode<synchronous>, transform_indices = @transform_2, window_bounds = array<i64: 5, 99, 480>}, {pipeline_mode = #tpu.pipeline_mode<synchronous>, transform_indices = @transform_3, window_bounds = array<i64: 1, 480>}, {pipeline_mode = #tpu.pipeline_mode<synchronous>, transform_indices = @transform_4, window_bounds = array<i64: 3, 7, 15>}, {pipeline_mode = #tpu.pipeline_mode<synchronous>, transform_indices = @transform_5, window_bounds = array<i64: 3, 480, 448>}, {pipeline_mode = #tpu.pipeline_mode<synchronous>, transform_indices = @transform_6, window_bounds = array<i64: 1, 448>}, {pipeline_mode = #tpu.pipeline_mode<synchronous>, transform_indices = @transform_7, window_bounds = array<i64: 3, 3, 7>}, {pipeline_mode = #tpu.pipeline_mode<synchronous>, transform_indices = @transform_8, window_bounds = array<i64: 3, 448, 384>}, {pipeline_mode = #tpu.pipeline_mode<synchronous>, transform_indices = @transform_9, window_bounds = array<i64: 1, 384>}, {pipeline_mode = #tpu.pipeline_mode<synchronous>, transform_indices = @transform_10, window_bounds = array<i64: 3, 1, 3>}, {pipeline_mode = #tpu.pipeline_mode<synchronous>, transform_indices = @transform_11, window_bounds = array<i64: 3, 384, 64>}, {pipeline_mode = #tpu.pipeline_mode<synchronous>, transform_indices = @transform_12, window_bounds = array<i64: 1, 64>}, {pipeline_mode = #tpu.pipeline_mode<synchronous>, transform_indices = @transform_13, window_bounds = array<i64: 64, 32>}, {pipeline_mode = #tpu.pipeline_mode<synchronous>, transform_indices = @transform_14, window_bounds = array<i64: 1, 32>}, {pipeline_mode = #tpu.pipeline_mode<synchronous>, transform_indices = @transform_15, window_bounds = array<i64: 32, 128>}, {pipeline_mode = #tpu.pipeline_mode<synchronous>, transform_indices = @transform_16, window_bounds = array<i64: 1, 128>}, {transform_indices = @transform_17, window_bounds = array<i64: 1, 1, 128>}]} {
    %c0 = arith.constant 0 : index
    %c0_0 = arith.constant 0 : index
    %c0_1 = arith.constant 0 : index
    %0 = vector.load %arg1[%c0, %c0_0, %c0_1] : memref<1x33x99xbf16, #tpu.memory_space<vmem>>, vector<1x33x99xbf16>
    %1 = vector.shape_cast %0 : vector<1x33x99xbf16> to vector<33x99xbf16>
    %cst = arith.constant 0.000000e+00 : f32
    %2 = vector.broadcast %cst : f32 to vector<15x480xf32>
    %c0_2 = arith.constant 0 : index
    %c0_3 = arith.constant 0 : index
    %c0_4 = arith.constant 0 : index
    %3 = vector.load %arg2[%c0_2, %c0_3, %c0_4] : memref<5x15x33xbf16, #tpu.memory_space<vmem>>, vector<1x15x33xbf16>
    %4 = vector.shape_cast %3 : vector<1x15x33xbf16> to vector<15x33xbf16>
    %cst_5 = arith.constant dense<0.000000e+00> : vector<15x99xf32>
    %5 = tpu.matmul %4, %1, %cst_5 {dimension_numbers = #tpu.dot_dimension_numbers<[1], [0], [0], [1], [0, 0, 1, 1], [], []>} : vector<15x33xbf16>, vector<33x99xbf16>, vector<15x99xf32> -> vector<15x99xf32>
    %6 = arith.truncf %5 : vector<15x99xf32> to vector<15x99xbf16>
    %c0_6 = arith.constant 0 : index
    %c0_7 = arith.constant 0 : index
    %c0_8 = arith.constant 0 : index
    %7 = vector.load %arg3[%c0_6, %c0_7, %c0_8] : memref<5x99x480xbf16, #tpu.memory_space<vmem>>, vector<1x99x480xbf16>
    %8 = vector.shape_cast %7 : vector<1x99x480xbf16> to vector<99x480xbf16>
    %cst_9 = arith.constant dense<0.000000e+00> : vector<15x480xf32>
    %9 = tpu.matmul %6, %8, %cst_9 {dimension_numbers = #tpu.dot_dimension_numbers<[1], [0], [0], [1], [0, 0, 1, 1], [], []>} : vector<15x99xbf16>, vector<99x480xbf16>, vector<15x480xf32> -> vector<15x480xf32>
    %10 = arith.addf %2, %9 : vector<15x480xf32>
    %c1 = arith.constant 1 : index
    %c0_10 = arith.constant 0 : index
    %c0_11 = arith.constant 0 : index
    %11 = vector.load %arg2[%c1, %c0_10, %c0_11] : memref<5x15x33xbf16, #tpu.memory_space<vmem>>, vector<1x15x33xbf16>
    %12 = vector.shape_cast %11 : vector<1x15x33xbf16> to vector<15x33xbf16>
    %cst_12 = arith.constant dense<0.000000e+00> : vector<15x99xf32>
    %13 = tpu.matmul %12, %1, %cst_12 {dimension_numbers = #tpu.dot_dimension_numbers<[1], [0], [0], [1], [0, 0, 1, 1], [], []>} : vector<15x33xbf16>, vector<33x99xbf16>, vector<15x99xf32> -> vector<15x99xf32>
    %14 = arith.truncf %13 : vector<15x99xf32> to vector<15x99xbf16>
    %c1_13 = arith.constant 1 : index
    %c0_14 = arith.constant 0 : index
    %c0_15 = arith.constant 0 : index
    %15 = vector.load %arg3[%c1_13, %c0_14, %c0_15] : memref<5x99x480xbf16, #tpu.memory_space<vmem>>, vector<1x99x480xbf16>
    %16 = vector.shape_cast %15 : vector<1x99x480xbf16> to vector<99x480xbf16>
    %cst_16 = arith.constant dense<0.000000e+00> : vector<15x480xf32>
    %17 = tpu.matmul %14, %16, %cst_16 {dimension_numbers = #tpu.dot_dimension_numbers<[1], [0], [0], [1], [0, 0, 1, 1], [], []>} : vector<15x99xbf16>, vector<99x480xbf16>, vector<15x480xf32> -> vector<15x480xf32>
    %18 = arith.addf %10, %17 : vector<15x480xf32>
    %c2 = arith.constant 2 : index
    %c0_17 = arith.constant 0 : index
    %c0_18 = arith.constant 0 : index
    %19 = vector.load %arg2[%c2, %c0_17, %c0_18] : memref<5x15x33xbf16, #tpu.memory_space<vmem>>, vector<1x15x33xbf16>
    %20 = vector.shape_cast %19 : vector<1x15x33xbf16> to vector<15x33xbf16>
    %cst_19 = arith.constant dense<0.000000e+00> : vector<15x99xf32>
    %21 = tpu.matmul %20, %1, %cst_19 {dimension_numbers = #tpu.dot_dimension_numbers<[1], [0], [0], [1], [0, 0, 1, 1], [], []>} : vector<15x33xbf16>, vector<33x99xbf16>, vector<15x99xf32> -> vector<15x99xf32>
    %22 = arith.truncf %21 : vector<15x99xf32> to vector<15x99xbf16>
    %c2_20 = arith.constant 2 : index
    %c0_21 = arith.constant 0 : index
    %c0_22 = arith.constant 0 : index
    %23 = vector.load %arg3[%c2_20, %c0_21, %c0_22] : memref<5x99x480xbf16, #tpu.memory_space<vmem>>, vector<1x99x480xbf16>
    %24 = vector.shape_cast %23 : vector<1x99x480xbf16> to vector<99x480xbf16>
    %cst_23 = arith.constant dense<0.000000e+00> : vector<15x480xf32>
    %25 = tpu.matmul %22, %24, %cst_23 {dimension_numbers = #tpu.dot_dimension_numbers<[1], [0], [0], [1], [0, 0, 1, 1], [], []>} : vector<15x99xbf16>, vector<99x480xbf16>, vector<15x480xf32> -> vector<15x480xf32>
    %26 = arith.addf %18, %25 : vector<15x480xf32>
    %c3 = arith.constant 3 : index
    %c0_24 = arith.constant 0 : index
    %c0_25 = arith.constant 0 : index
    %27 = vector.load %arg2[%c3, %c0_24, %c0_25] : memref<5x15x33xbf16, #tpu.memory_space<vmem>>, vector<1x15x33xbf16>
    %28 = vector.shape_cast %27 : vector<1x15x33xbf16> to vector<15x33xbf16>
    %cst_26 = arith.constant dense<0.000000e+00> : vector<15x99xf32>
    %29 = tpu.matmul %28, %1, %cst_26 {dimension_numbers = #tpu.dot_dimension_numbers<[1], [0], [0], [1], [0, 0, 1, 1], [], []>} : vector<15x33xbf16>, vector<33x99xbf16>, vector<15x99xf32> -> vector<15x99xf32>
    %30 = arith.truncf %29 : vector<15x99xf32> to vector<15x99xbf16>
    %c3_27 = arith.constant 3 : index
    %c0_28 = arith.constant 0 : index
    %c0_29 = arith.constant 0 : index
    %31 = vector.load %arg3[%c3_27, %c0_28, %c0_29] : memref<5x99x480xbf16, #tpu.memory_space<vmem>>, vector<1x99x480xbf16>
    %32 = vector.shape_cast %31 : vector<1x99x480xbf16> to vector<99x480xbf16>
    %cst_30 = arith.constant dense<0.000000e+00> : vector<15x480xf32>
    %33 = tpu.matmul %30, %32, %cst_30 {dimension_numbers = #tpu.dot_dimension_numbers<[1], [0], [0], [1], [0, 0, 1, 1], [], []>} : vector<15x99xbf16>, vector<99x480xbf16>, vector<15x480xf32> -> vector<15x480xf32>
    %34 = arith.addf %26, %33 : vector<15x480xf32>
    %c4 = arith.constant 4 : index
    %c0_31 = arith.constant 0 : index
    %c0_32 = arith.constant 0 : index
    %35 = vector.load %arg2[%c4, %c0_31, %c0_32] : memref<5x15x33xbf16, #tpu.memory_space<vmem>>, vector<1x15x33xbf16>
    %36 = vector.shape_cast %35 : vector<1x15x33xbf16> to vector<15x33xbf16>
    %cst_33 = arith.constant dense<0.000000e+00> : vector<15x99xf32>
    %37 = tpu.matmul %36, %1, %cst_33 {dimension_numbers = #tpu.dot_dimension_numbers<[1], [0], [0], [1], [0, 0, 1, 1], [], []>} : vector<15x33xbf16>, vector<33x99xbf16>, vector<15x99xf32> -> vector<15x99xf32>
    %38 = arith.truncf %37 : vector<15x99xf32> to vector<15x99xbf16>
    %c4_34 = arith.constant 4 : index
    %c0_35 = arith.constant 0 : index
    %c0_36 = arith.constant 0 : index
    %39 = vector.load %arg3[%c4_34, %c0_35, %c0_36] : memref<5x99x480xbf16, #tpu.memory_space<vmem>>, vector<1x99x480xbf16>
    %40 = vector.shape_cast %39 : vector<1x99x480xbf16> to vector<99x480xbf16>
    %cst_37 = arith.constant dense<0.000000e+00> : vector<15x480xf32>
    %41 = tpu.matmul %38, %40, %cst_37 {dimension_numbers = #tpu.dot_dimension_numbers<[1], [0], [0], [1], [0, 0, 1, 1], [], []>} : vector<15x99xbf16>, vector<99x480xbf16>, vector<15x480xf32> -> vector<15x480xf32>
    %42 = arith.addf %34, %41 : vector<15x480xf32>
    %c0_38 = arith.constant 0 : index
    %c0_39 = arith.constant 0 : index
    %43 = vector.load %arg4[%c0_38, %c0_39] : memref<1x480xf32, #tpu.memory_space<vmem>>, vector<1x480xf32>
    %44 = vector.broadcast %43 : vector<1x480xf32> to vector<15x480xf32>
    %45 = arith.addf %42, %44 : vector<15x480xf32>
    %cst_40 = arith.constant 0.000000e+00 : f32
    %46 = vector.broadcast %cst_40 : f32 to vector<15x480xf32>
    %47 = arith.maximumf %45, %46 : vector<15x480xf32>
    %48 = arith.truncf %47 : vector<15x480xf32> to vector<15x480xbf16>
    %cst_41 = arith.constant 0.000000e+00 : f32
    %49 = vector.broadcast %cst_41 : f32 to vector<7x448xf32>
    %c0_42 = arith.constant 0 : index
    %c0_43 = arith.constant 0 : index
    %c0_44 = arith.constant 0 : index
    %50 = vector.load %arg5[%c0_42, %c0_43, %c0_44] : memref<3x7x15xbf16, #tpu.memory_space<vmem>>, vector<1x7x15xbf16>
    %51 = vector.shape_cast %50 : vector<1x7x15xbf16> to vector<7x15xbf16>
    %cst_45 = arith.constant dense<0.000000e+00> : vector<7x480xf32>
    %52 = tpu.matmul %51, %48, %cst_45 {dimension_numbers = #tpu.dot_dimension_numbers<[1], [0], [0], [1], [0, 0, 1, 1], [], []>} : vector<7x15xbf16>, vector<15x480xbf16>, vector<7x480xf32> -> vector<7x480xf32>
    %53 = arith.truncf %52 : vector<7x480xf32> to vector<7x480xbf16>
    %c0_46 = arith.constant 0 : index
    %c0_47 = arith.constant 0 : index
    %c0_48 = arith.constant 0 : index
    %54 = vector.load %arg6[%c0_46, %c0_47, %c0_48] : memref<3x480x448xbf16, #tpu.memory_space<vmem>>, vector<1x480x448xbf16>
    %55 = vector.shape_cast %54 : vector<1x480x448xbf16> to vector<480x448xbf16>
    %cst_49 = arith.constant dense<0.000000e+00> : vector<7x448xf32>
    %56 = tpu.matmul %53, %55, %cst_49 {dimension_numbers = #tpu.dot_dimension_numbers<[1], [0], [0], [1], [0, 0, 1, 1], [], []>} : vector<7x480xbf16>, vector<480x448xbf16>, vector<7x448xf32> -> vector<7x448xf32>
    %57 = arith.addf %49, %56 : vector<7x448xf32>
    %c1_50 = arith.constant 1 : index
    %c0_51 = arith.constant 0 : index
    %c0_52 = arith.constant 0 : index
    %58 = vector.load %arg5[%c1_50, %c0_51, %c0_52] : memref<3x7x15xbf16, #tpu.memory_space<vmem>>, vector<1x7x15xbf16>
    %59 = vector.shape_cast %58 : vector<1x7x15xbf16> to vector<7x15xbf16>
    %cst_53 = arith.constant dense<0.000000e+00> : vector<7x480xf32>
    %60 = tpu.matmul %59, %48, %cst_53 {dimension_numbers = #tpu.dot_dimension_numbers<[1], [0], [0], [1], [0, 0, 1, 1], [], []>} : vector<7x15xbf16>, vector<15x480xbf16>, vector<7x480xf32> -> vector<7x480xf32>
    %61 = arith.truncf %60 : vector<7x480xf32> to vector<7x480xbf16>
    %c1_54 = arith.constant 1 : index
    %c0_55 = arith.constant 0 : index
    %c0_56 = arith.constant 0 : index
    %62 = vector.load %arg6[%c1_54, %c0_55, %c0_56] : memref<3x480x448xbf16, #tpu.memory_space<vmem>>, vector<1x480x448xbf16>
    %63 = vector.shape_cast %62 : vector<1x480x448xbf16> to vector<480x448xbf16>
    %cst_57 = arith.constant dense<0.000000e+00> : vector<7x448xf32>
    %64 = tpu.matmul %61, %63, %cst_57 {dimension_numbers = #tpu.dot_dimension_numbers<[1], [0], [0], [1], [0, 0, 1, 1], [], []>} : vector<7x480xbf16>, vector<480x448xbf16>, vector<7x448xf32> -> vector<7x448xf32>
    %65 = arith.addf %57, %64 : vector<7x448xf32>
    %c2_58 = arith.constant 2 : index
    %c0_59 = arith.constant 0 : index
    %c0_60 = arith.constant 0 : index
    %66 = vector.load %arg5[%c2_58, %c0_59, %c0_60] : memref<3x7x15xbf16, #tpu.memory_space<vmem>>, vector<1x7x15xbf16>
    %67 = vector.shape_cast %66 : vector<1x7x15xbf16> to vector<7x15xbf16>
    %cst_61 = arith.constant dense<0.000000e+00> : vector<7x480xf32>
    %68 = tpu.matmul %67, %48, %cst_61 {dimension_numbers = #tpu.dot_dimension_numbers<[1], [0], [0], [1], [0, 0, 1, 1], [], []>} : vector<7x15xbf16>, vector<15x480xbf16>, vector<7x480xf32> -> vector<7x480xf32>
    %69 = arith.truncf %68 : vector<7x480xf32> to vector<7x480xbf16>
    %c2_62 = arith.constant 2 : index
    %c0_63 = arith.constant 0 : index
    %c0_64 = arith.constant 0 : index
    %70 = vector.load %arg6[%c2_62, %c0_63, %c0_64] : memref<3x480x448xbf16, #tpu.memory_space<vmem>>, vector<1x480x448xbf16>
    %71 = vector.shape_cast %70 : vector<1x480x448xbf16> to vector<480x448xbf16>
    %cst_65 = arith.constant dense<0.000000e+00> : vector<7x448xf32>
    %72 = tpu.matmul %69, %71, %cst_65 {dimension_numbers = #tpu.dot_dimension_numbers<[1], [0], [0], [1], [0, 0, 1, 1], [], []>} : vector<7x480xbf16>, vector<480x448xbf16>, vector<7x448xf32> -> vector<7x448xf32>
    %73 = arith.addf %65, %72 : vector<7x448xf32>
    %c0_66 = arith.constant 0 : index
    %c0_67 = arith.constant 0 : index
    %74 = vector.load %arg7[%c0_66, %c0_67] : memref<1x448xf32, #tpu.memory_space<vmem>>, vector<1x448xf32>
    %75 = vector.broadcast %74 : vector<1x448xf32> to vector<7x448xf32>
    %76 = arith.addf %73, %75 : vector<7x448xf32>
    %cst_68 = arith.constant 0.000000e+00 : f32
    %77 = vector.broadcast %cst_68 : f32 to vector<7x448xf32>
    %78 = arith.maximumf %76, %77 : vector<7x448xf32>
    %79 = arith.truncf %78 : vector<7x448xf32> to vector<7x448xbf16>
    %cst_69 = arith.constant 0.000000e+00 : f32
    %80 = vector.broadcast %cst_69 : f32 to vector<3x384xf32>
    %c0_70 = arith.constant 0 : index
    %c0_71 = arith.constant 0 : index
    %c0_72 = arith.constant 0 : index
    %81 = vector.load %arg8[%c0_70, %c0_71, %c0_72] : memref<3x3x7xbf16, #tpu.memory_space<vmem>>, vector<1x3x7xbf16>
    %82 = vector.shape_cast %81 : vector<1x3x7xbf16> to vector<3x7xbf16>
    %cst_73 = arith.constant dense<0.000000e+00> : vector<3x448xf32>
    %83 = tpu.matmul %82, %79, %cst_73 {dimension_numbers = #tpu.dot_dimension_numbers<[1], [0], [0], [1], [0, 0, 1, 1], [], []>} : vector<3x7xbf16>, vector<7x448xbf16>, vector<3x448xf32> -> vector<3x448xf32>
    %84 = arith.truncf %83 : vector<3x448xf32> to vector<3x448xbf16>
    %c0_74 = arith.constant 0 : index
    %c0_75 = arith.constant 0 : index
    %c0_76 = arith.constant 0 : index
    %85 = vector.load %arg9[%c0_74, %c0_75, %c0_76] : memref<3x448x384xbf16, #tpu.memory_space<vmem>>, vector<1x448x384xbf16>
    %86 = vector.shape_cast %85 : vector<1x448x384xbf16> to vector<448x384xbf16>
    %cst_77 = arith.constant dense<0.000000e+00> : vector<3x384xf32>
    %87 = tpu.matmul %84, %86, %cst_77 {dimension_numbers = #tpu.dot_dimension_numbers<[1], [0], [0], [1], [0, 0, 1, 1], [], []>} : vector<3x448xbf16>, vector<448x384xbf16>, vector<3x384xf32> -> vector<3x384xf32>
    %88 = arith.addf %80, %87 : vector<3x384xf32>
    %c1_78 = arith.constant 1 : index
    %c0_79 = arith.constant 0 : index
    %c0_80 = arith.constant 0 : index
    %89 = vector.load %arg8[%c1_78, %c0_79, %c0_80] : memref<3x3x7xbf16, #tpu.memory_space<vmem>>, vector<1x3x7xbf16>
    %90 = vector.shape_cast %89 : vector<1x3x7xbf16> to vector<3x7xbf16>
    %cst_81 = arith.constant dense<0.000000e+00> : vector<3x448xf32>
    %91 = tpu.matmul %90, %79, %cst_81 {dimension_numbers = #tpu.dot_dimension_numbers<[1], [0], [0], [1], [0, 0, 1, 1], [], []>} : vector<3x7xbf16>, vector<7x448xbf16>, vector<3x448xf32> -> vector<3x448xf32>
    %92 = arith.truncf %91 : vector<3x448xf32> to vector<3x448xbf16>
    %c1_82 = arith.constant 1 : index
    %c0_83 = arith.constant 0 : index
    %c0_84 = arith.constant 0 : index
    %93 = vector.load %arg9[%c1_82, %c0_83, %c0_84] : memref<3x448x384xbf16, #tpu.memory_space<vmem>>, vector<1x448x384xbf16>
    %94 = vector.shape_cast %93 : vector<1x448x384xbf16> to vector<448x384xbf16>
    %cst_85 = arith.constant dense<0.000000e+00> : vector<3x384xf32>
    %95 = tpu.matmul %92, %94, %cst_85 {dimension_numbers = #tpu.dot_dimension_numbers<[1], [0], [0], [1], [0, 0, 1, 1], [], []>} : vector<3x448xbf16>, vector<448x384xbf16>, vector<3x384xf32> -> vector<3x384xf32>
    %96 = arith.addf %88, %95 : vector<3x384xf32>
    %c2_86 = arith.constant 2 : index
    %c0_87 = arith.constant 0 : index
    %c0_88 = arith.constant 0 : index
    %97 = vector.load %arg8[%c2_86, %c0_87, %c0_88] : memref<3x3x7xbf16, #tpu.memory_space<vmem>>, vector<1x3x7xbf16>
    %98 = vector.shape_cast %97 : vector<1x3x7xbf16> to vector<3x7xbf16>
    %cst_89 = arith.constant dense<0.000000e+00> : vector<3x448xf32>
    %99 = tpu.matmul %98, %79, %cst_89 {dimension_numbers = #tpu.dot_dimension_numbers<[1], [0], [0], [1], [0, 0, 1, 1], [], []>} : vector<3x7xbf16>, vector<7x448xbf16>, vector<3x448xf32> -> vector<3x448xf32>
    %100 = arith.truncf %99 : vector<3x448xf32> to vector<3x448xbf16>
    %c2_90 = arith.constant 2 : index
    %c0_91 = arith.constant 0 : index
    %c0_92 = arith.constant 0 : index
    %101 = vector.load %arg9[%c2_90, %c0_91, %c0_92] : memref<3x448x384xbf16, #tpu.memory_space<vmem>>, vector<1x448x384xbf16>
    %102 = vector.shape_cast %101 : vector<1x448x384xbf16> to vector<448x384xbf16>
    %cst_93 = arith.constant dense<0.000000e+00> : vector<3x384xf32>
    %103 = tpu.matmul %100, %102, %cst_93 {dimension_numbers = #tpu.dot_dimension_numbers<[1], [0], [0], [1], [0, 0, 1, 1], [], []>} : vector<3x448xbf16>, vector<448x384xbf16>, vector<3x384xf32> -> vector<3x384xf32>
    %104 = arith.addf %96, %103 : vector<3x384xf32>
    %c0_94 = arith.constant 0 : index
    %c0_95 = arith.constant 0 : index
    %105 = vector.load %arg10[%c0_94, %c0_95] : memref<1x384xf32, #tpu.memory_space<vmem>>, vector<1x384xf32>
    %106 = vector.broadcast %105 : vector<1x384xf32> to vector<3x384xf32>
    %107 = arith.addf %104, %106 : vector<3x384xf32>
    %cst_96 = arith.constant 0.000000e+00 : f32
    %108 = vector.broadcast %cst_96 : f32 to vector<3x384xf32>
    %109 = arith.maximumf %107, %108 : vector<3x384xf32>
    %110 = arith.truncf %109 : vector<3x384xf32> to vector<3x384xbf16>
    %cst_97 = arith.constant 0.000000e+00 : f32
    %111 = vector.broadcast %cst_97 : f32 to vector<1x64xf32>
    %c0_98 = arith.constant 0 : index
    %c0_99 = arith.constant 0 : index
    %c0_100 = arith.constant 0 : index
    %112 = vector.load %arg11[%c0_98, %c0_99, %c0_100] : memref<3x1x3xbf16, #tpu.memory_space<vmem>>, vector<1x1x3xbf16>
    %113 = vector.shape_cast %112 : vector<1x1x3xbf16> to vector<1x3xbf16>
    %cst_101 = arith.constant dense<0.000000e+00> : vector<1x384xf32>
    %114 = tpu.matmul %113, %110, %cst_101 {dimension_numbers = #tpu.dot_dimension_numbers<[1], [0], [0], [1], [0, 0, 1, 1], [], []>} : vector<1x3xbf16>, vector<3x384xbf16>, vector<1x384xf32> -> vector<1x384xf32>
    %115 = arith.truncf %114 : vector<1x384xf32> to vector<1x384xbf16>
    %c0_102 = arith.constant 0 : index
    %c0_103 = arith.constant 0 : index
    %c0_104 = arith.constant 0 : index
    %116 = vector.load %arg12[%c0_102, %c0_103, %c0_104] : memref<3x384x64xbf16, #tpu.memory_space<vmem>>, vector<1x384x64xbf16>
    %117 = vector.shape_cast %116 : vector<1x384x64xbf16> to vector<384x64xbf16>
    %cst_105 = arith.constant dense<0.000000e+00> : vector<1x64xf32>
    %118 = tpu.matmul %115, %117, %cst_105 {dimension_numbers = #tpu.dot_dimension_numbers<[1], [0], [0], [1], [0, 0, 1, 1], [], []>} : vector<1x384xbf16>, vector<384x64xbf16>, vector<1x64xf32> -> vector<1x64xf32>
    %119 = arith.addf %111, %118 : vector<1x64xf32>
    %c1_106 = arith.constant 1 : index
    %c0_107 = arith.constant 0 : index
    %c0_108 = arith.constant 0 : index
    %120 = vector.load %arg11[%c1_106, %c0_107, %c0_108] : memref<3x1x3xbf16, #tpu.memory_space<vmem>>, vector<1x1x3xbf16>
    %121 = vector.shape_cast %120 : vector<1x1x3xbf16> to vector<1x3xbf16>
    %cst_109 = arith.constant dense<0.000000e+00> : vector<1x384xf32>
    %122 = tpu.matmul %121, %110, %cst_109 {dimension_numbers = #tpu.dot_dimension_numbers<[1], [0], [0], [1], [0, 0, 1, 1], [], []>} : vector<1x3xbf16>, vector<3x384xbf16>, vector<1x384xf32> -> vector<1x384xf32>
    %123 = arith.truncf %122 : vector<1x384xf32> to vector<1x384xbf16>
    %c1_110 = arith.constant 1 : index
    %c0_111 = arith.constant 0 : index
    %c0_112 = arith.constant 0 : index
    %124 = vector.load %arg12[%c1_110, %c0_111, %c0_112] : memref<3x384x64xbf16, #tpu.memory_space<vmem>>, vector<1x384x64xbf16>
    %125 = vector.shape_cast %124 : vector<1x384x64xbf16> to vector<384x64xbf16>
    %cst_113 = arith.constant dense<0.000000e+00> : vector<1x64xf32>
    %126 = tpu.matmul %123, %125, %cst_113 {dimension_numbers = #tpu.dot_dimension_numbers<[1], [0], [0], [1], [0, 0, 1, 1], [], []>} : vector<1x384xbf16>, vector<384x64xbf16>, vector<1x64xf32> -> vector<1x64xf32>
    %127 = arith.addf %119, %126 : vector<1x64xf32>
    %c2_114 = arith.constant 2 : index
    %c0_115 = arith.constant 0 : index
    %c0_116 = arith.constant 0 : index
    %128 = vector.load %arg11[%c2_114, %c0_115, %c0_116] : memref<3x1x3xbf16, #tpu.memory_space<vmem>>, vector<1x1x3xbf16>
    %129 = vector.shape_cast %128 : vector<1x1x3xbf16> to vector<1x3xbf16>
    %cst_117 = arith.constant dense<0.000000e+00> : vector<1x384xf32>
    %130 = tpu.matmul %129, %110, %cst_117 {dimension_numbers = #tpu.dot_dimension_numbers<[1], [0], [0], [1], [0, 0, 1, 1], [], []>} : vector<1x3xbf16>, vector<3x384xbf16>, vector<1x384xf32> -> vector<1x384xf32>
    %131 = arith.truncf %130 : vector<1x384xf32> to vector<1x384xbf16>
    %c2_118 = arith.constant 2 : index
    %c0_119 = arith.constant 0 : index
    %c0_120 = arith.constant 0 : index
    %132 = vector.load %arg12[%c2_118, %c0_119, %c0_120] : memref<3x384x64xbf16, #tpu.memory_space<vmem>>, vector<1x384x64xbf16>
    %133 = vector.shape_cast %132 : vector<1x384x64xbf16> to vector<384x64xbf16>
    %cst_121 = arith.constant dense<0.000000e+00> : vector<1x64xf32>
    %134 = tpu.matmul %131, %133, %cst_121 {dimension_numbers = #tpu.dot_dimension_numbers<[1], [0], [0], [1], [0, 0, 1, 1], [], []>} : vector<1x384xbf16>, vector<384x64xbf16>, vector<1x64xf32> -> vector<1x64xf32>
    %135 = arith.addf %127, %134 : vector<1x64xf32>
    %c0_122 = arith.constant 0 : index
    %c0_123 = arith.constant 0 : index
    %136 = vector.load %arg13[%c0_122, %c0_123] : memref<1x64xf32, #tpu.memory_space<vmem>>, vector<1x64xf32>
    %137 = arith.addf %135, %136 : vector<1x64xf32>
    %cst_124 = arith.constant 0.000000e+00 : f32
    %138 = vector.broadcast %cst_124 : f32 to vector<1x64xf32>
    %139 = arith.maximumf %137, %138 : vector<1x64xf32>
    %140 = arith.truncf %139 : vector<1x64xf32> to vector<1x64xbf16>
    %c0_125 = arith.constant 0 : index
    %c0_126 = arith.constant 0 : index
    %141 = vector.load %arg14[%c0_125, %c0_126] : memref<64x32xbf16, #tpu.memory_space<vmem>>, vector<64x32xbf16>
    %cst_127 = arith.constant dense<0.000000e+00> : vector<1x32xf32>
    %142 = tpu.matmul %140, %141, %cst_127 {dimension_numbers = #tpu.dot_dimension_numbers<[1], [0], [0], [1], [0, 0, 1, 1], [], []>} : vector<1x64xbf16>, vector<64x32xbf16>, vector<1x32xf32> -> vector<1x32xf32>
    %c0_128 = arith.constant 0 : index
    %c0_129 = arith.constant 0 : index
    %143 = vector.load %arg15[%c0_128, %c0_129] : memref<1x32xf32, #tpu.memory_space<vmem>>, vector<1x32xf32>
    %144 = arith.addf %142, %143 : vector<1x32xf32>
    %cst_130 = arith.constant 0.000000e+00 : f32
    %145 = vector.broadcast %cst_130 : f32 to vector<1x32xf32>
    %146 = arith.maximumf %144, %145 : vector<1x32xf32>
    %147 = arith.truncf %146 : vector<1x32xf32> to vector<1x32xbf16>
    %c0_131 = arith.constant 0 : index
    %c0_132 = arith.constant 0 : index
    %148 = vector.load %arg16[%c0_131, %c0_132] : memref<32x128xbf16, #tpu.memory_space<vmem>>, vector<32x128xbf16>
    %cst_133 = arith.constant dense<0.000000e+00> : vector<1x128xf32>
    %149 = tpu.matmul %147, %148, %cst_133 {dimension_numbers = #tpu.dot_dimension_numbers<[1], [0], [0], [1], [0, 0, 1, 1], [], []>} : vector<1x32xbf16>, vector<32x128xbf16>, vector<1x128xf32> -> vector<1x128xf32>
    %c0_134 = arith.constant 0 : index
    %c0_135 = arith.constant 0 : index
    %150 = vector.load %arg17[%c0_134, %c0_135] : memref<1x128xf32, #tpu.memory_space<vmem>>, vector<1x128xf32>
    %151 = arith.addf %149, %150 : vector<1x128xf32>
    %c0_136 = arith.constant 0 : index
    %c0_137 = arith.constant 0 : index
    %c0_138 = arith.constant 0 : index
    %152 = vector.load %arg18[%c0_136, %c0_137, %c0_138] : memref<1x1x128xf32, #tpu.memory_space<vmem>>, vector<1x1x128xf32>
    %153 = vector.shape_cast %152 : vector<1x1x128xf32> to vector<1x128xf32>
    %154 = vector.shape_cast %151 : vector<1x128xf32> to vector<1x1x128xf32>
    tpu.vector_store %arg18[%c0_136, %c0_137, %c0_138], %154 {strides = array<i32>} : memref<1x1x128xf32, #tpu.memory_space<vmem>>, vector<1x1x128xf32>,
    return
  }
  func.func @transform_0(%arg0: i32) -> (i32, i32, i32) {
    %c0_i32 = arith.constant 0 : i32
    %c0_i32_0 = arith.constant 0 : i32
    %c0_i32_1 = arith.constant 0 : i32
    return %arg0, %c0_i32, %c0_i32_0 : i32, i32, i32
  }
  func.func @transform_1(%arg0: i32) -> (i32, i32, i32) {
    %c0_i32 = arith.constant 0 : i32
    %c0_i32_0 = arith.constant 0 : i32
    %c0_i32_1 = arith.constant 0 : i32
    %c0_i32_2 = arith.constant 0 : i32
    return %c0_i32, %c0_i32_0, %c0_i32_1 : i32, i32, i32
  }
  func.func @transform_2(%arg0: i32) -> (i32, i32, i32) {
    %c0_i32 = arith.constant 0 : i32
    %c0_i32_0 = arith.constant 0 : i32
    %c0_i32_1 = arith.constant 0 : i32
    %c0_i32_2 = arith.constant 0 : i32
    return %c0_i32, %c0_i32_0, %c0_i32_1 : i32, i32, i32
  }
  func.func @transform_3(%arg0: i32) -> (i32, i32) {
    %c0_i32 = arith.constant 0 : i32
    %c0_i32_0 = arith.constant 0 : i32
    %c0_i32_1 = arith.constant 0 : i32
    return %c0_i32, %c0_i32_0 : i32, i32
  }
  func.func @transform_4(%arg0: i32) -> (i32, i32, i32) {
    %c0_i32 = arith.constant 0 : i32
    %c0_i32_0 = arith.constant 0 : i32
    %c0_i32_1 = arith.constant 0 : i32
    %c0_i32_2 = arith.constant 0 : i32
    return %c0_i32, %c0_i32_0, %c0_i32_1 : i32, i32, i32
  }
  func.func @transform_5(%arg0: i32) -> (i32, i32, i32) {
    %c0_i32 = arith.constant 0 : i32
    %c0_i32_0 = arith.constant 0 : i32
    %c0_i32_1 = arith.constant 0 : i32
    %c0_i32_2 = arith.constant 0 : i32
    return %c0_i32, %c0_i32_0, %c0_i32_1 : i32, i32, i32
  }
  func.func @transform_6(%arg0: i32) -> (i32, i32) {
    %c0_i32 = arith.constant 0 : i32
    %c0_i32_0 = arith.constant 0 : i32
    %c0_i32_1 = arith.constant 0 : i32
    return %c0_i32, %c0_i32_0 : i32, i32
  }
  func.func @transform_7(%arg0: i32) -> (i32, i32, i32) {
    %c0_i32 = arith.constant 0 : i32
    %c0_i32_0 = arith.constant 0 : i32
    %c0_i32_1 = arith.constant 0 : i32
    %c0_i32_2 = arith.constant 0 : i32
    return %c0_i32, %c0_i32_0, %c0_i32_1 : i32, i32, i32
  }
  func.func @transform_8(%arg0: i32) -> (i32, i32, i32) {
    %c0_i32 = arith.constant 0 : i32
    %c0_i32_0 = arith.constant 0 : i32
    %c0_i32_1 = arith.constant 0 : i32
    %c0_i32_2 = arith.constant 0 : i32
    return %c0_i32, %c0_i32_0, %c0_i32_1 : i32, i32, i32
  }
  func.func @transform_9(%arg0: i32) -> (i32, i32) {
    %c0_i32 = arith.constant 0 : i32
    %c0_i32_0 = arith.constant 0 : i32
    %c0_i32_1 = arith.constant 0 : i32
    return %c0_i32, %c0_i32_0 : i32, i32
  }
  func.func @transform_10(%arg0: i32) -> (i32, i32, i32) {
    %c0_i32 = arith.constant 0 : i32
    %c0_i32_0 = arith.constant 0 : i32
    %c0_i32_1 = arith.constant 0 : i32
    %c0_i32_2 = arith.constant 0 : i32
    return %c0_i32, %c0_i32_0, %c0_i32_1 : i32, i32, i32
  }
  func.func @transform_11(%arg0: i32) -> (i32, i32, i32) {
    %c0_i32 = arith.constant 0 : i32
    %c0_i32_0 = arith.constant 0 : i32
    %c0_i32_1 = arith.constant 0 : i32
    %c0_i32_2 = arith.constant 0 : i32
    return %c0_i32, %c0_i32_0, %c0_i32_1 : i32, i32, i32
  }
  func.func @transform_12(%arg0: i32) -> (i32, i32) {
    %c0_i32 = arith.constant 0 : i32
    %c0_i32_0 = arith.constant 0 : i32
    %c0_i32_1 = arith.constant 0 : i32
    return %c0_i32, %c0_i32_0 : i32, i32
  }
  func.func @transform_13(%arg0: i32) -> (i32, i32) {
    %c0_i32 = arith.constant 0 : i32
    %c0_i32_0 = arith.constant 0 : i32
    %c0_i32_1 = arith.constant 0 : i32
    return %c0_i32, %c0_i32_0 : i32, i32
  }
  func.func @transform_14(%arg0: i32) -> (i32, i32) {
    %c0_i32 = arith.constant 0 : i32
    %c0_i32_0 = arith.constant 0 : i32
    %c0_i32_1 = arith.constant 0 : i32
    return %c0_i32, %c0_i32_0 : i32, i32
  }
  func.func @transform_15(%arg0: i32) -> (i32, i32) {
    %c0_i32 = arith.constant 0 : i32
    %c0_i32_0 = arith.constant 0 : i32
    %c0_i32_1 = arith.constant 0 : i32
    return %c0_i32, %c0_i32_0 : i32, i32
  }
  func.func @transform_16(%arg0: i32) -> (i32, i32) {
    %c0_i32 = arith.constant 0 : i32
    %c0_i32_0 = arith.constant 0 : i32
    %c0_i32_1 = arith.constant 0 : i32
    return %c0_i32, %c0_i32_0 : i32, i32
  }
  func.func @transform_17(%arg0: i32) -> (i32, i32, i32) {
    %c0_i32 = arith.constant 0 : i32
    %c0_i32_0 = arith.constant 0 : i32
    %c0_i32_1 = arith.constant 0 : i32
    return %arg0, %c0_i32, %c0_i32_0 : i32, i32, i32
  }
}

</mosaic_0001>

<bundles_post_ra>
// kernel: sarnet3d_forward.1
= control target key start
LH: loop header
LB: loop body
LE: loop exit
PB: predicated region body
PF: predicated region fallthrough
CT: control target
= control target key end

     0   :  { %s15391_s0 = inlined_call_operand.vmem [shape: bf16[2,33,99], index: 0, kind: input, shape index: {}]   ;;  %s15392_s1 = inlined_call_operand.vmem [shape: bf16[5,15,33], index: 1, kind: input, shape index: {}]   ;;  %s15393_s2 = inlined_call_operand.vmem [shape: bf16[5,99,480], index: 2, kind: input, shape index: {}]   ;;  %s15394_s3 = inlined_call_operand.vmem [shape: f32[1,480], index: 3, kind: input, shape index: {}]   ;;  %s15395_s4 = inlined_call_operand.vmem [shape: bf16[3,7,15], index: 4, kind: input, shape index: {}]   ;;  %s15396_s5 = inlined_call_operand.vmem [shape: bf16[3,480,448], index: 5, kind: input, shape index: {}]   ;;  %s15397_s6 = inlined_call_operand.vmem [shape: f32[1,448], index: 6, kind: input, shape index: {}]   ;;  %s15398_s7 = inlined_call_operand.vmem [shape: bf16[3,3,7], index: 7, kind: input, shape index: {}]   ;;  %s15399_s8 = inlined_call_operand.vmem [shape: bf16[3,448,384], index: 8, kind: input, shape index: {}]   ;;  %s15400_s9 = inlined_call_operand.vmem [shape: f32[1,384], index: 9, kind: input, shape index: {}]   ;;  %s15401_s10 = inlined_call_operand.vmem [shape: bf16[3,1,3], index: 10, kind: input, shape index: {}]   ;;  %s15402_s11 = inlined_call_operand.vmem [shape: bf16[3,384,64], index: 11, kind: input, shape index: {}]   ;;  %s15403_s12 = inlined_call_operand.vmem [shape: f32[1,64], index: 12, kind: input, shape index: {}]   ;;  %s15404_s13 = inlined_call_operand.vmem [shape: bf16[64,32], index: 13, kind: input, shape index: {}]   ;;  %s15405_s14 = inlined_call_operand.vmem [shape: f32[1,32], index: 14, kind: input, shape index: {}]   ;;  %s15406_s15 = inlined_call_operand.vmem [shape: bf16[32,128], index: 15, kind: input, shape index: {}]   ;;  %s15407_s16 = inlined_call_operand.vmem [shape: f32[1,128], index: 16, kind: input, shape index: {}]   ;;  %s15408_s17 = inlined_call_operand.hbm [shape: f32[2,1,128], index: 17, kind: output, shape index: {}]  }
   0x1   :  { %15417 = sst [smem:[#allocation11_spill]] %s15391_s0 }
   0x2   :  { %15418 = sst [smem:[#allocation12_spill]] %s15392_s1 }
   0x3   :  { %15419 = sst [smem:[#allocation13_spill]] %s15408_s17 }
   0x4   :  { %22 = vsyncpa [#allocation3], 0 }
   0x5   :  { %24 = vsyncpa [#allocation3 + $0x1], 0  ;;  %s12302_s24 = smov 0   ;;  %s12304_s25 = smov 0  }
   0x6   :  { %s12306_s26 = smov 0   ;;  %s12308_s27 = smov 0  }
   0x7 LB: > { %15420 = sst [smem:[#allocation5_spill]] %s12193_s24  ;;  %s12323_s28 = sadd.s32 4294967295, %s12205_s27   ;;  %s12205_s27 = sphi %s12308_s27, %s15435_s27   ;;  %s12201_s26 = sphi %s12306_s26, %s15437_s26   ;;  %s12197_s25 = sphi %s12304_s25, %s15439_s25   ;;  %s12193_s24 = sphi %s12302_s24, %s15438_s24  }
   0x8   : > { %15421 = sst [smem:[#allocation6_spill]] %s12201_s26  ;;  %s8991_s29 = sadd.s32 4294967294, %s12205_s27  }
   0x9   : > { %15422 = sst [smem:[#allocation7_spill]] %s12205_s27  ;;  %s12327_s0 = sadd.s32 1, %s12205_s27  }
   0xa   : > { %15423 = sst [smem:[#allocation8_spill]] %s12327_s0  ;;  %s399_s30 = sadd.s32 1, %s12201_s26 }
   0xb   : > { %s396_s18 = ssub.s32 %s12205_s27, %s12327_s0  ;;  %p409_p0 = scmp.ne.s32.totalorder %s12201_s26, %s12197_s25 }
   0xc   : > { %p397_p1 = scmp.eq.s32.totalorder %s396_s18, 0  ;;  %p410_p2 = scmp.eq.s32.totalorder %s12323_s28, 1 }
   0xd   : > { %p415_p3 = scmp.ne.s32.totalorder %s12197_s25, %s12193_s24  ;;  %p416_p4 = scmp.eq.s32.totalorder %s8991_s29, 1 }
   0xe   : > { %s12338_s19 = scalar_select %p397_p1, %s12201_s26, %s399_s30  }
   0xf   : > { %p12340_p5 = por %p410_p2, %p409_p0  ;;  %p12344_p6 = por %p416_p4, %p415_p3 }
  0x10   : > { %15424 = sst [smem:[#allocation9_spill]] %s12338_s19  ;;  %p8994_p7 = scmp.ge.s32.totalorder %s12205_s27, 1 }
  0x11   : > { %s15426_s20 = scalar_select %p12344_p6, 1, 0 }
  0x12   : > { %p490_p8 = scmp.lt.s32.totalorder %s12205_s27, 3 }
  0x13   : > { %15427 = sst [smem:[#allocation10_spill]] %s15426_s20 }
  0x14   : > { %p491_p9 = pnand %p8994_p7, %p490_p8 }
  0x15   : > { %p541_p10 = scmp.lt.s32.totalorder (!%p491_p9), %s12323_s28, 1  ;;  %v12207_v0 = vmov (!%p491_p9), 0.0   ;;  %vm12208_vm0 = vmmov (!%p491_p9), 0   ;;  %s15428_s30 = sld [smem:[#allocation11_spill]] (!%p491_p9)  ;;  %vm578_vm1 = vcmask (!%p491_p9), 1040384   ;;  %v12209_v4 = vmov (!%p491_p9), 0  }
  0x16   : > { %494 = sbr.rel (%p491_p9) target bundleno = 4136 (0x1028), region = 88  ;;  %10765 = vmatprep.subr.bf16.mxu1 (!%p491_p9), %v12207_v0  ;;  %10755 = vmatprep.subr.bf16.mxu0 (!%p491_p9), %v12207_v0  ;;  %v580_v5 = vsel (!%p491_p9), %vm578_vm1, 65535, %v12209_v4  ;;  %v10986_v7 = vld [vmem:[%s15393_s2 + $0xd4] ss:$16 sps:$4 sm:$0xff] (!%p491_p9)   ;;  %v10989_v8 = vld [vmem:[%s15393_s2 + $0xdc] ss:$16 sps:$4 sm:$0xff] (!%p491_p9)  }
  0x17   : > { %10771 = vmatprep.mubr.msk.bf16.mxu1 (!%p491_p9), %vm12208_vm0, %v12207_v0  ;;  %10761 = vmatprep.mubr.msk.bf16.mxu0 (!%p491_p9), %vm12208_vm0, %v12207_v0  ;;  %s15429_s26 = sld [smem:[#allocation12_spill]] (!%p491_p9)  ;;  %v10984_v11 = vld [vmem:[%s15393_s2 + $0xd0] ss:$16 sps:$4 sm:$0xff] (!%p491_p9)   ;;  %v10987_v12 = vld [vmem:[%s15393_s2 + $0xd8] ss:$16 sps:$4 sm:$0xff] (!%p491_p9)   ;;  %vm574_vm2 = vcmask (!%p491_p9), 269312  }
  0x18   : > { %v10992_v13 = vld [vmem:[%s15393_s2 + $0xf4] ss:$16 sps:$4 sm:$0xff] (!%p491_p9)   ;;  %v10995_v14 = vld [vmem:[%s15393_s2 + $0xfc] ss:$16 sps:$4 sm:$0xff] (!%p491_p9)   ;;  %v10990_v15 = vld [vmem:[%s15393_s2 + $0xf0] ss:$16 sps:$4 sm:$0xff] (!%p491_p9)  }
  0x19   : > { %v10993_v16 = vld [vmem:[%s15393_s2 + $0xf8] ss:$16 sps:$4 sm:$0xff] (!%p491_p9)   ;;  %v10998_v17 = vld [vmem:[%s15393_s2 + $0x114] ss:$16 sps:$4 sm:$0xff] (!%p491_p9)   ;;  %v11001_v18 = vld [vmem:[%s15393_s2 + $0x11c] ss:$16 sps:$4 sm:$0xff] (!%p491_p9)  }
  0x1a   : > { %v10996_v19 = vld [vmem:[%s15393_s2 + $0x110] ss:$16 sps:$4 sm:$0xff] (!%p491_p9)   ;;  %v10999_v20 = vld [vmem:[%s15393_s2 + $0x118] ss:$16 sps:$4 sm:$0xff] (!%p491_p9)   ;;  %v11004_v21 = vld [vmem:[%s15393_s2 + $0x134] ss:$16 sps:$4 sm:$0xff] (!%p491_p9)  }
  0x1b   : > { %v11007_v22 = vld [vmem:[%s15393_s2 + $0x13c] ss:$16 sps:$4 sm:$0xff] (!%p491_p9)   ;;  %v11002_v23 = vld [vmem:[%s15393_s2 + $0x130] ss:$16 sps:$4 sm:$0xff] (!%p491_p9)   ;;  %v11005_v24 = vld [vmem:[%s15393_s2 + $0x138] ss:$16 sps:$4 sm:$0xff] (!%p491_p9)  }
  0x1c   : > { %v11010_v25 = vld [vmem:[%s15393_s2 + $0x154] ss:$16 sps:$4 sm:$0xff] (!%p491_p9)   ;;  %v11013_v26 = vld [vmem:[%s15393_s2 + $0x15c] ss:$16 sps:$4 sm:$0xff] (!%p491_p9)   ;;  %v11008_v27 = vld [vmem:[%s15393_s2 + $0x150] ss:$16 sps:$4 sm:$0xff] (!%p491_p9)  }
  0x1d   : > { %s542_s21 = scalar_select %p541_p10, %s12323_s28, 1  ;;  %v10982_v9 = vld [vmem:[%s15429_s26 + $0x8] sm:$0xff]   ;;  %v11016_v29 = vld [vmem:[%s15393_s2 + $0x174] ss:$16 sps:$4 sm:$0xff]   ;;  %v11014_v31 = vld [vmem:[%s15393_s2 + $0x170] ss:$16 sps:$4 sm:$0xff]  }
  0x1e   : > { %s15430_s0 = smov %s15429_s26  ;;  %v11011_v28 = vld [vmem:[%s15393_s2 + $0x158] ss:$16 sps:$4 sm:$0xff]   ;;  %v11019_v30 = vld [vmem:[%s15393_s2 + $0x17c] ss:$16 sps:$4 sm:$0xff]   ;;  %vm866_vm3 = vcmask 1041408   ;;  %v12210_v33 = vmov 65535  }
  0x1f   : > { %s10935_s22 = smul.u32 20, %s542_s21  ;;  %v10983_v10 = vld [vmem:[%s15430_s0] sm:$0xff]   ;;  %v11017_v32 = vld [vmem:[%s15393_s2 + $0x178] ss:$16 sps:$4 sm:$0xff]   ;;  %v867_v34 = vsel %vm578_vm1, 4294967295, %v12210_v33  ;;  %vm862_vm4 = vcmask 809984  }
  0x20   : > { %v12460_v35 = vsel %vm866_vm3, %v867_v34, 0  ;;  %v9029_v36 = vld [vmem:[%s15393_s2 + $0x190] sm:$0x33]  ;;  %v9030_v37 = vld [vmem:[%s15393_s2 + $0x198] sm:$0x33]  ;;  %vm2202_vm5 = vcmask 1046528  }
  0x21   : > { %s12361_s18 = scalar_lea.vmem %s15428_s30, %s10935_s22  ;;  %v9056_v38 = vcombine.high %v9029_v36, %v9029_v36  ;;  %v9058_v39 = vcombine.high %v9030_v37, %v9030_v37  ;;  %v9055_v40 = vcombine.low %v9029_v36, %v9029_v36  ;;  %v9057_v41 = vcombine.low %v9030_v37, %v9030_v37  ;;  %v11026_v46 = vld [vmem:[%s15393_s2 + $0x4] ss:$16 sps:$4 sm:$0xff]   ;;  %v11029_v47 = vld [vmem:[%s15393_s2 + $0xc] ss:$16 sps:$4 sm:$0xff]   ;;  %v11024_v49 = vld [vmem:[%s15393_s2] ss:$16 sps:$4 sm:$0xff]  }
  0x22   : > { %v10979_v1 = vld [vmem:[%s12361_s18] sm:$0xff]   ;;  %v10980_v2 = vld [vmem:[%s12361_s18 + $0x8] sm:$0xff]   ;;  %v10981_v3 = vld [vmem:[%s12361_s18 + $0x10] ss:$0 sps:$4 sm:$0x11]   ;;  %vm2203_vm6 = vcmask 1047552  }
  0x23   : > { %10766 = vmatpush3.bf16.msra.mxu1 %v10979_v1  ;;  %10756 = vmatpush3.bf16.msra.mxu0 %v10979_v1  ;;  %v12370_v6 = vand.u32 %v10981_v3, %v580_v5  ;;  %v873_v42 = vand.u32 %v9056_v38, %v12460_v35  ;;  %v879_v43 = vand.u32 %v9058_v39, %v12460_v35  ;;  %v11027_v50 = vld [vmem:[%s15393_s2 + $0x8] ss:$16 sps:$4 sm:$0xff]   ;;  %v11032_v53 = vld [vmem:[%s15393_s2 + $0x24] ss:$16 sps:$4 sm:$0xff]   ;;  %v11035_v54 = vld [vmem:[%s15393_s2 + $0x2c] ss:$16 sps:$4 sm:$0xff]  }
  0x24   : > { %10767 = vmatprep.subr.bf16.mxu1 %v12207_v0  ;;  %10757 = vmatprep.subr.bf16.mxu0 %v12207_v0  ;;  %v870_v44 = vand.u32 %v9055_v40, %v12460_v35  ;;  %v876_v45 = vand.u32 %v9057_v41, %v12460_v35  ;;  %v11030_v62 = vld [vmem:[%s15393_s2 + $0x20] ss:$16 sps:$4 sm:$0xff]   ;;  %v11033_v63 = vld [vmem:[%s15393_s2 + $0x28] ss:$16 sps:$4 sm:$0xff]   ;;  %v11038_v1 = vld [vmem:[%s15393_s2 + $0x44] ss:$16 sps:$4 sm:$0xff]  }
  0x25   : > { %v11036_v3 = vld [vmem:[%s15393_s2 + $0x40] ss:$16 sps:$4 sm:$0xff]   ;;  %v11039_v5 = vld [vmem:[%s15393_s2 + $0x48] ss:$16 sps:$4 sm:$0xff]   ;;  %v11079_v36 = vld [vmem:[%s15393_s2 + $0x1ec] ss:$16 sps:$4 sm:$0xff]  }
  0x26   : > { %v12578_v34 = vld [vmem:[%s12361_s18] sm:$0xff]   ;;  %v11077_v38 = vld [vmem:[%s15393_s2 + $0x1e8] ss:$16 sps:$4 sm:$0xff]   ;;  %v11085_v40 = vld [vmem:[%s15393_s2 + $0x20c] ss:$16 sps:$4 sm:$0xff]   ;;  %vm2198_vm7 = vcmask 121856  }
  0x27   : > { %10768 = vmatpush3.bf16.msra.mxu1 %v10980_v2  ;;  %10758 = vmatpush3.bf16.msra.mxu0 %v10980_v2  ;;  %v11041_v2 = vld [vmem:[%s15393_s2 + $0x4c] ss:$16 sps:$4 sm:$0xff]   ;;  %v11070_v37 = vld [vmem:[%s15393_s2 + $0x1a4] ss:$16 sps:$4 sm:$0xff]   ;;  %vm3236_vm8 = vcmask 785408   ;;  %vm5193_vm9 = vcmask 1042432  }
  0x28   : > { %10769 = vmatprep.subr.bf16.mxu1 %v12207_v0  ;;  %10759 = vmatprep.subr.bf16.mxu0 %v12207_v0  ;;  %v12595_v39 = vld [vmem:[%s12361_s18 + $0x8] sm:$0xff]   ;;  %v11064_v41 = vld [vmem:[%s15430_s0 + $0x10] sm:$0xff]   ;;  %vm5194_vm10 = vcmask 1043456   ;;  %vm5189_vm11 = vcmask 56320   ;;  %vm6059_vm12 = vcmask 523264   ;;  %vm7685_vm13 = vcmask 23552  }
  0x29   : > { %vm8878_vm14 = vcmask 261120   ;;  %s539_s29 = sand.u32 1, %s12197_s25   ;;  %s10559_s22 = sshll.u32 %s12323_s28, 4 }
  0x2a   : > { %s540_s23 = scalar_lea.vmem [#allocation2], %s539_s29  ;;  %s15431_s17 = sld [smem:[#allocation13_spill]] }
  0x2b   : > { %10770 = vmatpush3.bf16.msra.mxu1 %v12370_v6  ;;  %10760 = vmatpush3.bf16.msra.mxu0 %v12370_v6  ;;  %s8936_s19 = sshll.u32 %s540_s23, 4  ;;  %s8924_s18 = scalar_lea.sflag [#allocation3], %s539_s29  ;;  %s15351_s19 = int_to_ptr.vmem [resolvable:$true] %s8936_s19 }
  0x2c   : > { %881 = vmatprep.subr.bf16.mxu0 %v10986_v7  ;;  %924 = vmatprep.subr.bf16.mxu1 %v10989_v8  ;;  %v11044_v7 = vld [vmem:[%s15393_s2 + $0x64] ss:$16 sps:$4 sm:$0xff]   ;;  %v11047_v8 = vld [vmem:[%s15393_s2 + $0x6c] ss:$16 sps:$4 sm:$0xff]   ;;  %s12143_s28 = scalar_lea.vmem %s15351_s19, 16  ;;  %s12211_s20 = smov [#allocation2]  }
  0x2d   : > { %p12144_p11 = scmp.ne.s32.totalorder %s15351_s19, %s12143_s28  ;;  %s12147_s30 = sshll.u32 %s12211_s20, 4  ;;  %s12148_s30 = int_to_ptr.vmem [resolvable:$false] %s12147_s30 }
  0x2e   : > { %10772 = vmatmul.mubr.msk.bf16.vlgmr.msra.gmra.mrb[0].mxu1 %vm574_vm2, %v10982_v9  ;;  %10762 = vmatmul.mubr.msk.bf16.vlgmr.msra.gmra.mrb[0].mxu0 %vm574_vm2, %v10983_v10  ;;  %v11042_v9 = vld [vmem:[%s15393_s2 + $0x60] ss:$16 sps:$4 sm:$0xff]   ;;  %v11045_v10 = vld [vmem:[%s15393_s2 + $0x68] ss:$16 sps:$4 sm:$0xff]   ;;  %s12149_s21 = scalar_lea.vmem %s12148_s30, 32  ;;  %p12150_p0 = scmp.lt.s32.totalorder %s15351_s19, %s12148_s30 }
  0x2f   : > { %882 = vmatpush1.bf16.msra.mxu0 %v10984_v11  ;;  %925 = vmatpush1.bf16.msra.mxu1 %v10987_v12  ;;  %v11050_v11 = vld [vmem:[%s15393_s2 + $0x84] ss:$16 sps:$4 sm:$0xff]   ;;  %v11053_v12 = vld [vmem:[%s15393_s2 + $0x8c] ss:$16 sps:$4 sm:$0xff]   ;;  %p12145_p12 = pnand %p12144_p11, %p12340_p5  ;;  %p12151_p1 = scmp.lt.s32.totalorder %s12149_s21, %s12143_s28 }
  0x30   : > { %883 = vmatprep.subr.bf16.mxu0 %v10992_v13  ;;  %926 = vmatprep.subr.bf16.mxu1 %v10995_v14  ;;  %v650_v13 = vld [vmem:[%s15393_s2 + $0xc0] sm:$0x33]  ;;  %v651_v14 = vld [vmem:[%s15393_s2 + $0xc8] sm:$0x33]  ;;  %s15349_s27 = scalar_lea.hbm %s15431_s17, %s10559_s22 }
  0x31   : > { %913 = vmatprep.mubr.bf16.mxu0 %v12209_v4  ;;  %956 = vmatprep.mubr.bf16.mxu1 %v12209_v4  ;;  %p12146_p13 = pneg %p12145_p12  ;;  %p12152_p2 = por %p12151_p1, %p12150_p0 }
  0x33   : > { %884 = vmatpush1.bf16.msra.mxu0 %v10990_v15  ;;  %927 = vmatpush1.bf16.msra.mxu1 %v10993_v16  ;;  %v11048_v15 = vld [vmem:[%s15393_s2 + $0x80] ss:$16 sps:$4 sm:$0xff]   ;;  %v11051_v16 = vld [vmem:[%s15393_s2 + $0x88] ss:$16 sps:$4 sm:$0xff]   ;;  %p12153_p3 = pnand %p12152_p2, %p12146_p13 }
  0x34   : > { %885 = vmatprep.subr.bf16.mxu0 %v10998_v17  ;;  %928 = vmatprep.subr.bf16.mxu1 %v11001_v18  ;;  %v11056_v17 = vld [vmem:[%s15393_s2 + $0xa4] ss:$16 sps:$4 sm:$0xff]   ;;  %v11059_v18 = vld [vmem:[%s15393_s2 + $0xac] ss:$16 sps:$4 sm:$0xff]  }
  0x37   : > { %886 = vmatpush1.bf16.msra.mxu0 %v10996_v19  ;;  %929 = vmatpush1.bf16.msra.mxu1 %v10999_v20  ;;  %v9086_v19 = vcombine.high %v650_v13, %v650_v13  ;;  %v9088_v20 = vcombine.high %v651_v14, %v651_v14 }
  0x38   : > { %887 = vmatprep.subr.bf16.mxu0 %v11004_v21  ;;  %930 = vmatprep.subr.bf16.mxu1 %v11007_v22  ;;  %v11054_v21 = vld [vmem:[%s15393_s2 + $0xa0] ss:$16 sps:$4 sm:$0xff]   ;;  %v11057_v22 = vld [vmem:[%s15393_s2 + $0xa8] ss:$16 sps:$4 sm:$0xff]  }
  0x3b   : > { %888 = vmatpush1.bf16.msra.mxu0 %v11002_v23  ;;  %931 = vmatpush1.bf16.msra.mxu1 %v11005_v24  ;;  %v9085_v23 = vcombine.low %v650_v13, %v650_v13  ;;  %v9087_v24 = vcombine.low %v651_v14, %v651_v14  ;;  %v11106_v13 = vld [vmem:[%s15393_s2 + $0x270] ss:$16 sps:$4 sm:$0xff]   ;;  %v11114_v14 = vld [vmem:[%s15393_s2 + $0x294] ss:$16 sps:$4 sm:$0xff]  }
  0x3c   : > { %889 = vmatprep.subr.bf16.mxu0 %v11010_v25  ;;  %932 = vmatprep.subr.bf16.mxu1 %v11013_v26  ;;  %v1104_v25 = vand.u32 %v9086_v19, %v12460_v35  ;;  %v1110_v26 = vand.u32 %v9088_v20, %v12460_v35  ;;  %v11126_v19 = vld [vmem:[%s15393_s2 + $0x2d4] ss:$16 sps:$4 sm:$0xff]   ;;  %v11105_v20 = vld [vmem:[%s15430_s0 + $0x18] sm:$0xff]  }
  0x3f   : > { %890 = vmatpush1.bf16.msra.mxu0 %v11008_v27  ;;  %933 = vmatpush1.bf16.msra.mxu1 %v11011_v28  ;;  %v11067_v27 = vld [vmem:[%s15393_s2 + $0x1ac] ss:$16 sps:$4 sm:$0xff]   ;;  %v1101_v28 = vand.u32 %v9085_v23, %v12460_v35  ;;  %v11124_v23 = vld [vmem:[%s15393_s2 + $0x2d0] ss:$16 sps:$4 sm:$0xff]  }
  0x40   : > { %891 = vmatprep.subr.bf16.mxu0 %v11016_v29  ;;  %934 = vmatprep.subr.bf16.mxu1 %v11019_v30  ;;  %v1107_v29 = vand.u32 %v9087_v24, %v12460_v35  ;;  %v11065_v30 = vld [vmem:[%s15393_s2 + $0x1a8] ss:$16 sps:$4 sm:$0xff]   ;;  %v11132_v24 = vld [vmem:[%s15393_s2 + $0x2f4] ss:$16 sps:$4 sm:$0xff]  }
  0x43   : > { %892 = vmatpush1.bf16.msra.mxu0 %v11014_v31  ;;  %935 = vmatpush1.bf16.msra.mxu1 %v11017_v32  ;;  %v11073_v31 = vld [vmem:[%s15393_s2 + $0x1cc] ss:$16 sps:$4 sm:$0xff]   ;;  %v11071_v32 = vld [vmem:[%s15393_s2 + $0x1c8] ss:$16 sps:$4 sm:$0xff]  }
  0x44   : > { %893 = vmatprep.subr.bf16.mxu0 %v873_v42  ;;  %936 = vmatprep.subr.bf16.mxu1 %v879_v43  ;;  %v11068_v42 = vld [vmem:[%s15393_s2 + $0x1a0] ss:$16 sps:$4 sm:$0xff]   ;;  %v11076_v43 = vld [vmem:[%s15393_s2 + $0x1c4] ss:$16 sps:$4 sm:$0xff]  }
  0x47   : > { %894 = vmatpush1.bf16.msra.mxu0 %v870_v44  ;;  %937 = vmatpush1.bf16.msra.mxu1 %v876_v45  ;;  %v11083_v44 = vld [vmem:[%s15393_s2 + $0x208] ss:$16 sps:$4 sm:$0xff]   ;;  %v11091_v45 = vld [vmem:[%s15393_s2 + $0x22c] ss:$16 sps:$4 sm:$0xff]  }
  0x48   : > { %1112 = vmatprep.subr.bf16.mxu0 %v11026_v46  ;;  %1155 = vmatprep.subr.bf16.mxu1 %v11029_v47  ;;  %v11074_v46 = vld [vmem:[%s15393_s2 + $0x1c0] ss:$16 sps:$4 sm:$0xff]   ;;  %v11082_v47 = vld [vmem:[%s15393_s2 + $0x1e4] ss:$16 sps:$4 sm:$0xff]  }
 0x101   : > { %v697_v48 = vpop.f32.mrb[0].mxu1  ;;  %v618_v51 = vpop.f32.mrb[0].mxu0 }
 0x102   : > { %v10773_v52 = vpop.f32.mrb[1].mxu1  ;;  %v10763_v55 = vpop.f32.mrb[1].mxu0 }
 0x103   : > { %v700_v56 = vpop.f32.mrb[2].mxu1  ;;  %v621_v57 = vpop.f32.mrb[2].mxu0  ;;  %v11095_v52 = vld [vmem:[%s15393_s2 + $0x248] ss:$16 sps:$4 sm:$0xff]   ;;  %v11092_v55 = vld [vmem:[%s15393_s2 + $0x220] ss:$16 sps:$4 sm:$0xff]  }
 0x104   : > { %v704_v58 = vpack.c.bf16 %v700_v56, %v697_v48  ;;  %v10774_v59 = vpop.f32.mrb[3].mxu1  ;;  %v12490_v60 = vpack.c.bf16 %v621_v57, %v618_v51  ;;  %v10764_v61 = vpop.f32.mrb[3].mxu0  ;;  %v11089_v48 = vld [vmem:[%s15393_s2 + $0x228] ss:$16 sps:$4 sm:$0xff]   ;;  %v11088_v51 = vld [vmem:[%s15393_s2 + $0x204] ss:$16 sps:$4 sm:$0xff]  }
 0x105   : > { %v11100_v56 = vld [vmem:[%s15393_s2 + $0x244] ss:$16 sps:$4 sm:$0xff]   ;;  %v11098_v57 = vld [vmem:[%s15393_s2 + $0x240] ss:$16 sps:$4 sm:$0xff]  }
 0x106   : > { %9059 = vmatmul.mubr.msk.bf16.vlgmr.msra.gmra.mrb[4].mxu0 %vm862_vm4, %v704_v58  ;;  %9060 = vmatmul.mubr.msk.bf16.vlgmr.msra.gmra.mrb[4].mxu1 %vm862_vm4, %v704_v58  ;;  %v9120_v58 = vld [vmem:[%s15393_s2 + $0x268] sm:$0x33] }
 0x107   : > { %1113 = vmatpush1.bf16.msra.mxu0 %v11024_v49  ;;  %1156 = vmatpush1.bf16.msra.mxu1 %v11027_v50  ;;  %v11097_v49 = vld [vmem:[%s15393_s2 + $0x24c] ss:$16 sps:$4 sm:$0xff]   ;;  %v11080_v50 = vld [vmem:[%s15393_s2 + $0x1e0] ss:$16 sps:$4 sm:$0xff]   ;;  %v9148_v59 = vcombine.high %v9120_v58, %v9120_v58  ;;  %v9147_v61 = vcombine.low %v9120_v58, %v9120_v58 }
 0x108   : > { %1114 = vmatprep.subr.bf16.mxu0 %v11032_v53  ;;  %1157 = vmatprep.subr.bf16.mxu1 %v11035_v54  ;;  %v11086_v53 = vld [vmem:[%s15393_s2 + $0x200] ss:$16 sps:$4 sm:$0xff]   ;;  %v11094_v54 = vld [vmem:[%s15393_s2 + $0x224] ss:$16 sps:$4 sm:$0xff]   ;;  %v11158_v58 = vld [vmem:[%s15393_s2 + $0x36c] ss:$16 sps:$4 sm:$0xff]  }
 0x109   : > { %1144 = vmatprep.mubr.bf16.mxu0 %v12209_v4  ;;  %1187 = vmatprep.mubr.bf16.mxu1 %v12209_v4 }
 0x10b   : > { %1115 = vmatpush1.bf16.msra.mxu0 %v11030_v62  ;;  %1158 = vmatpush1.bf16.msra.mxu1 %v11033_v63  ;;  %v1421_v63 = vand.u32 %v9148_v59, %v12460_v35  ;;  %v11156_v59 = vld [vmem:[%s15393_s2 + $0x368] ss:$16 sps:$4 sm:$0xff]  }
 0x10c   : > { %1116 = vmatprep.subr.bf16.mxu0 %v11038_v1  ;;  %1159 = vmatprep.subr.bf16.mxu1 %v11041_v2 }
 0x10f   : > { %1117 = vmatpush1.bf16.msra.mxu0 %v11036_v3  ;;  %1160 = vmatpush1.bf16.msra.mxu1 %v11039_v5  ;;  %v1418_v3 = vand.u32 %v9147_v61, %v12460_v35  ;;  %v11162_v61 = vld [vmem:[%s15393_s2 + $0x388] ss:$16 sps:$4 sm:$0xff]  }
 0x110   : > { %1118 = vmatprep.subr.bf16.mxu0 %v11044_v7  ;;  %1161 = vmatprep.subr.bf16.mxu1 %v11047_v8  ;;  %v11108_v7 = vld [vmem:[%s15393_s2 + $0x274] ss:$16 sps:$4 sm:$0xff]  }
 0x113   : > { %1119 = vmatpush1.bf16.msra.mxu0 %v11042_v9  ;;  %1162 = vmatpush1.bf16.msra.mxu1 %v11045_v10 }
 0x114   : > { %1120 = vmatprep.subr.bf16.mxu0 %v11050_v11  ;;  %1163 = vmatprep.subr.bf16.mxu1 %v11053_v12 }
 0x117   : > { %1121 = vmatpush1.bf16.msra.mxu0 %v11048_v15  ;;  %1164 = vmatpush1.bf16.msra.mxu1 %v11051_v16  ;;  %v11112_v15 = vld [vmem:[%s15393_s2 + $0x290] ss:$16 sps:$4 sm:$0xff]   ;;  %v11120_v16 = vld [vmem:[%s15393_s2 + $0x2b4] ss:$16 sps:$4 sm:$0xff]  }
 0x118   : > { %1122 = vmatprep.subr.bf16.mxu0 %v11056_v17  ;;  %1165 = vmatprep.subr.bf16.mxu1 %v11059_v18  ;;  %v11111_v17 = vld [vmem:[%s15393_s2 + $0x27c] ss:$16 sps:$4 sm:$0xff]   ;;  %v11118_v18 = vld [vmem:[%s15393_s2 + $0x2b0] ss:$16 sps:$4 sm:$0xff]  }
 0x11b   : > { %1123 = vmatpush1.bf16.msra.mxu0 %v11054_v21  ;;  %1166 = vmatpush1.bf16.msra.mxu1 %v11057_v22  ;;  %v11109_v21 = vld [vmem:[%s15393_s2 + $0x278] ss:$16 sps:$4 sm:$0xff]   ;;  %v11117_v22 = vld [vmem:[%s15393_s2 + $0x29c] ss:$16 sps:$4 sm:$0xff]  }
 0x11c   : > { %1124 = vmatprep.subr.bf16.mxu0 %v1104_v25  ;;  %1167 = vmatprep.subr.bf16.mxu1 %v1110_v26  ;;  %v11115_v25 = vld [vmem:[%s15393_s2 + $0x298] ss:$16 sps:$4 sm:$0xff]   ;;  %v11123_v26 = vld [vmem:[%s15393_s2 + $0x2bc] ss:$16 sps:$4 sm:$0xff]  }
 0x11f   : > { %1125 = vmatpush1.bf16.msra.mxu0 %v1101_v28  ;;  %1168 = vmatpush1.bf16.msra.mxu1 %v1107_v29  ;;  %v11138_v28 = vld [vmem:[%s15393_s2 + $0x314] ss:$16 sps:$4 sm:$0xff]   ;;  %v11121_v29 = vld [vmem:[%s15393_s2 + $0x2b8] ss:$16 sps:$4 sm:$0xff]  }
 0x120   : > { %10775 = vmatprep.subr.bf16.mxu0 %v12207_v0  ;;  %1466 = vmatprep.subr.bf16.mxu1 %v11067_v27  ;;  %v11130_v27 = vld [vmem:[%s15393_s2 + $0x2f0] ss:$16 sps:$4 sm:$0xff]  }
 0x122   : > { %9089 = vmatmul.mubr.msk.bf16.vlgmr.msra.gmra.mrb[4].mxu0 %vm862_vm4, %v12490_v60  ;;  %9090 = vmatmul.mubr.msk.bf16.vlgmr.msra.gmra.mrb[4].mxu1 %vm862_vm4, %v12490_v60  ;;  %v9119_v60 = vld [vmem:[%s15393_s2 + $0x260] sm:$0x33] }
 0x123   : > { %10776 = vmatpush3.bf16.msra.mxu0 %v12578_v34  ;;  %10781 = vmatprep.mubr.msk.bf16.mxu0 %vm12208_vm0, %v12207_v0  ;;  %v9146_v62 = vcombine.high %v9119_v60, %v9119_v60  ;;  %v9145_v1 = vcombine.low %v9119_v60, %v9119_v60  ;;  %v11164_v60 = vld [vmem:[%s15393_s2 + $0x38c] ss:$16 sps:$4 sm:$0xff]  }
 0x124   : > { %10777 = vmatprep.subr.bf16.mxu0 %v12207_v0  ;;  %1467 = vmatpush1.bf16.msra.mxu1 %v11065_v30  ;;  %v11129_v30 = vld [vmem:[%s15393_s2 + $0x2dc] ss:$16 sps:$4 sm:$0xff]  }
 0x125   : > { %1468 = vmatprep.subr.bf16.mxu1 %v11073_v31  ;;  %1498 = vmatprep.mubr.bf16.mxu1 %v12209_v4  ;;  %v1415_v2 = vand.u32 %v9146_v62, %v12460_v35  ;;  %v1412_v5 = vand.u32 %v9145_v1, %v12460_v35  ;;  %v11136_v31 = vld [vmem:[%s15393_s2 + $0x310] ss:$16 sps:$4 sm:$0xff]   ;;  %v11170_v62 = vld [vmem:[%s15393_s2 + $0x3ac] ss:$16 sps:$4 sm:$0xff]   ;;  %v11155_v1 = vld [vmem:[%s15393_s2 + $0x364] ss:$16 sps:$4 sm:$0xff]  }
 0x127   : > { %10778 = vmatpush3.bf16.msra.mxu0 %v12595_v39 }
 0x128   : > { %10779 = vmatprep.subr.bf16.mxu0 %v12207_v0  ;;  %1469 = vmatpush1.bf16.msra.mxu1 %v11071_v32  ;;  %v11127_v32 = vld [vmem:[%s15393_s2 + $0x2d8] ss:$16 sps:$4 sm:$0xff]  }
 0x129   : > { %1470 = vmatprep.subr.bf16.mxu1 %v11079_v36  ;;  %v11135_v36 = vld [vmem:[%s15393_s2 + $0x2fc] ss:$16 sps:$4 sm:$0xff]  }
 0x12b   : > { %10780 = vmatpush3.bf16.msra.mxu0 %v12370_v6 }
 0x12c   : > { %1423 = vmatprep.subr.bf16.mxu0 %v11070_v37  ;;  %1471 = vmatpush1.bf16.msra.mxu1 %v11077_v38  ;;  %v11133_v37 = vld [vmem:[%s15393_s2 + $0x2f8] ss:$16 sps:$4 sm:$0xff]   ;;  %v11141_v38 = vld [vmem:[%s15393_s2 + $0x31c] ss:$16 sps:$4 sm:$0xff]  }
 0x12d   : > { %1472 = vmatprep.subr.bf16.mxu1 %v11085_v40  ;;  %v11139_v40 = vld [vmem:[%s15393_s2 + $0x318] ss:$16 sps:$4 sm:$0xff]  }
 0x12e   : > { %10782 = vmatmul.mubr.msk.bf16.vlgmr.msra.gmra.mrb[8].mxu0 %vm574_vm2, %v11064_v41  ;;  %v9179_v41 = vld [vmem:[%s15393_s2 + $0x330] sm:$0x33] }
 0x12f   : > { %1424 = vmatpush1.bf16.msra.mxu0 %v11068_v42  ;;  %1455 = vmatprep.mubr.bf16.mxu0 %v12209_v4  ;;  %v9206_v42 = vcombine.high %v9179_v41, %v9179_v41 }
 0x130   : > { %1425 = vmatprep.subr.bf16.mxu0 %v11076_v43  ;;  %1473 = vmatpush1.bf16.msra.mxu1 %v11083_v44  ;;  %v9180_v43 = vld [vmem:[%s15393_s2 + $0x338] sm:$0x33]  ;;  %v9205_v44 = vcombine.low %v9179_v41, %v9179_v41 }
 0x131   : > { %1474 = vmatprep.subr.bf16.mxu1 %v11091_v45  ;;  %v9208_v45 = vcombine.high %v9180_v43, %v9180_v43 }
 0x133   : > { %1426 = vmatpush1.bf16.msra.mxu0 %v11074_v46  ;;  %v1734_v46 = vand.u32 %v9206_v42, %v12460_v35 }
 0x134   : > { %1427 = vmatprep.subr.bf16.mxu0 %v11082_v47  ;;  %1475 = vmatpush1.bf16.msra.mxu1 %v11089_v48  ;;  %v9207_v47 = vcombine.low %v9180_v43, %v9180_v43  ;;  %v1731_v48 = vand.u32 %v9205_v44, %v12460_v35 }
 0x135   : > { %1476 = vmatprep.subr.bf16.mxu1 %v11097_v49  ;;  %v1740_v49 = vand.u32 %v9208_v45, %v12460_v35 }
 0x137   : > { %1428 = vmatpush1.bf16.msra.mxu0 %v11080_v50  ;;  %v1737_v50 = vand.u32 %v9207_v47, %v12460_v35 }
 0x138   : > { %1429 = vmatprep.subr.bf16.mxu0 %v11088_v51  ;;  %1477 = vmatpush1.bf16.msra.mxu1 %v11095_v52  ;;  %v11152_v51 = vld [vmem:[%s15393_s2 + $0x34c] ss:$16 sps:$4 sm:$0xff]  }
 0x139   : > { %1478 = vmatprep.subr.bf16.mxu1 %v1421_v63  ;;  %v11147_v63 = vld [vmem:[%s15393_s2 + $0x340] ss:$16 sps:$4 sm:$0xff]  }
 0x13b   : > { %1430 = vmatpush1.bf16.msra.mxu0 %v11086_v53 }
 0x13c   : > { %1431 = vmatprep.subr.bf16.mxu0 %v11094_v54  ;;  %1479 = vmatpush1.bf16.msra.mxu1 %v1418_v3  ;;  %v11176_v3 = vld [vmem:[%s15393_s2 + $0x3cc] ss:$16 sps:$4 sm:$0xff]  }
 0x13d   : > { %10785 = vmatprep.subr.bf16.mxu1 %v12207_v0 }
 0x13f   : > { %1432 = vmatpush1.bf16.msra.mxu0 %v11092_v55 }
 0x140   : > { %1433 = vmatprep.subr.bf16.mxu0 %v11100_v56 }
 0x143   : > { %1434 = vmatpush1.bf16.msra.mxu0 %v11098_v57  ;;  %v11150_v57 = vld [vmem:[%s15393_s2 + $0x348] ss:$16 sps:$4 sm:$0xff]  }
 0x144   : > { %1435 = vmatprep.subr.bf16.mxu0 %v1415_v2  ;;  %v11168_v2 = vld [vmem:[%s15393_s2 + $0x3a8] ss:$16 sps:$4 sm:$0xff]  }
 0x147   : > { %1436 = vmatpush1.bf16.msra.mxu0 %v1412_v5  ;;  %v11161_v5 = vld [vmem:[%s15393_s2 + $0x384] ss:$16 sps:$4 sm:$0xff]  }
 0x148   : > { %1742 = vmatprep.subr.bf16.mxu0 %v11108_v7  ;;  %v11174_v7 = vld [vmem:[%s15393_s2 + $0x3c8] ss:$16 sps:$4 sm:$0xff]  }
 0x201   : > { %v1243_v8 = vpop.f32.mrb[8].mxu0 }
 0x202   : > { %v10783_v9 = vpop.f32.mrb[9].mxu0 }
 0x203   : > { %v1246_v10 = vpop.f32.mrb[10].mxu0  ;;  %v11159_v9 = vld [vmem:[%s15393_s2 + $0x380] ss:$16 sps:$4 sm:$0xff]  }
 0x204   : > { %v1250_v11 = vpack.c.bf16 %v1246_v10, %v1243_v8  ;;  %v10784_v12 = vpop.f32.mrb[11].mxu0  ;;  %v11182_v8 = vld [vmem:[%s15393_s2 + $0x3ec] ss:$16 sps:$4 sm:$0xff]   ;;  %v11167_v10 = vld [vmem:[%s15393_s2 + $0x3a4] ss:$16 sps:$4 sm:$0xff]  }
 0x205   : > { %v11165_v12 = vld [vmem:[%s15393_s2 + $0x3a0] ss:$16 sps:$4 sm:$0xff]  }
 0x206   : > { %9149 = vmatmul.mubr.msk.bf16.vlgmr.msra.gmra.mrb[4].mxu0 %vm862_vm4, %v1250_v11  ;;  %9150 = vmatmul.mubr.msk.bf16.vlgmr.msra.gmra.mrb[4].mxu1 %vm862_vm4, %v1250_v11  ;;  %v11180_v11 = vld [vmem:[%s15393_s2 + $0x3e8] ss:$16 sps:$4 sm:$0xff]  }
 0x207   : > { %10786 = vmatpush3.bf16.msra.mxu1 %v12578_v34  ;;  %10791 = vmatprep.mubr.msk.bf16.mxu1 %vm12208_vm0, %v12207_v0 }
 0x208   : > { %10787 = vmatprep.subr.bf16.mxu1 %v12207_v0  ;;  %1743 = vmatpush1.bf16.msra.mxu0 %v11106_v13  ;;  %v11173_v13 = vld [vmem:[%s15393_s2 + $0x3c4] ss:$16 sps:$4 sm:$0xff]  }
 0x209   : > { %1744 = vmatprep.subr.bf16.mxu0 %v11114_v14  ;;  %1774 = vmatprep.mubr.bf16.mxu0 %v12209_v4  ;;  %v11171_v14 = vld [vmem:[%s15393_s2 + $0x3c0] ss:$16 sps:$4 sm:$0xff]  }
 0x20b   : > { %10788 = vmatpush3.bf16.msra.mxu1 %v12595_v39 }
 0x20c   : > { %10789 = vmatprep.subr.bf16.mxu1 %v12207_v0  ;;  %1745 = vmatpush1.bf16.msra.mxu0 %v11112_v15  ;;  %v11179_v15 = vld [vmem:[%s15393_s2 + $0x3e4] ss:$16 sps:$4 sm:$0xff]  }
 0x20d   : > { %1746 = vmatprep.subr.bf16.mxu0 %v11120_v16  ;;  %v11177_v16 = vld [vmem:[%s15393_s2 + $0x3e0] ss:$16 sps:$4 sm:$0xff]  }
 0x20f   : > { %10790 = vmatpush3.bf16.msra.mxu1 %v12370_v6 }
 0x210   : > { %1785 = vmatprep.subr.bf16.mxu1 %v11111_v17  ;;  %1747 = vmatpush1.bf16.msra.mxu0 %v11118_v18  ;;  %v9239_v17 = vld [vmem:[%s15393_s2 + $0x400] sm:$0x33]  ;;  %v9240_v18 = vld [vmem:[%s15393_s2 + $0x408] sm:$0x33] }
 0x211   : > { %1748 = vmatprep.subr.bf16.mxu0 %v11126_v19  ;;  %v9266_v19 = vcombine.high %v9239_v17, %v9239_v17 }
 0x212   : > { %10792 = vmatmul.mubr.msk.bf16.vlgmr.msra.gmra.mrb[8].mxu1 %vm574_vm2, %v11105_v20  ;;  %v9268_v20 = vcombine.high %v9240_v18, %v9240_v18 }
 0x213   : > { %1786 = vmatpush1.bf16.msra.mxu1 %v11109_v21  ;;  %1817 = vmatprep.mubr.bf16.mxu1 %v12209_v4  ;;  %v9265_v21 = vcombine.low %v9239_v17, %v9239_v17  ;;  %v2197_v17 = vld [vmem:[%s15395_s4] sm:$0xf] }
 0x214   : > { %1787 = vmatprep.subr.bf16.mxu1 %v11117_v22  ;;  %1749 = vmatpush1.bf16.msra.mxu0 %v11124_v23  ;;  %v9267_v22 = vcombine.low %v9240_v18, %v9240_v18  ;;  %v2053_v23 = vand.u32 %v9266_v19, %v12460_v35  ;;  %v9273_v18 = vld [vmem:[%s15395_s4 + $0x4] sm:$0xf]  ;;  %v11187_v19 = vld [vmem:[%s15396_s5 + $0x3c0] ss:$16 sps:$4 sm:$0xff]  }
 0x215   : > { %1750 = vmatprep.subr.bf16.mxu0 %v11132_v24  ;;  %v2059_v24 = vand.u32 %v9268_v20, %v12460_v35 }
 0x217   : > { %1788 = vmatpush1.bf16.msra.mxu1 %v11115_v25  ;;  %v2050_v25 = vand.u32 %v9265_v21, %v12460_v35  ;;  %v11192_v21 = vld [vmem:[%s15396_s5 + $0x3e4] ss:$16 sps:$4 sm:$0xff]  }
 0x218   : > { %1789 = vmatprep.subr.bf16.mxu1 %v11123_v26  ;;  %1751 = vmatpush1.bf16.msra.mxu0 %v11130_v27  ;;  %v2056_v26 = vand.u32 %v9267_v22, %v12460_v35  ;;  %v11190_v22 = vld [vmem:[%s15396_s5 + $0x3e0] ss:$16 sps:$4 sm:$0xff]  }
 0x219   : > { %1752 = vmatprep.subr.bf16.mxu0 %v11138_v28 }
 0x21b   : > { %1790 = vmatpush1.bf16.msra.mxu1 %v11121_v29 }
 0x21c   : > { %1791 = vmatprep.subr.bf16.mxu1 %v11129_v30  ;;  %1753 = vmatpush1.bf16.msra.mxu0 %v11136_v31 }
 0x21d   : > { %1754 = vmatprep.subr.bf16.mxu0 %v1734_v46 }
 0x21f   : > { %1792 = vmatpush1.bf16.msra.mxu1 %v11127_v32  ;;  %v2157_v32 = vlaneseq }
 0x220   : > { %1793 = vmatprep.subr.bf16.mxu1 %v11135_v36  ;;  %1755 = vmatpush1.bf16.msra.mxu0 %v1731_v48 }
 0x221   : > { %10795 = vmatprep.subr.bf16.mxu0 %v12207_v0  ;;  %v12866_v36 = vshrl.u32 %v2157_v32, 7  ;;  %v11204_v32 = vld [vmem:[%s15396_s5 + $0x464] ss:$16 sps:$4 sm:$0xff]  }
 0x223   : > { %1794 = vmatpush1.bf16.msra.mxu1 %v11133_v37  ;;  %v12869_v37 = vsub.s32 0, %v12866_v36  ;;  %v12878_v41 = vsub.s32 1, %v12866_v36  ;;  %v2171_v42 = vsub.s32 3, %v12866_v36 }
 0x224   : > { %1795 = vmatprep.subr.bf16.mxu1 %v11141_v38  ;;  %v12872_v38 = vsub.s32 2, %v12866_v36 }
 0x227   : > { %1796 = vmatpush1.bf16.msra.mxu1 %v11139_v40  ;;  %v2155_v40 = vld [vmem:[%s15394_s3] sm:$0xf] }
 0x228   : > { %1797 = vmatprep.subr.bf16.mxu1 %v1740_v49  ;;  %v2160_v43 = vrot.slane %v2155_v40, %v12869_v37  ;;  %v2168_v44 = vrot.slane %v2155_v40, %v12872_v38  ;;  %v2164_v45 = vrot.slane %v2155_v40, %v12878_v41  ;;  %v2172_v46 = vrot.slane %v2155_v40, %v2171_v42  ;;  %v11214_v40 = vld [vmem:[%s15396_s5 + $0x5e0] ss:$16 sps:$4 sm:$0xff]  }
 0x22b   : > { %1798 = vmatpush1.bf16.msra.mxu1 %v1737_v50 }
 0x22c   : > { %2104 = vmatprep.subr.bf16.mxu1 %v11152_v51 }
 0x2e5   : > { %v1562_v52 = vpop.f32.mrb[8].mxu1 }
 0x2e6   : > { %v10793_v53 = vpop.f32.mrb[9].mxu1 }
 0x2e7   : > { %v1565_v54 = vpop.f32.mrb[10].mxu1 }
 0x2e8   : > { %v1569_v55 = vpack.c.bf16 %v1565_v54, %v1562_v52  ;;  %v10794_v56 = vpop.f32.mrb[11].mxu1 }
 0x2ea   : > { %9209 = vmatmul.mubr.msk.bf16.vlgmr.msra.gmra.mrb[4].mxu0 %vm862_vm4, %v1569_v55  ;;  %9210 = vmatmul.mubr.msk.bf16.vlgmr.msra.gmra.mrb[4].mxu1 %vm862_vm4, %v1569_v55 }
 0x2eb   : > { %10796 = vmatpush3.bf16.msra.mxu0 %v12578_v34  ;;  %10801 = vmatprep.mubr.msk.bf16.mxu0 %vm12208_vm0, %v12207_v0  ;;  %v11149_v34 = vld [vmem:[%s15393_s2 + $0x344] ss:$16 sps:$4 sm:$0xff]  }
 0x2ec   : > { %10797 = vmatprep.subr.bf16.mxu0 %v12207_v0  ;;  %2105 = vmatpush1.bf16.msra.mxu1 %v11150_v57 }
 0x2ed   : > { %2106 = vmatprep.subr.bf16.mxu1 %v11158_v58  ;;  %2136 = vmatprep.mubr.bf16.mxu1 %v12209_v4 }
 0x2ef   : > { %10798 = vmatpush3.bf16.msra.mxu0 %v12595_v39  ;;  %v11146_v39 = vld [vmem:[%s15430_s0 + $0x20] sm:$0xff]  }
 0x2f0   : > { %10799 = vmatprep.subr.bf16.mxu0 %v12207_v0  ;;  %2107 = vmatpush1.bf16.msra.mxu1 %v11156_v59 }
 0x2f1   : > { %2108 = vmatprep.subr.bf16.mxu1 %v11164_v60 }
 0x2f3   : > { %10800 = vmatpush3.bf16.msra.mxu0 %v12370_v6  ;;  %v11153_v6 = vld [vmem:[%s15393_s2 + $0x360] ss:$16 sps:$4 sm:$0xff]  }
 0x2f4   : > { %2061 = vmatprep.subr.bf16.mxu0 %v11149_v34  ;;  %2109 = vmatpush1.bf16.msra.mxu1 %v11162_v61  ;;  %v2204_v34 = vsel %vm2202_vm5, 4294967295, %v12210_v33 }
 0x2f5   : > { %2110 = vmatprep.subr.bf16.mxu1 %v11170_v62 }
 0x2f6   : > { %10802 = vmatmul.mubr.msk.bf16.vlgmr.msra.gmra.mrb[12].mxu0 %vm574_vm2, %v11146_v39 }
 0x2f7   : > { %2062 = vmatpush1.bf16.msra.mxu0 %v11147_v63  ;;  %2093 = vmatprep.mubr.bf16.mxu0 %v12209_v4 }
 0x2f8   : > { %2063 = vmatprep.subr.bf16.mxu0 %v11155_v1  ;;  %2111 = vmatpush1.bf16.msra.mxu1 %v11168_v2 }
 0x2f9   : > { %2112 = vmatprep.subr.bf16.mxu1 %v11176_v3 }
 0x2fb   : > { %2064 = vmatpush1.bf16.msra.mxu0 %v11153_v6 }
 0x2fc   : > { %2065 = vmatprep.subr.bf16.mxu0 %v11161_v5  ;;  %2113 = vmatpush1.bf16.msra.mxu1 %v11174_v7 }
 0x2fd   : > { %2114 = vmatprep.subr.bf16.mxu1 %v11182_v8 }
 0x2ff   : > { %2066 = vmatpush1.bf16.msra.mxu0 %v11159_v9  ;;  %v2205_v9 = vsel %vm2203_vm6, %v2204_v34, 0  ;;  %v11231_v34 = vld [vmem:[%s15396_s5 + $0x504] ss:$16 sps:$4 sm:$0xff]  }
 0x300   : > { %2067 = vmatprep.subr.bf16.mxu0 %v11167_v10  ;;  %2115 = vmatpush1.bf16.msra.mxu1 %v11180_v11 }
 0x301   : > { %2116 = vmatprep.subr.bf16.mxu1 %v2059_v24  ;;  %v11193_v24 = vld [vmem:[%s15396_s5 + $0x400] ss:$16 sps:$4 sm:$0xff]  }
 0x303   : > { %2068 = vmatpush1.bf16.msra.mxu0 %v11165_v12 }
 0x304   : > { %2069 = vmatprep.subr.bf16.mxu0 %v11173_v13  ;;  %2117 = vmatpush1.bf16.msra.mxu1 %v2056_v26  ;;  %v11198_v26 = vld [vmem:[%s15396_s5 + $0x424] ss:$16 sps:$4 sm:$0xff]  }
 0x307   : > { %2070 = vmatpush1.bf16.msra.mxu0 %v11171_v14  ;;  %v11189_v14 = vld [vmem:[%s15396_s5 + $0x3c4] ss:$16 sps:$4 sm:$0xff]  }
 0x308   : > { %2071 = vmatprep.subr.bf16.mxu0 %v11179_v15 }
 0x30b   : > { %2072 = vmatpush1.bf16.msra.mxu0 %v11177_v16 }
 0x30c   : > { %2073 = vmatprep.subr.bf16.mxu0 %v2053_v23  ;;  %v11195_v23 = vld [vmem:[%s15396_s5 + $0x404] ss:$16 sps:$4 sm:$0xff]  }
 0x30f   : > { %2074 = vmatpush1.bf16.msra.mxu0 %v2050_v25  ;;  %v11210_v25 = vld [vmem:[%s15396_s5 + $0x5c4] ss:$16 sps:$4 sm:$0xff]  }
 0x3c9   : > { %v1881_v27 = vpop.f32.mrb[12].mxu0 }
 0x3ca   : > { %v10803_v28 = vpop.f32.mrb[13].mxu0 }
 0x3cb   : > { %v1884_v29 = vpop.f32.mrb[14].mxu0  ;;  %v11201_v28 = vld [vmem:[%s15396_s5 + $0x444] ss:$16 sps:$4 sm:$0xff]  }
 0x3cc   : > { %v1888_v30 = vpack.c.bf16 %v1884_v29, %v1881_v27  ;;  %v10804_v31 = vpop.f32.mrb[15].mxu0  ;;  %v11196_v27 = vld [vmem:[%s15396_s5 + $0x420] ss:$16 sps:$4 sm:$0xff]  }
 0x3cd   : > { %v11208_v29 = vld [vmem:[%s15396_s5 + $0x5c0] ss:$16 sps:$4 sm:$0xff]   ;;  %v11216_v31 = vld [vmem:[%s15396_s5 + $0x5e4] ss:$16 sps:$4 sm:$0xff]  }
 0x3ce   : > { %9269 = vmatmul.mubr.msk.bf16.vlgmr.msra.gmra.mrb[4].mxu0 %vm862_vm4, %v1888_v30  ;;  %9270 = vmatmul.mubr.msk.bf16.vlgmr.msra.gmra.mrb[4].mxu1 %vm862_vm4, %v1888_v30  ;;  %v11199_v30 = vld [vmem:[%s15396_s5 + $0x440] ss:$16 sps:$4 sm:$0xff]  }
 0x3cf   : > { %2250 = vmatprep.mubr.bf16.mxu1 %v12209_v4  ;;  %2461 = vmatprep.mubr.bf16.mxu0 %v12209_v4 }
 0x4a1   : > { %v2095_v47 = vpop.f32.mrb[4].mxu0  ;;  %v2138_v48 = vpop.f32.mrb[4].mxu1 }
 0x4a2   : > { %v2177_v49 = vadd.f32 %v2160_v43, %v2095_v47  ;;  %v2179_v50 = vadd.f32 %v2168_v44, %v2138_v48  ;;  %v2097_v51 = vpop.f32.mrb[5].mxu0  ;;  %v2140_v52 = vpop.f32.mrb[5].mxu1  ;;  %v11205_v47 = vld [vmem:[%s15396_s5 + $0x480] ss:$16 sps:$4 sm:$0xff]   ;;  %v11228_v48 = vld [vmem:[%s15396_s5 + $0x624] ss:$16 sps:$4 sm:$0xff]  }
 0x4a3   : > { %v2178_v53 = vadd.f32 %v2164_v45, %v2097_v51  ;;  %v2180_v54 = vadd.f32 %v2172_v46, %v2140_v52  ;;  %v2099_v55 = vpop.f32.mrb[6].mxu0  ;;  %v2142_v56 = vpop.f32.mrb[6].mxu1  ;;  %v11211_v51 = vld [vmem:[%s15396_s5 + $0x4a0] ss:$16 sps:$4 sm:$0xff]   ;;  %v11234_v52 = vld [vmem:[%s15396_s5 + $0x644] ss:$16 sps:$4 sm:$0xff]  }
 0x4a4   : > { %v2181_v57 = vadd.f32 %v2160_v43, %v2099_v55  ;;  %v2183_v58 = vadd.f32 %v2168_v44, %v2142_v56  ;;  %v2101_v59 = vpop.f32.mrb[7].mxu0  ;;  %v2144_v60 = vpop.f32.mrb[7].mxu1  ;;  %v2185_v39 = vmax.f32 %v2177_v49, 0.0  ;;  %v2187_v63 = vmax.f32 %v2179_v50, 0.0  ;;  %v11202_v43 = vld [vmem:[%s15396_s5 + $0x460] ss:$16 sps:$4 sm:$0xff]  }
 0x4a5   : > { %v2182_v61 = vadd.f32 %v2164_v45, %v2101_v59  ;;  %v2184_v62 = vadd.f32 %v2172_v46, %v2144_v60  ;;  %v2186_v3 = vmax.f32 %v2178_v53, 0.0  ;;  %v2188_v6 = vmax.f32 %v2180_v54, 0.0  ;;  %v11222_v44 = vld [vmem:[%s15396_s5 + $0x604] ss:$16 sps:$4 sm:$0xff]   ;;  %v11220_v46 = vld [vmem:[%s15396_s5 + $0x600] ss:$16 sps:$4 sm:$0xff]  }
 0x4a6   : > { %v2189_v1 = vmax.f32 %v2181_v57, 0.0  ;;  %v2191_v2 = vmax.f32 %v2183_v58, 0.0  ;;  %v11207_v45 = vld [vmem:[%s15396_s5 + $0x484] ss:$16 sps:$4 sm:$0xff]   ;;  %v11226_v50 = vld [vmem:[%s15396_s5 + $0x620] ss:$16 sps:$4 sm:$0xff]  }
 0x4a7   : > { %v2190_v5 = vmax.f32 %v2182_v61, 0.0  ;;  %v2192_v7 = vmax.f32 %v2184_v62, 0.0  ;;  %v11213_v49 = vld [vmem:[%s15396_s5 + $0x4a4] ss:$16 sps:$4 sm:$0xff]   ;;  %v11232_v54 = vld [vmem:[%s15396_s5 + $0x640] ss:$16 sps:$4 sm:$0xff]  }
 0x4a8   : > { %v2193_v8 = vpack.c.bf16 %v2189_v1, %v2185_v39  ;;  %v2195_v10 = vpack.c.bf16 %v2191_v2, %v2187_v63  ;;  %v11219_v53 = vld [vmem:[%s15396_s5 + $0x4c4] ss:$16 sps:$4 sm:$0xff]   ;;  %v11217_v55 = vld [vmem:[%s15396_s5 + $0x4c0] ss:$16 sps:$4 sm:$0xff]  }
 0x4a9   : > { %v2194_v11 = vpack.c.bf16 %v2190_v5, %v2186_v3  ;;  %v2196_v12 = vpack.c.bf16 %v2192_v7, %v2188_v6  ;;  %v11240_v56 = vld [vmem:[%s15396_s5 + $0x664] ss:$16 sps:$4 sm:$0xff]   ;;  %v11238_v58 = vld [vmem:[%s15396_s5 + $0x660] ss:$16 sps:$4 sm:$0xff]  }
 0x4aa   : > { %v12892_v15 = vand.u32 %v2205_v9, %v2193_v8  ;;  %v12910_v20 = vand.u32 %v2205_v9, %v2195_v10  ;;  %v11225_v57 = vld [vmem:[%s15396_s5 + $0x4e4] ss:$16 sps:$4 sm:$0xff]   ;;  %v11223_v59 = vld [vmem:[%s15396_s5 + $0x4e0] ss:$16 sps:$4 sm:$0xff]  }
 0x4ab   : > { %v12887_v13 = vand.u32 %v2205_v9, %v2194_v11  ;;  %v12896_v16 = vand.u32 %v2205_v9, %v2196_v12  ;;  %v11246_v60 = vld [vmem:[%s15396_s5 + $0x684] ss:$16 sps:$4 sm:$0xff]   ;;  %v11244_v61 = vld [vmem:[%s15396_s5 + $0x680] ss:$16 sps:$4 sm:$0xff]  }
 0x4ac   : > { %v11229_v62 = vld [vmem:[%s15396_s5 + $0x500] ss:$16 sps:$4 sm:$0xff]   ;;  %v11252_v39 = vld [vmem:[%s15396_s5 + $0x6a4] ss:$16 sps:$4 sm:$0xff]  }
 0x4ad   : > { %2218 = vmatprep.subr.bf16.mxu1 %v12887_v13  ;;  %2429 = vmatprep.subr.bf16.mxu0 %v12887_v13  ;;  %v11237_v63 = vld [vmem:[%s15396_s5 + $0x524] ss:$16 sps:$4 sm:$0xff]   ;;  %v11250_v1 = vld [vmem:[%s15396_s5 + $0x6a0] ss:$16 sps:$4 sm:$0xff]  }
 0x4ae   : > { %2219 = vmatpush1.bf16.msra.mxu1 %v12892_v15  ;;  %2430 = vmatpush1.bf16.msra.mxu0 %v12892_v15  ;;  %v11235_v2 = vld [vmem:[%s15396_s5 + $0x520] ss:$16 sps:$4 sm:$0xff]   ;;  %v11258_v3 = vld [vmem:[%s15396_s5 + $0x6c4] ss:$16 sps:$4 sm:$0xff]  }
 0x4af   : > { %2259 = vmatprep.subr.bf16.mxu1 %v12896_v16  ;;  %3240 = vmatprep.subr.bf16.mxu0 %v11189_v14  ;;  %v11243_v6 = vld [vmem:[%s15396_s5 + $0x544] ss:$16 sps:$4 sm:$0xff]   ;;  %v11256_v5 = vld [vmem:[%s15396_s5 + $0x6c0] ss:$16 sps:$4 sm:$0xff]  }
 0x4b0   : > { %v11241_v7 = vld [vmem:[%s15396_s5 + $0x540] ss:$16 sps:$4 sm:$0xff]   ;;  %v11249_v8 = vld [vmem:[%s15396_s5 + $0x564] ss:$16 sps:$4 sm:$0xff]  }
 0x4b1   : > { %9271 = vmatmul.mubr.msk.bf16.vlgmr.msra.gmra.mrb[12].mxu1 %vm2198_vm7, %v2197_v17  ;;  %9274 = vmatmul.mubr.msk.bf16.vlgmr.msra.gmra.mrb[16].mxu0 %vm2198_vm7, %v9273_v18  ;;  %v11247_v9 = vld [vmem:[%s15396_s5 + $0x560] ss:$16 sps:$4 sm:$0xff]   ;;  %v11255_v10 = vld [vmem:[%s15396_s5 + $0x584] ss:$16 sps:$4 sm:$0xff]  }
 0x4b2   : > { %2260 = vmatpush1.bf16.msra.mxu1 %v12910_v20  ;;  %2291 = vmatprep.mubr.bf16.mxu1 %v12209_v4  ;;  %v11253_v11 = vld [vmem:[%s15396_s5 + $0x580] ss:$16 sps:$4 sm:$0xff]   ;;  %v11261_v12 = vld [vmem:[%s15396_s5 + $0x5a4] ss:$16 sps:$4 sm:$0xff]  }
 0x4b3   : > { %2470 = vmatprep.subr.bf16.mxu1 %v12896_v16  ;;  %3241 = vmatpush1.bf16.msra.mxu0 %v11187_v19  ;;  %v11264_v14 = vld [vmem:[%s15396_s5 + $0x6e4] ss:$16 sps:$4 sm:$0xff]  }
 0x4b4   : > { %3242 = vmatprep.subr.bf16.mxu0 %v11192_v21  ;;  %v11267_v19 = vld [vmem:[%s15396_s5 + $0x704] ss:$16 sps:$4 sm:$0xff]   ;;  %v11270_v21 = vld [vmem:[%s15396_s5 + $0x5cc] ss:$16 sps:$4 sm:$0xff]  }
 0x4b7   : > { %3243 = vmatpush1.bf16.msra.mxu0 %v11190_v22  ;;  %v11265_v22 = vld [vmem:[%s15396_s5 + $0x700] ss:$16 sps:$4 sm:$0xff]  }
 0x4b8   : > { %3244 = vmatprep.subr.bf16.mxu0 %v11195_v23  ;;  %v11273_v23 = vld [vmem:[%s15396_s5 + $0x724] ss:$16 sps:$4 sm:$0xff]  }
 0x4b9   : > { %9272 = vmatmul.mubr.msk.bf16.vlgmr.msra.gmra.mrb[16].mxu1 %vm2198_vm7, %v2197_v17  ;;  %v11259_v17 = vld [vmem:[%s15396_s5 + $0x5a0] ss:$16 sps:$4 sm:$0xff]  }
 0x4ba   : > { %2471 = vmatpush1.bf16.msra.mxu1 %v12910_v20  ;;  %2502 = vmatprep.mubr.bf16.mxu1 %v12209_v4 }
 0x4bb   : > { %3245 = vmatpush1.bf16.msra.mxu0 %v11193_v24  ;;  %3281 = vmatprep.subr.bf16.mxu1 %v11210_v25  ;;  %v11271_v24 = vld [vmem:[%s15396_s5 + $0x720] ss:$16 sps:$4 sm:$0xff]  }
 0x4bc   : > { %3246 = vmatprep.subr.bf16.mxu0 %v11198_v26  ;;  %v11277_v25 = vld [vmem:[%s15396_s5 + $0x740] ss:$16 sps:$4 sm:$0xff]   ;;  %v11279_v26 = vld [vmem:[%s15396_s5 + $0x744] ss:$16 sps:$4 sm:$0xff]  }
 0x4bf   : > { %3247 = vmatpush1.bf16.msra.mxu0 %v11196_v27  ;;  %v11285_v27 = vld [vmem:[%s15396_s5 + $0x764] ss:$16 sps:$4 sm:$0xff]  }
 0x4c0   : > { %3248 = vmatprep.subr.bf16.mxu0 %v11201_v28  ;;  %v11283_v28 = vld [vmem:[%s15396_s5 + $0x760] ss:$16 sps:$4 sm:$0xff]  }
 0x4c1   : > { %9275 = vmatmul.mubr.msk.bf16.vlgmr.msra.gmra.mrb[20].mxu1 %vm2198_vm7, %v9273_v18  ;;  %v11262_v18 = vld [vmem:[%s15396_s5 + $0x6e0] ss:$16 sps:$4 sm:$0xff]  }
 0x4c2   : > { %3282 = vmatpush1.bf16.msra.mxu1 %v11208_v29  ;;  %v11291_v29 = vld [vmem:[%s15396_s5 + $0x3cc] ss:$16 sps:$4 sm:$0xff]  }
 0x4c3   : > { %3249 = vmatpush1.bf16.msra.mxu0 %v11199_v30  ;;  %3283 = vmatprep.subr.bf16.mxu1 %v11216_v31 }
 0x4c4   : > { %3250 = vmatprep.subr.bf16.mxu0 %v11204_v32 }
 0x4c6   : > { %3284 = vmatpush1.bf16.msra.mxu1 %v11214_v40 }
 0x4c7   : > { %3251 = vmatpush1.bf16.msra.mxu0 %v11202_v43  ;;  %3285 = vmatprep.subr.bf16.mxu1 %v11222_v44 }
 0x4c8   : > { %3252 = vmatprep.subr.bf16.mxu0 %v11207_v45 }
 0x4ca   : > { %3286 = vmatpush1.bf16.msra.mxu1 %v11220_v46  ;;  %v11268_v46 = vld [vmem:[%s15396_s5 + $0x5c8] ss:$16 sps:$4 sm:$0xff]  }
 0x4cb   : > { %3253 = vmatpush1.bf16.msra.mxu0 %v11205_v47  ;;  %3287 = vmatprep.subr.bf16.mxu1 %v11228_v48 }
 0x4cc   : > { %3254 = vmatprep.subr.bf16.mxu0 %v11213_v49  ;;  %v11276_v49 = vld [vmem:[%s15396_s5 + $0x5ec] ss:$16 sps:$4 sm:$0xff]  }
 0x4ce   : > { %3288 = vmatpush1.bf16.msra.mxu1 %v11226_v50 }
 0x4cf   : > { %3255 = vmatpush1.bf16.msra.mxu0 %v11211_v51  ;;  %3289 = vmatprep.subr.bf16.mxu1 %v11234_v52  ;;  %v11274_v51 = vld [vmem:[%s15396_s5 + $0x5e8] ss:$16 sps:$4 sm:$0xff]   ;;  %v11282_v52 = vld [vmem:[%s15396_s5 + $0x60c] ss:$16 sps:$4 sm:$0xff]  }
 0x4d0   : > { %3256 = vmatprep.subr.bf16.mxu0 %v11219_v53 }
 0x4d2   : > { %3290 = vmatpush1.bf16.msra.mxu1 %v11232_v54 }
 0x4d3   : > { %3257 = vmatpush1.bf16.msra.mxu0 %v11217_v55  ;;  %3291 = vmatprep.subr.bf16.mxu1 %v11240_v56  ;;  %v11280_v56 = vld [vmem:[%s15396_s5 + $0x608] ss:$16 sps:$4 sm:$0xff]  }
 0x4d4   : > { %3258 = vmatprep.subr.bf16.mxu0 %v11225_v57 }
 0x4d6   : > { %3292 = vmatpush1.bf16.msra.mxu1 %v11238_v58  ;;  %v11288_v58 = vld [vmem:[%s15396_s5 + $0x62c] ss:$16 sps:$4 sm:$0xff]  }
 0x4d7   : > { %3259 = vmatpush1.bf16.msra.mxu0 %v11223_v59  ;;  %3293 = vmatprep.subr.bf16.mxu1 %v11246_v60  ;;  %v11286_v59 = vld [vmem:[%s15396_s5 + $0x628] ss:$16 sps:$4 sm:$0xff]   ;;  %v11294_v60 = vld [vmem:[%s15396_s5 + $0x64c] ss:$16 sps:$4 sm:$0xff]  }
 0x4d8   : > { %3260 = vmatprep.subr.bf16.mxu0 %v11231_v34 }
 0x4da   : > { %3294 = vmatpush1.bf16.msra.mxu1 %v11244_v61 }
 0x4db   : > { %3261 = vmatpush1.bf16.msra.mxu0 %v11229_v62  ;;  %3295 = vmatprep.subr.bf16.mxu1 %v11252_v39 }
 0x4dc   : > { %3262 = vmatprep.subr.bf16.mxu0 %v11237_v63  ;;  %v11289_v63 = vld [vmem:[%s15396_s5 + $0x3c8] ss:$16 sps:$4 sm:$0xff]  }
 0x4de   : > { %3296 = vmatpush1.bf16.msra.mxu1 %v11250_v1  ;;  %v11292_v1 = vld [vmem:[%s15396_s5 + $0x648] ss:$16 sps:$4 sm:$0xff]  }
 0x4df   : > { %3263 = vmatpush1.bf16.msra.mxu0 %v11235_v2  ;;  %3297 = vmatprep.subr.bf16.mxu1 %v11258_v3 }
 0x4e0   : > { %3264 = vmatprep.subr.bf16.mxu0 %v11243_v6  ;;  %v11297_v6 = vld [vmem:[%s15396_s5 + $0x3ec] ss:$16 sps:$4 sm:$0xff]  }
 0x4e2   : > { %3298 = vmatpush1.bf16.msra.mxu1 %v11256_v5  ;;  %v11300_v5 = vld [vmem:[%s15396_s5 + $0x66c] ss:$16 sps:$4 sm:$0xff]  }
 0x4e3   : > { %3265 = vmatpush1.bf16.msra.mxu0 %v11241_v7  ;;  %3299 = vmatprep.subr.bf16.mxu1 %v11264_v14  ;;  %v11295_v7 = vld [vmem:[%s15396_s5 + $0x3e8] ss:$16 sps:$4 sm:$0xff]   ;;  %v11309_v14 = vld [vmem:[%s15396_s5 + $0x42c] ss:$16 sps:$4 sm:$0xff]  }
 0x4e4   : > { %3266 = vmatprep.subr.bf16.mxu0 %v11249_v8  ;;  %v11298_v8 = vld [vmem:[%s15396_s5 + $0x668] ss:$16 sps:$4 sm:$0xff]  }
 0x4e6   : > { %3300 = vmatpush1.bf16.msra.mxu1 %v11262_v18  ;;  %v11307_v18 = vld [vmem:[%s15396_s5 + $0x428] ss:$16 sps:$4 sm:$0xff]  }
 0x4e7   : > { %3267 = vmatpush1.bf16.msra.mxu0 %v11247_v9  ;;  %3301 = vmatprep.subr.bf16.mxu1 %v11267_v19  ;;  %v11303_v9 = vld [vmem:[%s15396_s5 + $0x40c] ss:$16 sps:$4 sm:$0xff]   ;;  %v11310_v19 = vld [vmem:[%s15396_s5 + $0x6a8] ss:$16 sps:$4 sm:$0xff]  }
 0x4e8   : > { %3268 = vmatprep.subr.bf16.mxu0 %v11255_v10  ;;  %v11306_v10 = vld [vmem:[%s15396_s5 + $0x68c] ss:$16 sps:$4 sm:$0xff]  }
 0x4ea   : > { %3302 = vmatpush1.bf16.msra.mxu1 %v11265_v22  ;;  %v11318_v22 = vld [vmem:[%s15396_s5 + $0x6cc] ss:$16 sps:$4 sm:$0xff]  }
 0x4eb   : > { %3269 = vmatpush1.bf16.msra.mxu0 %v11253_v11  ;;  %3303 = vmatprep.subr.bf16.mxu1 %v11273_v23  ;;  %v11301_v11 = vld [vmem:[%s15396_s5 + $0x408] ss:$16 sps:$4 sm:$0xff]  }
 0x4ec   : > { %3270 = vmatprep.subr.bf16.mxu0 %v11261_v12  ;;  %v11304_v12 = vld [vmem:[%s15396_s5 + $0x688] ss:$16 sps:$4 sm:$0xff]  }
 0x4ed   : > { %v11313_v23 = vld [vmem:[%s15396_s5 + $0x448] ss:$16 sps:$4 sm:$0xff]  }
 0x4ee   : > { %3304 = vmatpush1.bf16.msra.mxu1 %v11271_v24  ;;  %v11316_v24 = vld [vmem:[%s15396_s5 + $0x6c8] ss:$16 sps:$4 sm:$0xff]  }
 0x4ef   : > { %3271 = vmatpush1.bf16.msra.mxu0 %v11259_v17  ;;  %3305 = vmatprep.subr.bf16.mxu1 %v11279_v26  ;;  %v11312_v17 = vld [vmem:[%s15396_s5 + $0x6ac] ss:$16 sps:$4 sm:$0xff]  }
 0x4f0   : > { %3363 = vmatprep.subr.bf16.mxu0 %v11270_v21  ;;  %v11315_v21 = vld [vmem:[%s15396_s5 + $0x44c] ss:$16 sps:$4 sm:$0xff]  }
 0x4f1   : > { %v11324_v26 = vld [vmem:[%s15396_s5 + $0x6ec] ss:$16 sps:$4 sm:$0xff]  }
 0x4f2   : > { %3306 = vmatpush1.bf16.msra.mxu1 %v11277_v25  ;;  %v11321_v25 = vld [vmem:[%s15396_s5 + $0x46c] ss:$16 sps:$4 sm:$0xff]  }
 0x4f3   : > { %3307 = vmatprep.subr.bf16.mxu1 %v11285_v27  ;;  %v11319_v27 = vld [vmem:[%s15396_s5 + $0x468] ss:$16 sps:$4 sm:$0xff]  }
 0x4f6   : > { %3308 = vmatpush1.bf16.msra.mxu1 %v11283_v28  ;;  %v11322_v28 = vld [vmem:[%s15396_s5 + $0x6e8] ss:$16 sps:$4 sm:$0xff]  }
 0x4f7   : > { %3322 = vmatprep.subr.bf16.mxu1 %v11291_v29  ;;  %v11327_v29 = vld [vmem:[%s15396_s5 + $0x48c] ss:$16 sps:$4 sm:$0xff]  }
 0x584   : > { %v13101_v30 = vpop.f32.mrb[12].mxu1  ;;  %v2463_v31 = vpop.f32.mrb[16].mxu0 }
 0x585   : > { %v13103_v32 = vpack.c.bf16 %v2463_v31, %v2463_v31  ;;  %v13105_v40 = vpop.f32.mrb[13].mxu1  ;;  %v2465_v43 = vpop.f32.mrb[17].mxu0  ;;  %v11330_v31 = vld [vmem:[%s15396_s5 + $0x70c] ss:$16 sps:$4 sm:$0xff]  }
 0x586   : > { %v2512_v44 = vpack.c.bf16 %v2465_v43, %v2465_v43  ;;  %v2256_v45 = vpop.f32.mrb[14].mxu1  ;;  %v2467_v47 = vpop.f32.mrb[18].mxu0  ;;  %v11325_v43 = vld [vmem:[%s15396_s5 + $0x488] ss:$16 sps:$4 sm:$0xff]  }
 0x587   : > { %v2257_v48 = vpop.f32.mrb[15].mxu1  ;;  %v2468_v50 = vpop.f32.mrb[19].mxu0  ;;  %v11333_v45 = vld [vmem:[%s15396_s5 + $0x4ac] ss:$16 sps:$4 sm:$0xff]   ;;  %v11331_v47 = vld [vmem:[%s15396_s5 + $0x4a8] ss:$16 sps:$4 sm:$0xff]  }
 0x588   : > { %3272 = vmatprep.mubr.bf16.mxu0 %v2512_v44  ;;  %v11334_v48 = vld [vmem:[%s15396_s5 + $0x728] ss:$16 sps:$4 sm:$0xff]   ;;  %v11342_v50 = vld [vmem:[%s15396_s5 + $0x74c] ss:$16 sps:$4 sm:$0xff]  }
 0x589   : > { %3273 = vmatmul.mubr.bf16.vlgmr.msra.gmra.mrb[20].mxu0 %v13103_v32 }
 0x58a   : > { %3364 = vmatpush1.bf16.msra.mxu0 %v11268_v46  ;;  %v11336_v46 = vld [vmem:[%s15396_s5 + $0x72c] ss:$16 sps:$4 sm:$0xff]  }
 0x58b   : > { %3365 = vmatprep.subr.bf16.mxu0 %v11276_v49  ;;  %v11339_v49 = vld [vmem:[%s15396_s5 + $0x4cc] ss:$16 sps:$4 sm:$0xff]  }
 0x58c   : > { %v13120_v53 = vpop.f32.mrb[16].mxu1 }
 0x58d   : > { %v13122_v54 = vpop.f32.mrb[17].mxu1 }
 0x58e   : > { %3366 = vmatpush1.bf16.msra.mxu0 %v11274_v51  ;;  %v2297_v55 = vpop.f32.mrb[18].mxu1  ;;  %v11337_v51 = vld [vmem:[%s15396_s5 + $0x4c8] ss:$16 sps:$4 sm:$0xff]  }
 0x58f   : > { %v2298_v57 = vpop.f32.mrb[19].mxu1  ;;  %3367 = vmatprep.subr.bf16.mxu0 %v11282_v52  ;;  %v11340_v52 = vld [vmem:[%s15396_s5 + $0x748] ss:$16 sps:$4 sm:$0xff]   ;;  %v11345_v55 = vld [vmem:[%s15396_s5 + $0x4ec] ss:$16 sps:$4 sm:$0xff]  }
 0x590   : > { %v11343_v57 = vld [vmem:[%s15396_s5 + $0x4e8] ss:$16 sps:$4 sm:$0xff]  }
 0x592   : > { %3368 = vmatpush1.bf16.msra.mxu0 %v11280_v56  ;;  %v11348_v56 = vld [vmem:[%s15396_s5 + $0x76c] ss:$16 sps:$4 sm:$0xff]  }
 0x593   : > { %3369 = vmatprep.subr.bf16.mxu0 %v11288_v58  ;;  %v11346_v58 = vld [vmem:[%s15396_s5 + $0x768] ss:$16 sps:$4 sm:$0xff]  }
 0x594   : > { %v2504_v34 = vpop.f32.mrb[20].mxu1 }
 0x595   : > { %v2506_v61 = vpop.f32.mrb[21].mxu1  ;;  %v13142_v2 = vpack.c.bf16 %v2504_v34, %v2504_v34  ;;  %v11349_v34 = vld [vmem:[%s15396_s5 + $0x508] ss:$16 sps:$4 sm:$0xff]  }
 0x596   : > { %v2514_v62 = vpack.c.bf16 %v2506_v61, %v2506_v61  ;;  %3370 = vmatpush1.bf16.msra.mxu0 %v11286_v59  ;;  %v2508_v39 = vpop.f32.mrb[22].mxu1  ;;  %v11351_v59 = vld [vmem:[%s15396_s5 + $0x50c] ss:$16 sps:$4 sm:$0xff]   ;;  %v11352_v61 = vld [vmem:[%s15396_s5] ss:$16 sps:$4 sm:$0xff]  }
 0x597   : > { %v2509_v3 = vpop.f32.mrb[23].mxu1  ;;  %3371 = vmatprep.subr.bf16.mxu0 %v11294_v60  ;;  %v11354_v60 = vld [vmem:[%s15396_s5 + $0x4] ss:$16 sps:$4 sm:$0xff]  }
 0x598   : > { %9516 = vmatprep.mubr.msk.bf16.mxu1 %vm3236_vm8, %v2514_v62  ;;  %9517 = vmatprep.mubr.msk.bf16.mxu0 %vm3236_vm8, %v2514_v62  ;;  %v11357_v62 = vld [vmem:[%s15396_s5 + $0x52c] ss:$16 sps:$4 sm:$0xff]   ;;  %v11360_v39 = vld [vmem:[%s15396_s5 + $0x24] ss:$16 sps:$4 sm:$0xff]   ;;  %v11358_v3 = vld [vmem:[%s15396_s5 + $0x20] ss:$16 sps:$4 sm:$0xff]  }
 0x599   : > { %3314 = vmatmul.mubr.bf16.vlgmr.msra.gmra.mrb[24].mxu1 %v13142_v2 }
 0x59a   : > { %3323 = vmatpush1.bf16.msra.mxu1 %v11289_v63  ;;  %3372 = vmatpush1.bf16.msra.mxu0 %v11292_v1  ;;  %v13275_v63 = vpack.c.bf16 %v13105_v40, %v13105_v40  ;;  %v11355_v1 = vld [vmem:[%s15396_s5 + $0x528] ss:$16 sps:$4 sm:$0xff]   ;;  %v11363_v40 = vld [vmem:[%s15396_s5 + $0x54c] ss:$16 sps:$4 sm:$0xff]  }
 0x59b   : > { %3324 = vmatprep.subr.bf16.mxu1 %v11297_v6  ;;  %3373 = vmatprep.subr.bf16.mxu0 %v11300_v5  ;;  %v11361_v6 = vld [vmem:[%s15396_s5 + $0x548] ss:$16 sps:$4 sm:$0xff]   ;;  %v11364_v5 = vld [vmem:[%s15396_s5 + $0x40] ss:$16 sps:$4 sm:$0xff]  }
 0x59c   : > { %3354 = vmatprep.mubr.bf16.mxu1 %v2512_v44  ;;  %v11328_v44 = vld [vmem:[%s15396_s5 + $0x708] ss:$16 sps:$4 sm:$0xff]  }
 0x59e   : > { %3325 = vmatpush1.bf16.msra.mxu1 %v11295_v7  ;;  %3374 = vmatpush1.bf16.msra.mxu0 %v11298_v8  ;;  %v11369_v7 = vld [vmem:[%s15396_s5 + $0x56c] ss:$16 sps:$4 sm:$0xff]   ;;  %v11372_v8 = vld [vmem:[%s15396_s5 + $0x64] ss:$16 sps:$4 sm:$0xff]  }
 0x59f   : > { %3326 = vmatprep.subr.bf16.mxu1 %v11303_v9  ;;  %3375 = vmatprep.subr.bf16.mxu0 %v11306_v10  ;;  %v11367_v9 = vld [vmem:[%s15396_s5 + $0x568] ss:$16 sps:$4 sm:$0xff]   ;;  %v11370_v10 = vld [vmem:[%s15396_s5 + $0x60] ss:$16 sps:$4 sm:$0xff]  }
 0x5a2   : > { %3327 = vmatpush1.bf16.msra.mxu1 %v11301_v11  ;;  %3376 = vmatpush1.bf16.msra.mxu0 %v11304_v12  ;;  %v11375_v11 = vld [vmem:[%s15396_s5 + $0x58c] ss:$16 sps:$4 sm:$0xff]   ;;  %v11378_v12 = vld [vmem:[%s15396_s5 + $0x84] ss:$16 sps:$4 sm:$0xff]  }
 0x5a3   : > { %3328 = vmatprep.subr.bf16.mxu1 %v11309_v14  ;;  %3377 = vmatprep.subr.bf16.mxu0 %v11312_v17  ;;  %v11373_v14 = vld [vmem:[%s15396_s5 + $0x588] ss:$16 sps:$4 sm:$0xff]   ;;  %v11376_v17 = vld [vmem:[%s15396_s5 + $0x80] ss:$16 sps:$4 sm:$0xff]  }
 0x5a6   : > { %3329 = vmatpush1.bf16.msra.mxu1 %v11307_v18  ;;  %3378 = vmatpush1.bf16.msra.mxu0 %v11310_v19  ;;  %v11381_v18 = vld [vmem:[%s15396_s5 + $0x5ac] ss:$16 sps:$4 sm:$0xff]   ;;  %v11384_v19 = vld [vmem:[%s15396_s5 + $0xa4] ss:$16 sps:$4 sm:$0xff]  }
 0x5a7   : > { %3330 = vmatprep.subr.bf16.mxu1 %v11315_v21  ;;  %3379 = vmatprep.subr.bf16.mxu0 %v11318_v22  ;;  %v11379_v21 = vld [vmem:[%s15396_s5 + $0x5a8] ss:$16 sps:$4 sm:$0xff]   ;;  %v11382_v22 = vld [vmem:[%s15396_s5 + $0xa0] ss:$16 sps:$4 sm:$0xff]  }
 0x5aa   : > { %3331 = vmatpush1.bf16.msra.mxu1 %v11313_v23  ;;  %3380 = vmatpush1.bf16.msra.mxu0 %v11316_v24  ;;  %v11387_v23 = vld [vmem:[%s15396_s5 + $0xc4] ss:$16 sps:$4 sm:$0xff]  }
 0x5ab   : > { %3332 = vmatprep.subr.bf16.mxu1 %v11321_v25  ;;  %3381 = vmatprep.subr.bf16.mxu0 %v11324_v26  ;;  %v11390_v24 = vld [vmem:[%s15396_s5 + $0x204] ss:$16 sps:$4 sm:$0xff]   ;;  %v11385_v25 = vld [vmem:[%s15396_s5 + $0xc0] ss:$16 sps:$4 sm:$0xff]  }
 0x5ac   : > { %v11388_v26 = vld [vmem:[%s15396_s5 + $0x200] ss:$16 sps:$4 sm:$0xff]  }
 0x5ae   : > { %3333 = vmatpush1.bf16.msra.mxu1 %v11319_v27  ;;  %3382 = vmatpush1.bf16.msra.mxu0 %v11322_v28  ;;  %v11393_v27 = vld [vmem:[%s15396_s5 + $0xe4] ss:$16 sps:$4 sm:$0xff]  }
 0x5af   : > { %3334 = vmatprep.subr.bf16.mxu1 %v11327_v29  ;;  %3383 = vmatprep.subr.bf16.mxu0 %v11330_v31  ;;  %v11396_v28 = vld [vmem:[%s15396_s5 + $0x224] ss:$16 sps:$4 sm:$0xff]   ;;  %v13353_v29 = vpack.c.bf16 %v13122_v54, %v13122_v54  ;;  %v11391_v31 = vld [vmem:[%s15396_s5 + $0xe0] ss:$16 sps:$4 sm:$0xff]  }
 0x5b0   : > { %v11399_v54 = vld [vmem:[%s15396_s5 + $0x104] ss:$16 sps:$4 sm:$0xff]  }
 0x5b2   : > { %3335 = vmatpush1.bf16.msra.mxu1 %v11325_v43  ;;  %3384 = vmatpush1.bf16.msra.mxu0 %v11328_v44  ;;  %v11394_v43 = vld [vmem:[%s15396_s5 + $0x220] ss:$16 sps:$4 sm:$0xff]  }
 0x5b3   : > { %3336 = vmatprep.subr.bf16.mxu1 %v11333_v45  ;;  %3385 = vmatprep.subr.bf16.mxu0 %v11336_v46  ;;  %v11397_v44 = vld [vmem:[%s15396_s5 + $0x100] ss:$16 sps:$4 sm:$0xff]   ;;  %v11405_v46 = vld [vmem:[%s15396_s5 + $0x124] ss:$16 sps:$4 sm:$0xff]  }
 0x5b4   : > { %v11400_v45 = vld [vmem:[%s15396_s5 + $0x240] ss:$16 sps:$4 sm:$0xff]  }
 0x5b6   : > { %3337 = vmatpush1.bf16.msra.mxu1 %v11331_v47  ;;  %3386 = vmatpush1.bf16.msra.mxu0 %v11334_v48  ;;  %v11408_v47 = vld [vmem:[%s15396_s5 + $0x264] ss:$16 sps:$4 sm:$0xff]   ;;  %v11403_v48 = vld [vmem:[%s15396_s5 + $0x120] ss:$16 sps:$4 sm:$0xff]  }
 0x5b7   : > { %3338 = vmatprep.subr.bf16.mxu1 %v11339_v49  ;;  %3387 = vmatprep.subr.bf16.mxu0 %v11342_v50  ;;  %v11406_v49 = vld [vmem:[%s15396_s5 + $0x260] ss:$16 sps:$4 sm:$0xff]   ;;  %v11411_v50 = vld [vmem:[%s15396_s5 + $0x144] ss:$16 sps:$4 sm:$0xff]  }
 0x5ba   : > { %3339 = vmatpush1.bf16.msra.mxu1 %v11337_v51  ;;  %3388 = vmatpush1.bf16.msra.mxu0 %v11340_v52  ;;  %v11414_v51 = vld [vmem:[%s15396_s5 + $0x284] ss:$16 sps:$4 sm:$0xff]   ;;  %v11409_v52 = vld [vmem:[%s15396_s5 + $0x140] ss:$16 sps:$4 sm:$0xff]  }
 0x5bb   : > { %3340 = vmatprep.subr.bf16.mxu1 %v11345_v55  ;;  %3389 = vmatprep.subr.bf16.mxu0 %v11348_v56  ;;  %v11412_v55 = vld [vmem:[%s15396_s5 + $0x280] ss:$16 sps:$4 sm:$0xff]   ;;  %v11417_v56 = vld [vmem:[%s15396_s5 + $0x164] ss:$16 sps:$4 sm:$0xff]  }
 0x5be   : > { %3341 = vmatpush1.bf16.msra.mxu1 %v11343_v57  ;;  %3390 = vmatpush1.bf16.msra.mxu0 %v11346_v58  ;;  %v11420_v57 = vld [vmem:[%s15396_s5 + $0x2a4] ss:$16 sps:$4 sm:$0xff]   ;;  %v11415_v58 = vld [vmem:[%s15396_s5 + $0x160] ss:$16 sps:$4 sm:$0xff]  }
 0x5bf   : > { %3342 = vmatprep.subr.bf16.mxu1 %v11351_v59  ;;  %4007 = vmatprep.subr.bf16.mxu0 %v11354_v60  ;;  %v11418_v59 = vld [vmem:[%s15396_s5 + $0x2a0] ss:$16 sps:$4 sm:$0xff]   ;;  %v11423_v60 = vld [vmem:[%s15396_s5 + $0x184] ss:$16 sps:$4 sm:$0xff]  }
 0x5c1   : > { %3396 = vmatmul.mubr.bf16.vlgmr.msra.gmra.mrb[24].mxu0 %v13142_v2  ;;  %v11366_v2 = vld [vmem:[%s15396_s5 + $0x44] ss:$16 sps:$4 sm:$0xff]  }
 0x5c2   : > { %3343 = vmatpush1.bf16.msra.mxu1 %v11349_v34  ;;  %4008 = vmatpush1.bf16.msra.mxu0 %v11352_v61  ;;  %v11426_v34 = vld [vmem:[%s15396_s5 + $0x2c4] ss:$16 sps:$4 sm:$0xff]   ;;  %v11421_v61 = vld [vmem:[%s15396_s5 + $0x180] ss:$16 sps:$4 sm:$0xff]  }
 0x5c3   : > { %4039 = vmatprep.mubr.bf16.mxu0 %v13275_v63  ;;  %3344 = vmatprep.subr.bf16.mxu1 %v11357_v62  ;;  %v11424_v62 = vld [vmem:[%s15396_s5 + $0x2c0] ss:$16 sps:$4 sm:$0xff]  }
 0x5c4   : > { %4009 = vmatprep.subr.bf16.mxu0 %v11360_v39  ;;  %v11429_v39 = vld [vmem:[%s15396_s5 + $0x1a4] ss:$16 sps:$4 sm:$0xff]  }
 0x5c6   : > { %3345 = vmatpush1.bf16.msra.mxu1 %v11355_v1  ;;  %4010 = vmatpush1.bf16.msra.mxu0 %v11358_v3  ;;  %v11432_v1 = vld [vmem:[%s15396_s5 + $0x2e4] ss:$16 sps:$4 sm:$0xff]   ;;  %v11427_v3 = vld [vmem:[%s15396_s5 + $0x1a0] ss:$16 sps:$4 sm:$0xff]  }
 0x5c7   : > { %3346 = vmatprep.subr.bf16.mxu1 %v11363_v40  ;;  %4011 = vmatprep.subr.bf16.mxu0 %v11366_v2  ;;  %v11430_v40 = vld [vmem:[%s15396_s5 + $0x2e0] ss:$16 sps:$4 sm:$0xff]   ;;  %v11435_v2 = vld [vmem:[%s15396_s5 + $0x1c4] ss:$16 sps:$4 sm:$0xff]  }
 0x5ca   : > { %3347 = vmatpush1.bf16.msra.mxu1 %v11361_v6  ;;  %4012 = vmatpush1.bf16.msra.mxu0 %v11364_v5  ;;  %v11438_v6 = vld [vmem:[%s15396_s5 + $0x304] ss:$16 sps:$4 sm:$0xff]   ;;  %v11433_v5 = vld [vmem:[%s15396_s5 + $0x1c0] ss:$16 sps:$4 sm:$0xff]  }
 0x5cb   : > { %3348 = vmatprep.subr.bf16.mxu1 %v11369_v7  ;;  %4013 = vmatprep.subr.bf16.mxu0 %v11372_v8  ;;  %v11436_v7 = vld [vmem:[%s15396_s5 + $0x300] ss:$16 sps:$4 sm:$0xff]   ;;  %v11441_v8 = vld [vmem:[%s15396_s5 + $0x1e4] ss:$16 sps:$4 sm:$0xff]  }
 0x5ce   : > { %3349 = vmatpush1.bf16.msra.mxu1 %v11367_v9  ;;  %4014 = vmatpush1.bf16.msra.mxu0 %v11370_v10  ;;  %v11444_v9 = vld [vmem:[%s15396_s5 + $0x324] ss:$16 sps:$4 sm:$0xff]   ;;  %v11439_v10 = vld [vmem:[%s15396_s5 + $0x1e0] ss:$16 sps:$4 sm:$0xff]  }
 0x5cf   : > { %3350 = vmatprep.subr.bf16.mxu1 %v11375_v11  ;;  %4015 = vmatprep.subr.bf16.mxu0 %v11378_v12  ;;  %v11442_v11 = vld [vmem:[%s15396_s5 + $0x320] ss:$16 sps:$4 sm:$0xff]   ;;  %v11447_v12 = vld [vmem:[%s15396_s5 + $0x344] ss:$16 sps:$4 sm:$0xff]  }
 0x5d2   : > { %3351 = vmatpush1.bf16.msra.mxu1 %v11373_v14  ;;  %4016 = vmatpush1.bf16.msra.mxu0 %v11376_v17  ;;  %v11450_v14 = vld [vmem:[%s15396_s5 + $0x20c] ss:$16 sps:$4 sm:$0xff]   ;;  %v11445_v17 = vld [vmem:[%s15396_s5 + $0x340] ss:$16 sps:$4 sm:$0xff]  }
 0x5d3   : > { %3352 = vmatprep.subr.bf16.mxu1 %v11381_v18  ;;  %4017 = vmatprep.subr.bf16.mxu0 %v11384_v19  ;;  %v11448_v18 = vld [vmem:[%s15396_s5 + $0x208] ss:$16 sps:$4 sm:$0xff]   ;;  %v13474_v19 = vpack.c.bf16 %v13101_v30, %v13101_v30 }
 0x5d4   : > { %v11454_v30 = vld [vmem:[%s15396_s5 + $0x228] ss:$16 sps:$4 sm:$0xff]  }
 0x5d6   : > { %3353 = vmatpush1.bf16.msra.mxu1 %v11379_v21  ;;  %4018 = vmatpush1.bf16.msra.mxu0 %v11382_v22  ;;  %v11453_v21 = vld [vmem:[%s15396_s5 + $0x364] ss:$16 sps:$4 sm:$0xff]   ;;  %v11456_v22 = vld [vmem:[%s15396_s5 + $0x22c] ss:$16 sps:$4 sm:$0xff]  }
 0x5d7   : > { %4019 = vmatprep.subr.bf16.mxu0 %v11387_v23  ;;  %4048 = vmatprep.subr.bf16.mxu1 %v11390_v24  ;;  %v11451_v23 = vld [vmem:[%s15396_s5 + $0x360] ss:$16 sps:$4 sm:$0xff]   ;;  %v11459_v24 = vld [vmem:[%s15396_s5 + $0x384] ss:$16 sps:$4 sm:$0xff]  }
 0x5d9   : > { %3355 = vmatmul.mubr.bf16.vlgmr.msra.gmra.mrb[28].mxu1 %v13103_v32  ;;  %v11402_v32 = vld [vmem:[%s15396_s5 + $0x244] ss:$16 sps:$4 sm:$0xff]  }
 0x5da   : > { %4020 = vmatpush1.bf16.msra.mxu0 %v11385_v25  ;;  %4049 = vmatpush1.bf16.msra.mxu1 %v11388_v26  ;;  %v11462_v25 = vld [vmem:[%s15396_s5 + $0x24c] ss:$16 sps:$4 sm:$0xff]   ;;  %v11457_v26 = vld [vmem:[%s15396_s5 + $0x380] ss:$16 sps:$4 sm:$0xff]  }
 0x5db   : > { %9638 = vmatprep.mubr.msk.bf16.mxu1 %vm3236_vm8, %v13353_v29  ;;  %4021 = vmatprep.subr.bf16.mxu0 %v11393_v27  ;;  %v11460_v27 = vld [vmem:[%s15396_s5 + $0x248] ss:$16 sps:$4 sm:$0xff]  }
 0x5dc   : > { %4050 = vmatprep.subr.bf16.mxu1 %v11396_v28  ;;  %v11465_v28 = vld [vmem:[%s15396_s5 + $0x3a4] ss:$16 sps:$4 sm:$0xff]  }
 0x5de   : > { %4022 = vmatpush1.bf16.msra.mxu0 %v11391_v31  ;;  %4051 = vmatpush1.bf16.msra.mxu1 %v11394_v43  ;;  %v11463_v31 = vld [vmem:[%s15396_s5 + $0x3a0] ss:$16 sps:$4 sm:$0xff]   ;;  %v11466_v43 = vld [vmem:[%s15396_s5 + $0x268] ss:$16 sps:$4 sm:$0xff]  }
 0x5df   : > { %4023 = vmatprep.subr.bf16.mxu0 %v11399_v54  ;;  %4052 = vmatprep.subr.bf16.mxu1 %v11402_v32  ;;  %v11471_v54 = vld [vmem:[%s15396_s5 + $0xc] ss:$16 sps:$4 sm:$0xff]  }
 0x5e0   : > { %v11474_v32 = vld [vmem:[%s15396_s5 + $0x28c] ss:$16 sps:$4 sm:$0xff]  }
 0x5e2   : > { %4024 = vmatpush1.bf16.msra.mxu0 %v11397_v44  ;;  %4053 = vmatpush1.bf16.msra.mxu1 %v11400_v45  ;;  %v11469_v44 = vld [vmem:[%s15396_s5 + $0x8] ss:$16 sps:$4 sm:$0xff]   ;;  %v13526_v45 = vpack.c.bf16 %v13120_v53, %v13120_v53 }
 0x5e3   : > { %4025 = vmatprep.subr.bf16.mxu0 %v11405_v46  ;;  %4054 = vmatprep.subr.bf16.mxu1 %v11408_v47  ;;  %v11472_v46 = vld [vmem:[%s15396_s5 + $0x288] ss:$16 sps:$4 sm:$0xff]   ;;  %v11477_v47 = vld [vmem:[%s15396_s5 + $0x2c] ss:$16 sps:$4 sm:$0xff]  }
 0x5e4   : > { %v11475_v53 = vld [vmem:[%s15396_s5 + $0x28] ss:$16 sps:$4 sm:$0xff]  }
 0x5e6   : > { %4026 = vmatpush1.bf16.msra.mxu0 %v11403_v48  ;;  %4055 = vmatpush1.bf16.msra.mxu1 %v11406_v49  ;;  %v11480_v48 = vld [vmem:[%s15396_s5 + $0x2ac] ss:$16 sps:$4 sm:$0xff]   ;;  %v11478_v49 = vld [vmem:[%s15396_s5 + $0x2a8] ss:$16 sps:$4 sm:$0xff]  }
 0x5e7   : > { %4027 = vmatprep.subr.bf16.mxu0 %v11411_v50  ;;  %4056 = vmatprep.subr.bf16.mxu1 %v11414_v51  ;;  %v11483_v50 = vld [vmem:[%s15396_s5 + $0x4c] ss:$16 sps:$4 sm:$0xff]  }
 0x5e8   : > { %v11486_v51 = vld [vmem:[%s15396_s5 + $0x2cc] ss:$16 sps:$4 sm:$0xff]  }
 0x5ea   : > { %4028 = vmatpush1.bf16.msra.mxu0 %v11409_v52  ;;  %4057 = vmatpush1.bf16.msra.mxu1 %v11412_v55  ;;  %v11484_v52 = vld [vmem:[%s15396_s5 + $0x2c8] ss:$16 sps:$4 sm:$0xff]   ;;  %v11489_v55 = vld [vmem:[%s15396_s5 + $0x6c] ss:$16 sps:$4 sm:$0xff]  }
 0x5eb   : > { %4029 = vmatprep.subr.bf16.mxu0 %v11417_v56  ;;  %4058 = vmatprep.subr.bf16.mxu1 %v11420_v57  ;;  %v11492_v56 = vld [vmem:[%s15396_s5 + $0x2ec] ss:$16 sps:$4 sm:$0xff]   ;;  %v11487_v57 = vld [vmem:[%s15396_s5 + $0x68] ss:$16 sps:$4 sm:$0xff]  }
 0x5ee   : > { %4030 = vmatpush1.bf16.msra.mxu0 %v11415_v58  ;;  %4059 = vmatpush1.bf16.msra.mxu1 %v11418_v59  ;;  %v11490_v58 = vld [vmem:[%s15396_s5 + $0x2e8] ss:$16 sps:$4 sm:$0xff]   ;;  %v11495_v59 = vld [vmem:[%s15396_s5 + $0x8c] ss:$16 sps:$4 sm:$0xff]  }
 0x5ef   : > { %4031 = vmatprep.subr.bf16.mxu0 %v11423_v60  ;;  %4060 = vmatprep.subr.bf16.mxu1 %v11426_v34  ;;  %v11498_v60 = vld [vmem:[%s15396_s5 + $0x30c] ss:$16 sps:$4 sm:$0xff]   ;;  %v11493_v34 = vld [vmem:[%s15396_s5 + $0x88] ss:$16 sps:$4 sm:$0xff]  }
 0x5f2   : > { %4032 = vmatpush1.bf16.msra.mxu0 %v11421_v61  ;;  %4061 = vmatpush1.bf16.msra.mxu1 %v11424_v62  ;;  %v11496_v61 = vld [vmem:[%s15396_s5 + $0x308] ss:$16 sps:$4 sm:$0xff]   ;;  %v11501_v62 = vld [vmem:[%s15396_s5 + $0xac] ss:$16 sps:$4 sm:$0xff]  }
 0x5f3   : > { %4033 = vmatprep.subr.bf16.mxu0 %v11429_v39  ;;  %4062 = vmatprep.subr.bf16.mxu1 %v11432_v1  ;;  %v11504_v39 = vld [vmem:[%s15396_s5 + $0x32c] ss:$16 sps:$4 sm:$0xff]   ;;  %v11499_v1 = vld [vmem:[%s15396_s5 + $0xa8] ss:$16 sps:$4 sm:$0xff]  }
 0x5f6   : > { %4034 = vmatpush1.bf16.msra.mxu0 %v11427_v3  ;;  %4063 = vmatpush1.bf16.msra.mxu1 %v11430_v40  ;;  %v11502_v3 = vld [vmem:[%s15396_s5 + $0x328] ss:$16 sps:$4 sm:$0xff]   ;;  %v11507_v40 = vld [vmem:[%s15396_s5 + $0xcc] ss:$16 sps:$4 sm:$0xff]  }
 0x5f7   : > { %4035 = vmatprep.subr.bf16.mxu0 %v11435_v2  ;;  %4064 = vmatprep.subr.bf16.mxu1 %v11438_v6  ;;  %v11510_v2 = vld [vmem:[%s15396_s5 + $0x34c] ss:$16 sps:$4 sm:$0xff]   ;;  %v11505_v6 = vld [vmem:[%s15396_s5 + $0xc8] ss:$16 sps:$4 sm:$0xff]  }
 0x5fa   : > { %4036 = vmatpush1.bf16.msra.mxu0 %v11433_v5  ;;  %4065 = vmatpush1.bf16.msra.mxu1 %v11436_v7  ;;  %v11508_v5 = vld [vmem:[%s15396_s5 + $0x348] ss:$16 sps:$4 sm:$0xff]   ;;  %v11513_v7 = vld [vmem:[%s15396_s5 + $0xec] ss:$16 sps:$4 sm:$0xff]  }
 0x5fb   : > { %4037 = vmatprep.subr.bf16.mxu0 %v11441_v8  ;;  %4066 = vmatprep.subr.bf16.mxu1 %v11444_v9  ;;  %v11516_v8 = vld [vmem:[%s15396_s5 + $0x36c] ss:$16 sps:$4 sm:$0xff]   ;;  %v11511_v9 = vld [vmem:[%s15396_s5 + $0xe8] ss:$16 sps:$4 sm:$0xff]  }
 0x5fe   : > { %4038 = vmatpush1.bf16.msra.mxu0 %v11439_v10  ;;  %4067 = vmatpush1.bf16.msra.mxu1 %v11442_v11  ;;  %v11514_v10 = vld [vmem:[%s15396_s5 + $0x368] ss:$16 sps:$4 sm:$0xff]   ;;  %v11519_v11 = vld [vmem:[%s15396_s5 + $0x10c] ss:$16 sps:$4 sm:$0xff]  }
 0x5ff   : > { %4068 = vmatprep.subr.bf16.mxu1 %v11447_v12  ;;  %4130 = vmatprep.subr.bf16.mxu0 %v11450_v14  ;;  %v11522_v12 = vld [vmem:[%s15396_s5 + $0x38c] ss:$16 sps:$4 sm:$0xff]   ;;  %v11517_v14 = vld [vmem:[%s15396_s5 + $0x108] ss:$16 sps:$4 sm:$0xff]  }
 0x601   : > { %4040 = vmatmul.mubr.bf16.vlgmr.msra.gmra.mrb[28].mxu0 %v13474_v19 }
 0x602   : > { %4069 = vmatpush1.bf16.msra.mxu1 %v11445_v17  ;;  %4131 = vmatpush1.bf16.msra.mxu0 %v11448_v18  ;;  %v11520_v17 = vld [vmem:[%s15396_s5 + $0x388] ss:$16 sps:$4 sm:$0xff]   ;;  %v11525_v18 = vld [vmem:[%s15396_s5 + $0x12c] ss:$16 sps:$4 sm:$0xff]  }
 0x603   : > { %9639 = vmatprep.mubr.msk.bf16.mxu0 %vm3236_vm8, %v13353_v29  ;;  %4070 = vmatprep.subr.bf16.mxu1 %v11453_v21  ;;  %v11468_v29 = vld [vmem:[%s15396_s5 + $0x26c] ss:$16 sps:$4 sm:$0xff]  }
 0x604   : > { %4132 = vmatprep.subr.bf16.mxu0 %v11456_v22  ;;  %v11528_v21 = vld [vmem:[%s15396_s5 + $0x3ac] ss:$16 sps:$4 sm:$0xff]   ;;  %v11523_v22 = vld [vmem:[%s15396_s5 + $0x128] ss:$16 sps:$4 sm:$0xff]  }
 0x606   : > { %4071 = vmatpush1.bf16.msra.mxu1 %v11451_v23  ;;  %4133 = vmatpush1.bf16.msra.mxu0 %v11454_v30  ;;  %v11526_v23 = vld [vmem:[%s15396_s5 + $0x3a8] ss:$16 sps:$4 sm:$0xff]   ;;  %v11531_v30 = vld [vmem:[%s15396_s5 + $0x14c] ss:$16 sps:$4 sm:$0xff]  }
 0x607   : > { %4072 = vmatprep.subr.bf16.mxu1 %v11459_v24  ;;  %4134 = vmatprep.subr.bf16.mxu0 %v11462_v25  ;;  %v11529_v24 = vld [vmem:[%s15396_s5 + $0x148] ss:$16 sps:$4 sm:$0xff]   ;;  %v11534_v25 = vld [vmem:[%s15396_s5 + $0x16c] ss:$16 sps:$4 sm:$0xff]  }
 0x60a   : > { %4073 = vmatpush1.bf16.msra.mxu1 %v11457_v26  ;;  %4135 = vmatpush1.bf16.msra.mxu0 %v11460_v27  ;;  %v11532_v26 = vld [vmem:[%s15396_s5 + $0x168] ss:$16 sps:$4 sm:$0xff]   ;;  %v11537_v27 = vld [vmem:[%s15396_s5 + $0x18c] ss:$16 sps:$4 sm:$0xff]  }
 0x60b   : > { %4074 = vmatprep.subr.bf16.mxu1 %v11465_v28  ;;  %4136 = vmatprep.subr.bf16.mxu0 %v11468_v29  ;;  %v9640_v28 = vld [vmem:[%s15395_s4 + $0x8] sm:$0xf] }
 0x60c   : > { %v11538_v29 = vld [vmem:[%s15396_s5 + $0x1a8] ss:$16 sps:$4 sm:$0xff]  }
 0x60e   : > { %4075 = vmatpush1.bf16.msra.mxu1 %v11463_v31  ;;  %4137 = vmatpush1.bf16.msra.mxu0 %v11466_v43  ;;  %v11543_v31 = vld [vmem:[%s15396_s5 + $0x1cc] ss:$16 sps:$4 sm:$0xff]   ;;  %v11541_v43 = vld [vmem:[%s15396_s5 + $0x1c8] ss:$16 sps:$4 sm:$0xff]  }
 0x60f   : > { %4089 = vmatprep.subr.bf16.mxu1 %v11471_v54  ;;  %4138 = vmatprep.subr.bf16.mxu0 %v11474_v32  ;;  %v11546_v54 = vld [vmem:[%s15396_s5 + $0x1ec] ss:$16 sps:$4 sm:$0xff]   ;;  %v11544_v32 = vld [vmem:[%s15396_s5 + $0x1e8] ss:$16 sps:$4 sm:$0xff]  }
 0x611   : > { %4081 = vmatmul.mubr.bf16.vlgmr.msra.gmra.mrb[32].mxu1 %v13526_v45 }
 0x612   : > { %4090 = vmatpush1.bf16.msra.mxu1 %v11469_v44  ;;  %4121 = vmatprep.mubr.bf16.mxu1 %v13275_v63  ;;  %v11481_v63 = vld [vmem:[%s15396_s5 + $0x48] ss:$16 sps:$4 sm:$0xff]   ;;  %v11547_v44 = vld [vmem:[%s15396_s5 + $0x780] ss:$16 sps:$4 sm:$0xff]  }
 0x613   : > { %4139 = vmatpush1.bf16.msra.mxu0 %v11472_v46  ;;  %4091 = vmatprep.subr.bf16.mxu1 %v11477_v47  ;;  %v11552_v46 = vld [vmem:[%s15396_s5 + $0x7a4] ss:$16 sps:$4 sm:$0xff]  }
 0x614   : > { %4140 = vmatprep.subr.bf16.mxu0 %v11480_v48 }
 0x616   : > { %4092 = vmatpush1.bf16.msra.mxu1 %v11475_v53  ;;  %v11553_v53 = vld [vmem:[%s15396_s5 + $0x7c0] ss:$16 sps:$4 sm:$0xff]  }
 0x617   : > { %4141 = vmatpush1.bf16.msra.mxu0 %v11478_v49  ;;  %4093 = vmatprep.subr.bf16.mxu1 %v11483_v50  ;;  %v11558_v50 = vld [vmem:[%s15396_s5 + $0x7e4] ss:$16 sps:$4 sm:$0xff]  }
 0x618   : > { %4142 = vmatprep.subr.bf16.mxu0 %v11486_v51  ;;  %v11556_v51 = vld [vmem:[%s15396_s5 + $0x7e0] ss:$16 sps:$4 sm:$0xff]  }
 0x61a   : > { %4094 = vmatpush1.bf16.msra.mxu1 %v11481_v63  ;;  %v11559_v63 = vld [vmem:[%s15396_s5 + $0x800] ss:$16 sps:$4 sm:$0xff]  }
 0x61b   : > { %4143 = vmatpush1.bf16.msra.mxu0 %v11484_v52  ;;  %4095 = vmatprep.subr.bf16.mxu1 %v11489_v55  ;;  %v11561_v52 = vld [vmem:[%s15396_s5 + $0x804] ss:$16 sps:$4 sm:$0xff]  }
 0x61c   : > { %4144 = vmatprep.subr.bf16.mxu0 %v11492_v56  ;;  %v11564_v55 = vld [vmem:[%s15396_s5 + $0x824] ss:$16 sps:$4 sm:$0xff]   ;;  %v11562_v56 = vld [vmem:[%s15396_s5 + $0x820] ss:$16 sps:$4 sm:$0xff]  }
 0x61e   : > { %4096 = vmatpush1.bf16.msra.mxu1 %v11487_v57  ;;  %v11574_v57 = vld [vmem:[%s15396_s5 + $0x980] ss:$16 sps:$4 sm:$0xff]  }
 0x61f   : > { %4145 = vmatpush1.bf16.msra.mxu0 %v11490_v58  ;;  %4097 = vmatprep.subr.bf16.mxu1 %v11495_v59  ;;  %v11576_v58 = vld [vmem:[%s15396_s5 + $0x984] ss:$16 sps:$4 sm:$0xff]  }
 0x620   : > { %4146 = vmatprep.subr.bf16.mxu0 %v11498_v60  ;;  %v11567_v59 = vld [vmem:[%s15396_s5 + $0x844] ss:$16 sps:$4 sm:$0xff]  }
 0x622   : > { %4098 = vmatpush1.bf16.msra.mxu1 %v11493_v34  ;;  %v11582_v34 = vld [vmem:[%s15396_s5 + $0x9a4] ss:$16 sps:$4 sm:$0xff]  }
 0x623   : > { %4147 = vmatpush1.bf16.msra.mxu0 %v11496_v61  ;;  %4099 = vmatprep.subr.bf16.mxu1 %v11501_v62 }
 0x624   : > { %4148 = vmatprep.subr.bf16.mxu0 %v11504_v39  ;;  %v11580_v39 = vld [vmem:[%s15396_s5 + $0x9a0] ss:$16 sps:$4 sm:$0xff]  }
 0x626   : > { %4100 = vmatpush1.bf16.msra.mxu1 %v11499_v1 }
 0x627   : > { %4149 = vmatpush1.bf16.msra.mxu0 %v11502_v3  ;;  %4101 = vmatprep.subr.bf16.mxu1 %v11507_v40  ;;  %v11565_v40 = vld [vmem:[%s15396_s5 + $0x840] ss:$16 sps:$4 sm:$0xff]  }
 0x628   : > { %4150 = vmatprep.subr.bf16.mxu0 %v11510_v2  ;;  %v11588_v2 = vld [vmem:[%s15396_s5 + $0x9c4] ss:$16 sps:$4 sm:$0xff]  }
 0x62a   : > { %4102 = vmatpush1.bf16.msra.mxu1 %v11505_v6 }
 0x62b   : > { %4151 = vmatpush1.bf16.msra.mxu0 %v11508_v5  ;;  %4103 = vmatprep.subr.bf16.mxu1 %v11513_v7  ;;  %v11570_v5 = vld [vmem:[%s15396_s5 + $0x864] ss:$16 sps:$4 sm:$0xff]   ;;  %v11586_v7 = vld [vmem:[%s15396_s5 + $0x9c0] ss:$16 sps:$4 sm:$0xff]  }
 0x62c   : > { %4152 = vmatprep.subr.bf16.mxu0 %v11516_v8  ;;  %v11568_v8 = vld [vmem:[%s15396_s5 + $0x860] ss:$16 sps:$4 sm:$0xff]  }
 0x62e   : > { %4104 = vmatpush1.bf16.msra.mxu1 %v11511_v9  ;;  %v11594_v9 = vld [vmem:[%s15396_s5 + $0x9e4] ss:$16 sps:$4 sm:$0xff]  }
 0x62f   : > { %4153 = vmatpush1.bf16.msra.mxu0 %v11514_v10  ;;  %4105 = vmatprep.subr.bf16.mxu1 %v11519_v11  ;;  %v11573_v10 = vld [vmem:[%s15396_s5 + $0x884] ss:$16 sps:$4 sm:$0xff]   ;;  %v11592_v11 = vld [vmem:[%s15396_s5 + $0x9e0] ss:$16 sps:$4 sm:$0xff]  }
 0x630   : > { %4154 = vmatprep.subr.bf16.mxu0 %v11522_v12  ;;  %v11571_v12 = vld [vmem:[%s15396_s5 + $0x880] ss:$16 sps:$4 sm:$0xff]  }
 0x632   : > { %4106 = vmatpush1.bf16.msra.mxu1 %v11517_v14  ;;  %v11600_v14 = vld [vmem:[%s15396_s5 + $0xa04] ss:$16 sps:$4 sm:$0xff]  }
 0x633   : > { %4155 = vmatpush1.bf16.msra.mxu0 %v11520_v17  ;;  %4107 = vmatprep.subr.bf16.mxu1 %v11525_v18  ;;  %v11579_v17 = vld [vmem:[%s15396_s5 + $0x8a4] ss:$16 sps:$4 sm:$0xff]   ;;  %v11598_v18 = vld [vmem:[%s15396_s5 + $0xa00] ss:$16 sps:$4 sm:$0xff]  }
 0x634   : > { %4156 = vmatprep.subr.bf16.mxu0 %v11528_v21  ;;  %v11577_v21 = vld [vmem:[%s15396_s5 + $0x8a0] ss:$16 sps:$4 sm:$0xff]  }
 0x636   : > { %4108 = vmatpush1.bf16.msra.mxu1 %v11523_v22  ;;  %v11585_v22 = vld [vmem:[%s15396_s5 + $0x8c4] ss:$16 sps:$4 sm:$0xff]  }
 0x637   : > { %4157 = vmatpush1.bf16.msra.mxu0 %v11526_v23  ;;  %4109 = vmatprep.subr.bf16.mxu1 %v11531_v30  ;;  %v11583_v23 = vld [vmem:[%s15396_s5 + $0x8c0] ss:$16 sps:$4 sm:$0xff]   ;;  %v11591_v30 = vld [vmem:[%s15396_s5 + $0x8e4] ss:$16 sps:$4 sm:$0xff]  }
 0x638   : > { %4176 = vmatprep.subr.bf16.mxu0 %v12887_v13  ;;  %v11535_v13 = vld [vmem:[%s15396_s5 + $0x188] ss:$16 sps:$4 sm:$0xff]  }
 0x63a   : > { %4163 = vmatmul.mubr.bf16.vlgmr.msra.gmra.mrb[32].mxu0 %v13526_v45  ;;  %4110 = vmatpush1.bf16.msra.mxu1 %v11529_v24  ;;  %v11549_v45 = vld [vmem:[%s15396_s5 + $0x784] ss:$16 sps:$4 sm:$0xff]   ;;  %v11589_v24 = vld [vmem:[%s15396_s5 + $0x8e0] ss:$16 sps:$4 sm:$0xff]  }
 0x63b   : > { %4177 = vmatpush1.bf16.msra.mxu0 %v12892_v15  ;;  %4111 = vmatprep.subr.bf16.mxu1 %v11534_v25  ;;  %v11540_v15 = vld [vmem:[%s15396_s5 + $0x1ac] ss:$16 sps:$4 sm:$0xff]   ;;  %v11597_v25 = vld [vmem:[%s15396_s5 + $0x904] ss:$16 sps:$4 sm:$0xff]  }
 0x63c   : > { %4208 = vmatprep.mubr.bf16.mxu0 %v12209_v4  ;;  %4986 = vmatprep.subr.bf16.mxu0 %v11549_v45 }
 0x63e   : > { %4112 = vmatpush1.bf16.msra.mxu1 %v11532_v26  ;;  %v11595_v26 = vld [vmem:[%s15396_s5 + $0x900] ss:$16 sps:$4 sm:$0xff]  }
 0x63f   : > { %4113 = vmatprep.subr.bf16.mxu1 %v11537_v27  ;;  %v11603_v27 = vld [vmem:[%s15396_s5 + $0x924] ss:$16 sps:$4 sm:$0xff]  }
 0x642   : > { %9641 = vmatmul.mubr.msk.bf16.vlgmr.msra.gmra.mrb[36].mxu0 %vm2198_vm7, %v9640_v28  ;;  %4114 = vmatpush1.bf16.msra.mxu1 %v11535_v13  ;;  %v11606_v13 = vld [vmem:[%s15396_s5 + $0xa24] ss:$16 sps:$4 sm:$0xff]  }
 0x643   : > { %4115 = vmatprep.subr.bf16.mxu1 %v11540_v15  ;;  %4987 = vmatpush1.bf16.msra.mxu0 %v11547_v44  ;;  %v11604_v15 = vld [vmem:[%s15396_s5 + $0xa20] ss:$16 sps:$4 sm:$0xff]   ;;  %v11618_v44 = vld [vmem:[%s15396_s5 + $0xa64] ss:$16 sps:$4 sm:$0xff]  }
 0x644   : > { %4988 = vmatprep.subr.bf16.mxu0 %v11552_v46  ;;  %v11613_v46 = vld [vmem:[%s15396_s5 + $0x960] ss:$16 sps:$4 sm:$0xff]  }
 0x646   : > { %4116 = vmatpush1.bf16.msra.mxu1 %v11538_v29  ;;  %v11609_v29 = vld [vmem:[%s15396_s5 + $0x944] ss:$16 sps:$4 sm:$0xff]  }
 0x647   : > { %4117 = vmatprep.subr.bf16.mxu1 %v11543_v31  ;;  %v11612_v31 = vld [vmem:[%s15396_s5 + $0xa44] ss:$16 sps:$4 sm:$0xff]  }
 0x64a   : > { %4118 = vmatpush1.bf16.msra.mxu1 %v11541_v43  ;;  %v11607_v43 = vld [vmem:[%s15396_s5 + $0x940] ss:$16 sps:$4 sm:$0xff]  }
 0x64b   : > { %4119 = vmatprep.subr.bf16.mxu1 %v11546_v54  ;;  %v11610_v54 = vld [vmem:[%s15396_s5 + $0xa40] ss:$16 sps:$4 sm:$0xff]  }
 0x64e   : > { %4120 = vmatpush1.bf16.msra.mxu1 %v11544_v32  ;;  %v11615_v32 = vld [vmem:[%s15396_s5 + $0x964] ss:$16 sps:$4 sm:$0xff]  }
 0x64f   : > { %4217 = vmatprep.subr.bf16.mxu1 %v12896_v16  ;;  %v11550_v16 = vld [vmem:[%s15396_s5 + $0x7a0] ss:$16 sps:$4 sm:$0xff]  }
 0x650   : > { %4989 = vmatpush1.bf16.msra.mxu0 %v11550_v16  ;;  %v11616_v16 = vld [vmem:[%s15396_s5 + $0xa60] ss:$16 sps:$4 sm:$0xff]  }
 0x651   : > { %4122 = vmatmul.mubr.bf16.vlgmr.msra.gmra.mrb[36].mxu1 %v13474_v19 }
 0x652   : > { %4218 = vmatpush1.bf16.msra.mxu1 %v12910_v20  ;;  %4249 = vmatprep.mubr.bf16.mxu1 %v12209_v4  ;;  %v11555_v20 = vld [vmem:[%s15396_s5 + $0x7c4] ss:$16 sps:$4 sm:$0xff]  }
 0x653   : > { %4990 = vmatprep.subr.bf16.mxu0 %v11555_v20  ;;  %5027 = vmatprep.subr.bf16.mxu1 %v11576_v58  ;;  %v11645_v58 = vld [vmem:[%s15396_s5 + $0xb04] ss:$16 sps:$4 sm:$0xff]  }
 0x654   : > { %4991 = vmatpush1.bf16.msra.mxu0 %v11553_v53  ;;  %v11624_v53 = vld [vmem:[%s15396_s5 + $0x98c] ss:$16 sps:$4 sm:$0xff]  }
 0x655   : > { %4992 = vmatprep.subr.bf16.mxu0 %v11558_v50  ;;  %v11625_v50 = vld [vmem:[%s15396_s5 + $0xaa0] ss:$16 sps:$4 sm:$0xff]  }
 0x658   : > { %4993 = vmatpush1.bf16.msra.mxu0 %v11556_v51  ;;  %v11627_v51 = vld [vmem:[%s15396_s5 + $0xaa4] ss:$16 sps:$4 sm:$0xff]  }
 0x659   : > { %9642 = vmatmul.mubr.msk.bf16.vlgmr.msra.gmra.mrb[40].mxu1 %vm2198_vm7, %v9640_v28  ;;  %4994 = vmatprep.subr.bf16.mxu0 %v11561_v52  ;;  %v11601_v28 = vld [vmem:[%s15396_s5 + $0x920] ss:$16 sps:$4 sm:$0xff]   ;;  %v11633_v52 = vld [vmem:[%s15396_s5 + $0xac4] ss:$16 sps:$4 sm:$0xff]  }
 0x65a   : > { %5028 = vmatpush1.bf16.msra.mxu1 %v11574_v57  ;;  %v11643_v57 = vld [vmem:[%s15396_s5 + $0xb00] ss:$16 sps:$4 sm:$0xff]  }
 0x65b   : > { %5029 = vmatprep.subr.bf16.mxu1 %v11582_v34 }
 0x65c   : > { %v3274_v19 = vpop.f32.mrb[20].mxu0  ;;  %4995 = vmatpush1.bf16.msra.mxu0 %v11559_v63  ;;  %v11631_v63 = vld [vmem:[%s15396_s5 + $0xac0] ss:$16 sps:$4 sm:$0xff]  }
 0x65d   : > { %v3276_v47 = vpop.f32.mrb[21].mxu0  ;;  %4996 = vmatprep.subr.bf16.mxu0 %v11564_v55  ;;  %v11639_v55 = vld [vmem:[%s15396_s5 + $0xae4] ss:$16 sps:$4 sm:$0xff]  }
 0x65e   : > { %v3278_v48 = vpop.f32.mrb[22].mxu0  ;;  %5030 = vmatpush1.bf16.msra.mxu1 %v11580_v39  ;;  %v11649_v39 = vld [vmem:[%s15396_s5 + $0xb20] ss:$16 sps:$4 sm:$0xff]  }
 0x65f   : > { %v3279_v49 = vpop.f32.mrb[23].mxu0  ;;  %5031 = vmatprep.subr.bf16.mxu1 %v11588_v2  ;;  %v11621_v48 = vld [vmem:[%s15396_s5 + $0xa84] ss:$16 sps:$4 sm:$0xff]  }
 0x660   : > { %4997 = vmatpush1.bf16.msra.mxu0 %v11562_v56  ;;  %v11619_v49 = vld [vmem:[%s15396_s5 + $0xa80] ss:$16 sps:$4 sm:$0xff]  }
 0x661   : > { %4998 = vmatprep.subr.bf16.mxu0 %v11567_v59  ;;  %v11637_v56 = vld [vmem:[%s15396_s5 + $0xae0] ss:$16 sps:$4 sm:$0xff]  }
 0x662   : > { %5032 = vmatpush1.bf16.msra.mxu1 %v11586_v7 }
 0x663   : > { %5033 = vmatprep.subr.bf16.mxu1 %v11594_v9 }
 0x664   : > { %4999 = vmatpush1.bf16.msra.mxu0 %v11565_v40 }
 0x665   : > { %5000 = vmatprep.subr.bf16.mxu0 %v11570_v5 }
 0x666   : > { %5034 = vmatpush1.bf16.msra.mxu1 %v11592_v11 }
 0x667   : > { %5035 = vmatprep.subr.bf16.mxu1 %v11600_v14 }
 0x668   : > { %5001 = vmatpush1.bf16.msra.mxu0 %v11568_v8 }
 0x669   : > { %5002 = vmatprep.subr.bf16.mxu0 %v11573_v10 }
 0x66a   : > { %5036 = vmatpush1.bf16.msra.mxu1 %v11598_v18 }
 0x66b   : > { %5037 = vmatprep.subr.bf16.mxu1 %v11606_v13 }
 0x66c   : > { %v3315_v60 = vpop.f32.mrb[24].mxu1  ;;  %5003 = vmatpush1.bf16.msra.mxu0 %v11571_v12 }
 0x66d   : > { %v13738_v61 = vadd.f32 %v3315_v60, %v3274_v19  ;;  %v3317_v62 = vpop.f32.mrb[25].mxu1  ;;  %5004 = vmatprep.subr.bf16.mxu0 %v11579_v17  ;;  %v11651_v60 = vld [vmem:[%s15396_s5 + $0xb24] ss:$16 sps:$4 sm:$0xff]  }
 0x66e   : > { %v13743_v1 = vadd.f32 %v3317_v62, %v3276_v47  ;;  %v3319_v3 = vpop.f32.mrb[26].mxu1  ;;  %5038 = vmatpush1.bf16.msra.mxu1 %v11604_v15  ;;  %v11630_v15 = vld [vmem:[%s15396_s5 + $0x9ac] ss:$16 sps:$4 sm:$0xff]  }
 0x66f   : > { %v3320_v6 = vpop.f32.mrb[27].mxu1  ;;  %5039 = vmatprep.subr.bf16.mxu1 %v11612_v31  ;;  %v11628_v31 = vld [vmem:[%s15396_s5 + $0x9a8] ss:$16 sps:$4 sm:$0xff]  }
 0x670   : > { %5005 = vmatpush1.bf16.msra.mxu0 %v11577_v21  ;;  %v11657_v6 = vld [vmem:[%s15396_s5 + $0x78c] ss:$16 sps:$4 sm:$0xff]  }
 0x671   : > { %5006 = vmatprep.subr.bf16.mxu0 %v11585_v22 }
 0x672   : > { %5040 = vmatpush1.bf16.msra.mxu1 %v11610_v54  ;;  %v11634_v54 = vld [vmem:[%s15396_s5 + $0x9c8] ss:$16 sps:$4 sm:$0xff]  }
 0x673   : > { %5041 = vmatprep.subr.bf16.mxu1 %v11618_v44  ;;  %v11640_v44 = vld [vmem:[%s15396_s5 + $0x9e8] ss:$16 sps:$4 sm:$0xff]  }
 0x674   : > { %5007 = vmatpush1.bf16.msra.mxu0 %v11583_v23 }
 0x675   : > { %5008 = vmatprep.subr.bf16.mxu0 %v11591_v30 }
 0x676   : > { %5042 = vmatpush1.bf16.msra.mxu1 %v11616_v16 }
 0x677   : > { %5043 = vmatprep.subr.bf16.mxu1 %v11621_v48 }
 0x678   : > { %5009 = vmatpush1.bf16.msra.mxu0 %v11589_v24 }
 0x679   : > { %5010 = vmatprep.subr.bf16.mxu0 %v11597_v25 }
 0x67a   : > { %5044 = vmatpush1.bf16.msra.mxu1 %v11619_v49  ;;  %v11646_v49 = vld [vmem:[%s15396_s5 + $0xa08] ss:$16 sps:$4 sm:$0xff]  }
 0x67b   : > { %5045 = vmatprep.subr.bf16.mxu1 %v11627_v51  ;;  %v11654_v51 = vld [vmem:[%s15396_s5 + $0xa2c] ss:$16 sps:$4 sm:$0xff]  }
 0x67c   : > { %5011 = vmatpush1.bf16.msra.mxu0 %v11595_v26 }
 0x67d   : > { %5012 = vmatprep.subr.bf16.mxu0 %v11603_v27 }
 0x67e   : > { %5046 = vmatpush1.bf16.msra.mxu1 %v11625_v50 }
 0x67f   : > { %5047 = vmatprep.subr.bf16.mxu1 %v11633_v52 }
 0x680   : > { %5013 = vmatpush1.bf16.msra.mxu0 %v11601_v28 }
 0x681   : > { %5014 = vmatprep.subr.bf16.mxu0 %v11609_v29 }
 0x682   : > { %5048 = vmatpush1.bf16.msra.mxu1 %v11631_v63  ;;  %v11652_v63 = vld [vmem:[%s15396_s5 + $0xa28] ss:$16 sps:$4 sm:$0xff]  }
 0x683   : > { %5049 = vmatprep.subr.bf16.mxu1 %v11639_v55  ;;  %v11660_v55 = vld [vmem:[%s15396_s5 + $0xa4c] ss:$16 sps:$4 sm:$0xff]  }
 0x684   : > { %5015 = vmatpush1.bf16.msra.mxu0 %v11607_v43  ;;  %v11636_v43 = vld [vmem:[%s15396_s5 + $0x9cc] ss:$16 sps:$4 sm:$0xff]  }
 0x685   : > { %5016 = vmatprep.subr.bf16.mxu0 %v11615_v32  ;;  %v11642_v32 = vld [vmem:[%s15396_s5 + $0x9ec] ss:$16 sps:$4 sm:$0xff]  }
 0x686   : > { %5050 = vmatpush1.bf16.msra.mxu1 %v11637_v56 }
 0x687   : > { %5051 = vmatprep.subr.bf16.mxu1 %v11645_v58 }
 0x688   : > { %5017 = vmatpush1.bf16.msra.mxu0 %v11613_v46  ;;  %v11648_v46 = vld [vmem:[%s15396_s5 + $0xa0c] ss:$16 sps:$4 sm:$0xff]  }
 0x689   : > { %5109 = vmatprep.subr.bf16.mxu0 %v11624_v53 }
 0x68a   : > { %5052 = vmatpush1.bf16.msra.mxu1 %v11643_v57 }
 0x68b   : > { %5053 = vmatprep.subr.bf16.mxu1 %v11651_v60 }
 0x68e   : > { %5054 = vmatpush1.bf16.msra.mxu1 %v11649_v39  ;;  %v11663_v39 = vld [vmem:[%s15396_s5 + $0x7ac] ss:$16 sps:$4 sm:$0xff]  }
 0x68f   : > { %5068 = vmatprep.subr.bf16.mxu1 %v11657_v6  ;;  %v11669_v6 = vld [vmem:[%s15396_s5 + $0x7cc] ss:$16 sps:$4 sm:$0xff]  }
 0x694   : > { %v3397_v45 = vpop.f32.mrb[24].mxu0 }
 0x695   : > { %v3399_v20 = vpop.f32.mrb[25].mxu0 }
 0x696   : > { %v3401_v19 = vpop.f32.mrb[26].mxu0 }
 0x697   : > { %v3402_v47 = vpop.f32.mrb[27].mxu0 }
 0x6ac   : > { %v3356_v59 = vpop.f32.mrb[28].mxu1 }
 0x6ad   : > { %v3398_v34 = vadd.f32 %v3397_v45, %v3356_v59  ;;  %v3358_v62 = vpop.f32.mrb[29].mxu1  ;;  %v11655_v59 = vld [vmem:[%s15396_s5 + $0x788] ss:$16 sps:$4 sm:$0xff]  }
 0x6ae   : > { %v3400_v3 = vadd.f32 %v3399_v20, %v3358_v62  ;;  %v3360_v40 = vpop.f32.mrb[30].mxu1  ;;  %v11658_v62 = vld [vmem:[%s15396_s5 + $0xa48] ss:$16 sps:$4 sm:$0xff]  }
 0x6af   : > { %v3361_v2 = vpop.f32.mrb[31].mxu1  ;;  %v11661_v40 = vld [vmem:[%s15396_s5 + $0x7a8] ss:$16 sps:$4 sm:$0xff]  }
 0x6b0   : > { %v11664_v2 = vld [vmem:[%s15396_s5 + $0xa68] ss:$16 sps:$4 sm:$0xff]  }
 0x6d4   : > { %v4041_v5 = vpop.f32.mrb[28].mxu0 }
 0x6d5   : > { %v4042_v7 = vadd.f32 %v4041_v5, %v13738_v61  ;;  %v4043_v8 = vpop.f32.mrb[29].mxu0  ;;  %v11672_v5 = vld [vmem:[%s15396_s5 + $0xa8c] ss:$16 sps:$4 sm:$0xff]  }
 0x6d6   : > { %v4044_v9 = vadd.f32 %v4043_v8, %v13743_v1  ;;  %v4045_v10 = vpop.f32.mrb[30].mxu0  ;;  %v11622_v1 = vld [vmem:[%s15396_s5 + $0x988] ss:$16 sps:$4 sm:$0xff]  }
 0x6d7   : > { %v4046_v11 = vpop.f32.mrb[31].mxu0  ;;  %v11670_v8 = vld [vmem:[%s15396_s5 + $0xa88] ss:$16 sps:$4 sm:$0xff]   ;;  %v11678_v10 = vld [vmem:[%s15396_s5 + $0xaac] ss:$16 sps:$4 sm:$0xff]  }
 0x6d8   : > { %v11673_v11 = vld [vmem:[%s15396_s5 + $0x7e8] ss:$16 sps:$4 sm:$0xff]  }
 0x6e4   : > { %v4082_v12 = vpop.f32.mrb[32].mxu1 }
 0x6e5   : > { %v13882_v14 = vadd.f32 %v4082_v12, %v4042_v7  ;;  %v4084_v17 = vpop.f32.mrb[33].mxu1  ;;  %v11667_v7 = vld [vmem:[%s15396_s5 + $0x7c8] ss:$16 sps:$4 sm:$0xff]  }
 0x6e6   : > { %v13884_v18 = vadd.f32 %v4084_v17, %v4044_v9  ;;  %v4086_v21 = vpop.f32.mrb[34].mxu1  ;;  %v11675_v9 = vld [vmem:[%s15396_s5 + $0x7ec] ss:$16 sps:$4 sm:$0xff]   ;;  %v11676_v12 = vld [vmem:[%s15396_s5 + $0xaa8] ss:$16 sps:$4 sm:$0xff]  }
 0x6e7   : > { %v4087_v22 = vpop.f32.mrb[35].mxu1  ;;  %v11681_v17 = vld [vmem:[%s15396_s5 + $0x80c] ss:$16 sps:$4 sm:$0xff]  }
 0x6e8   : > { %v11684_v21 = vld [vmem:[%s15396_s5 + $0xacc] ss:$16 sps:$4 sm:$0xff]   ;;  %v11679_v22 = vld [vmem:[%s15396_s5 + $0x808] ss:$16 sps:$4 sm:$0xff]  }
 0x70d   : > { %v4164_v23 = vpop.f32.mrb[32].mxu0 }
 0x70e   : > { %v4166_v30 = vpop.f32.mrb[33].mxu0 }
 0x70f   : > { %v4168_v24 = vpop.f32.mrb[34].mxu0 }
 0x710   : > { %v4169_v25 = vpop.f32.mrb[35].mxu0  ;;  %v11690_v24 = vld [vmem:[%s15396_s5 + $0xaec] ss:$16 sps:$4 sm:$0xff]  }
 0x711   : > { %v11685_v25 = vld [vmem:[%s15396_s5 + $0x828] ss:$16 sps:$4 sm:$0xff]  }
 0x715   : > { %v4210_v26 = vpop.f32.mrb[36].mxu0 }
 0x716   : > { %v13886_v27 = vpack.c.bf16 %v4210_v26, %v4210_v26  ;;  %v4212_v61 = vpop.f32.mrb[37].mxu0  ;;  %v11688_v26 = vld [vmem:[%s15396_s5 + $0xae8] ss:$16 sps:$4 sm:$0xff]  }
 0x717   : > { %v4259_v13 = vpack.c.bf16 %v4212_v61, %v4212_v61  ;;  %v4214_v28 = vpop.f32.mrb[38].mxu0  ;;  %v11693_v61 = vld [vmem:[%s15396_s5 + $0x84c] ss:$16 sps:$4 sm:$0xff]  }
 0x718   : > { %v4215_v29 = vpop.f32.mrb[39].mxu0  ;;  %v11694_v28 = vld [vmem:[%s15396_s5 + $0xb08] ss:$16 sps:$4 sm:$0xff]  }
 0x719   : > { %5018 = vmatprep.mubr.bf16.mxu0 %v4259_v13  ;;  %v11702_v29 = vld [vmem:[%s15396_s5 + $0xb2c] ss:$16 sps:$4 sm:$0xff]  }
 0x71a   : > { %5019 = vmatmul.mubr.bf16.vlgmr.msra.gmra.mrb[40].mxu0 %v13886_v27 }
 0x71b   : > { %5110 = vmatpush1.bf16.msra.mxu0 %v11622_v1  ;;  %v11691_v1 = vld [vmem:[%s15396_s5 + $0x848] ss:$16 sps:$4 sm:$0xff]  }
 0x71c   : > { %5111 = vmatprep.subr.bf16.mxu0 %v11630_v15  ;;  %v11699_v15 = vld [vmem:[%s15396_s5 + $0x86c] ss:$16 sps:$4 sm:$0xff]  }
 0x71f   : > { %5112 = vmatpush1.bf16.msra.mxu0 %v11628_v31  ;;  %v11697_v31 = vld [vmem:[%s15396_s5 + $0x868] ss:$16 sps:$4 sm:$0xff]  }
 0x720   : > { %5113 = vmatprep.subr.bf16.mxu0 %v11636_v43  ;;  %v11700_v43 = vld [vmem:[%s15396_s5 + $0xb28] ss:$16 sps:$4 sm:$0xff]  }
 0x723   : > { %5114 = vmatpush1.bf16.msra.mxu0 %v11634_v54  ;;  %v11705_v54 = vld [vmem:[%s15396_s5 + $0x88c] ss:$16 sps:$4 sm:$0xff]  }
 0x724   : > { %v4123_v45 = vpop.f32.mrb[36].mxu1  ;;  %5115 = vmatprep.subr.bf16.mxu0 %v11642_v32  ;;  %v11703_v32 = vld [vmem:[%s15396_s5 + $0x888] ss:$16 sps:$4 sm:$0xff]  }
 0x725   : > { %v4124_v16 = vadd.f32 %v4123_v45, %v3398_v34  ;;  %v4125_v20 = vpop.f32.mrb[37].mxu1  ;;  %v11706_v45 = vld [vmem:[%s15396_s5 + $0x8a8] ss:$16 sps:$4 sm:$0xff]  }
 0x726   : > { %v4126_v19 = vadd.f32 %v4125_v20, %v3400_v3  ;;  %v4127_v47 = vpop.f32.mrb[38].mxu1  ;;  %v11666_v3 = vld [vmem:[%s15396_s5 + $0xa6c] ss:$16 sps:$4 sm:$0xff]  }
 0x727   : > { %v13913_v48 = vadd.f32 %v4164_v23, %v4124_v16  ;;  %5116 = vmatpush1.bf16.msra.mxu0 %v11640_v44  ;;  %v4128_v53 = vpop.f32.mrb[39].mxu1  ;;  %v11682_v23 = vld [vmem:[%s15396_s5 + $0xac8] ss:$16 sps:$4 sm:$0xff]   ;;  %v11708_v44 = vld [vmem:[%s15396_s5 + $0x8ac] ss:$16 sps:$4 sm:$0xff]  }
 0x728   : > { %v13918_v50 = vadd.f32 %v4166_v30, %v4126_v19  ;;  %5117 = vmatprep.subr.bf16.mxu0 %v11648_v46  ;;  %v11687_v30 = vld [vmem:[%s15396_s5 + $0x82c] ss:$16 sps:$4 sm:$0xff]   ;;  %v11709_v16 = vld [vmem:[%s15396_s5 + $0x8c8] ss:$16 sps:$4 sm:$0xff]  }
 0x729   : > { %v11711_v46 = vld [vmem:[%s15396_s5 + $0x8cc] ss:$16 sps:$4 sm:$0xff]   ;;  %v11712_v19 = vld [vmem:[%s15396_s5 + $0x8e8] ss:$16 sps:$4 sm:$0xff]  }
 0x72a   : > { %v11714_v20 = vld [vmem:[%s15396_s5 + $0x8ec] ss:$16 sps:$4 sm:$0xff]   ;;  %v11715_v53 = vld [vmem:[%s15396_s5 + $0x908] ss:$16 sps:$4 sm:$0xff]  }
 0x72b   : > { %5118 = vmatpush1.bf16.msra.mxu0 %v11646_v49  ;;  %v11717_v47 = vld [vmem:[%s15396_s5 + $0x90c] ss:$16 sps:$4 sm:$0xff]  }
 0x72c   : > { %v4251_v52 = vpop.f32.mrb[40].mxu1  ;;  %5119 = vmatprep.subr.bf16.mxu0 %v11654_v51  ;;  %v11720_v49 = vld [vmem:[%s15396_s5 + $0x92c] ss:$16 sps:$4 sm:$0xff]   ;;  %v11718_v51 = vld [vmem:[%s15396_s5 + $0x928] ss:$16 sps:$4 sm:$0xff]  }
 0x72d   : > { %v4253_v56 = vpop.f32.mrb[41].mxu1  ;;  %v13932_v60 = vpack.c.bf16 %v4251_v52, %v4251_v52  ;;  %v11721_v52 = vld [vmem:[%s15396_s5 + $0x948] ss:$16 sps:$4 sm:$0xff]  }
 0x72e   : > { %v4261_v57 = vpack.c.bf16 %v4253_v56, %v4253_v56  ;;  %v4255_v58 = vpop.f32.mrb[42].mxu1  ;;  %v11724_v56 = vld [vmem:[%s15396_s5 + $0x968] ss:$16 sps:$4 sm:$0xff]  }
 0x72f   : > { %5120 = vmatpush1.bf16.msra.mxu0 %v11652_v63  ;;  %v4256_v34 = vpop.f32.mrb[43].mxu1  ;;  %v11723_v63 = vld [vmem:[%s15396_s5 + $0x94c] ss:$16 sps:$4 sm:$0xff]  }
 0x730   : > { %9883 = vmatprep.mubr.msk.bf16.mxu1 %vm3236_vm8, %v4261_v57  ;;  %5121 = vmatprep.subr.bf16.mxu0 %v11660_v55  ;;  %v11726_v55 = vld [vmem:[%s15396_s5 + $0x96c] ss:$16 sps:$4 sm:$0xff]   ;;  %v14079_v34 = vld [vmem:[%s15397_s6] sm:$0xf] }
 0x731   : > { %9884 = vmatprep.mubr.msk.bf16.mxu0 %vm3236_vm8, %v4261_v57  ;;  %5060 = vmatmul.mubr.bf16.vlgmr.msra.gmra.mrb[44].mxu1 %v13932_v60 }
 0x732   : > { %5069 = vmatpush1.bf16.msra.mxu1 %v11655_v59  ;;  %5100 = vmatprep.mubr.bf16.mxu1 %v4259_v13  ;;  %v11696_v13 = vld [vmem:[%s15396_s5 + $0xb0c] ss:$16 sps:$4 sm:$0xff]  }
 0x733   : > { %5122 = vmatpush1.bf16.msra.mxu0 %v11658_v62  ;;  %5070 = vmatprep.subr.bf16.mxu1 %v11663_v39 }
 0x734   : > { %5123 = vmatprep.subr.bf16.mxu0 %v11666_v3  ;;  %v5159_v3 = vrot.slane %v14079_v34, %v12869_v37 }
 0x736   : > { %5071 = vmatpush1.bf16.msra.mxu1 %v11661_v40 }
 0x737   : > { %5124 = vmatpush1.bf16.msra.mxu0 %v11664_v2  ;;  %5072 = vmatprep.subr.bf16.mxu1 %v11669_v6 }
 0x738   : > { %5125 = vmatprep.subr.bf16.mxu0 %v11672_v5 }
 0x73a   : > { %5073 = vmatpush1.bf16.msra.mxu1 %v11667_v7 }
 0x73b   : > { %5126 = vmatpush1.bf16.msra.mxu0 %v11670_v8  ;;  %5074 = vmatprep.subr.bf16.mxu1 %v11675_v9 }
 0x73c   : > { %5127 = vmatprep.subr.bf16.mxu0 %v11678_v10 }
 0x73e   : > { %5075 = vmatpush1.bf16.msra.mxu1 %v11673_v11  ;;  %v5195_v11 = vsel %vm5193_vm9, 4294967295, %v12210_v33  ;;  %v14101_v33 = vld [vmem:[%s15398_s7] sm:$0x3] }
 0x73f   : > { %5128 = vmatpush1.bf16.msra.mxu0 %v11676_v12  ;;  %5076 = vmatprep.subr.bf16.mxu1 %v11681_v17 }
 0x740   : > { %5129 = vmatprep.subr.bf16.mxu0 %v11684_v21 }
 0x742   : > { %5077 = vmatpush1.bf16.msra.mxu1 %v11679_v22  ;;  %v14088_v22 = vsel %vm5194_vm10, %v5195_v11, 0 }
 0x743   : > { %5130 = vmatpush1.bf16.msra.mxu0 %v11682_v23  ;;  %5078 = vmatprep.subr.bf16.mxu1 %v11687_v30 }
 0x744   : > { %5131 = vmatprep.subr.bf16.mxu0 %v11690_v24  ;;  %v14114_v24 = vld [vmem:[%s15398_s7 + $0x2] sm:$0x3] }
 0x746   : > { %5079 = vmatpush1.bf16.msra.mxu1 %v11685_v25  ;;  %v11727_v25 = vld [vmem:[%s15399_s8 + $0x2a0] ss:$12 sps:$4 sm:$0xff]  }
 0x747   : > { %5132 = vmatpush1.bf16.msra.mxu0 %v11688_v26  ;;  %5080 = vmatprep.subr.bf16.mxu1 %v11693_v61  ;;  %v11732_v26 = vld [vmem:[%s15399_s8 + $0x2bc] ss:$12 sps:$4 sm:$0xff]   ;;  %v11730_v61 = vld [vmem:[%s15399_s8 + $0x2b8] ss:$12 sps:$4 sm:$0xff]  }
 0x748   : > { %5133 = vmatprep.subr.bf16.mxu0 %v11696_v13  ;;  %v11735_v13 = vld [vmem:[%s15399_s8 + $0x2d4] ss:$12 sps:$4 sm:$0xff]  }
 0x74a   : > { %5081 = vmatpush1.bf16.msra.mxu1 %v11691_v1  ;;  %v11733_v1 = vld [vmem:[%s15399_s8 + $0x2d0] ss:$12 sps:$4 sm:$0xff]  }
 0x74b   : > { %5134 = vmatpush1.bf16.msra.mxu0 %v11694_v28  ;;  %5082 = vmatprep.subr.bf16.mxu1 %v11699_v15  ;;  %v11738_v28 = vld [vmem:[%s15399_s8 + $0x2ec] ss:$12 sps:$4 sm:$0xff]  }
 0x74c   : > { %5135 = vmatprep.subr.bf16.mxu0 %v11702_v29 }
 0x74e   : > { %5083 = vmatpush1.bf16.msra.mxu1 %v11697_v31 }
 0x74f   : > { %5136 = vmatpush1.bf16.msra.mxu0 %v11700_v43  ;;  %5084 = vmatprep.subr.bf16.mxu1 %v11705_v54  ;;  %v11736_v43 = vld [vmem:[%s15399_s8 + $0x2e8] ss:$12 sps:$4 sm:$0xff]  }
 0x752   : > { %5142 = vmatmul.mubr.bf16.vlgmr.msra.gmra.mrb[44].mxu0 %v13932_v60  ;;  %5085 = vmatpush1.bf16.msra.mxu1 %v11703_v32  ;;  %v11741_v32 = vld [vmem:[%s15399_s8 + $0x304] ss:$12 sps:$4 sm:$0xff]  }
 0x753   : > { %5086 = vmatprep.subr.bf16.mxu1 %v11708_v44  ;;  %5241 = vmatprep.mubr.bf16.mxu0 %v12209_v4  ;;  %v11739_v44 = vld [vmem:[%s15399_s8 + $0x300] ss:$12 sps:$4 sm:$0xff]  }
 0x756   : > { %5087 = vmatpush1.bf16.msra.mxu1 %v11706_v45  ;;  %v11744_v45 = vld [vmem:[%s15399_s8 + $0x31c] ss:$12 sps:$4 sm:$0xff]  }
 0x757   : > { %5088 = vmatprep.subr.bf16.mxu1 %v11711_v46  ;;  %v11742_v46 = vld [vmem:[%s15399_s8 + $0x318] ss:$12 sps:$4 sm:$0xff]  }
 0x75a   : > { %5089 = vmatpush1.bf16.msra.mxu1 %v11709_v16  ;;  %v11747_v16 = vld [vmem:[%s15399_s8 + $0x334] ss:$12 sps:$4 sm:$0xff]  }
 0x75b   : > { %5090 = vmatprep.subr.bf16.mxu1 %v11714_v20  ;;  %v11745_v20 = vld [vmem:[%s15399_s8 + $0x330] ss:$12 sps:$4 sm:$0xff]  }
 0x75e   : > { %5091 = vmatpush1.bf16.msra.mxu1 %v11712_v19  ;;  %v11750_v19 = vld [vmem:[%s15399_s8 + $0x34c] ss:$12 sps:$4 sm:$0xff]  }
 0x75f   : > { %5092 = vmatprep.subr.bf16.mxu1 %v11717_v47  ;;  %v11748_v47 = vld [vmem:[%s15399_s8 + $0x348] ss:$12 sps:$4 sm:$0xff]  }
 0x762   : > { %5093 = vmatpush1.bf16.msra.mxu1 %v11715_v53  ;;  %v11753_v53 = vld [vmem:[%s15399_s8 + $0x364] ss:$12 sps:$4 sm:$0xff]  }
 0x763   : > { %5094 = vmatprep.subr.bf16.mxu1 %v11720_v49  ;;  %v11751_v49 = vld [vmem:[%s15399_s8 + $0x360] ss:$12 sps:$4 sm:$0xff]  }
 0x766   : > { %5095 = vmatpush1.bf16.msra.mxu1 %v11718_v51  ;;  %v11756_v51 = vld [vmem:[%s15399_s8 + $0x37c] ss:$12 sps:$4 sm:$0xff]  }
 0x767   : > { %5096 = vmatprep.subr.bf16.mxu1 %v11723_v63  ;;  %v11754_v63 = vld [vmem:[%s15399_s8 + $0x378] ss:$12 sps:$4 sm:$0xff]  }
 0x76a   : > { %5097 = vmatpush1.bf16.msra.mxu1 %v11721_v52  ;;  %v11759_v52 = vld [vmem:[%s15399_s8 + $0x394] ss:$12 sps:$4 sm:$0xff]  }
 0x76b   : > { %5098 = vmatprep.subr.bf16.mxu1 %v11726_v55  ;;  %v11757_v55 = vld [vmem:[%s15399_s8 + $0x390] ss:$12 sps:$4 sm:$0xff]  }
 0x76e   : > { %5099 = vmatpush1.bf16.msra.mxu1 %v11724_v56 }
 0x771   : > { %5101 = vmatmul.mubr.bf16.vlgmr.msra.gmra.mrb[48].mxu1 %v13886_v27  ;;  %v5163_v27 = vrot.slane %v14079_v34, %v12878_v41 }
 0x772   : > { %5282 = vmatprep.mubr.bf16.mxu1 %v12209_v4 }
 0x7ed   : > { %v5020_v57 = vpop.f32.mrb[40].mxu0 }
 0x7ee   : > { %v5022_v58 = vpop.f32.mrb[41].mxu0 }
 0x7ef   : > { %v5024_v59 = vpop.f32.mrb[42].mxu0 }
 0x7f0   : > { %v5025_v60 = vpop.f32.mrb[43].mxu0  ;;  %v5167_v59 = vrot.slane %v14079_v34, %v12872_v38 }
 0x804   : > { %v5061_v62 = vpop.f32.mrb[44].mxu1 }
 0x805   : > { %v5062_v39 = vadd.f32 %v5061_v62, %v5020_v57  ;;  %v5063_v40 = vpop.f32.mrb[45].mxu1  ;;  %v11762_v57 = vld [vmem:[%s15399_s8 + $0x3ac] ss:$12 sps:$4 sm:$0xff]  }
 0x806   : > { %v5064_v2 = vadd.f32 %v5063_v40, %v5022_v58  ;;  %v5065_v6 = vpop.f32.mrb[46].mxu1 }
 0x807   : > { %v5150_v5 = vadd.f32 %v5062_v39, %v13882_v14  ;;  %v5066_v7 = vpop.f32.mrb[47].mxu1  ;;  %v5171_v39 = vrot.slane %v14079_v34, %v2171_v42  ;;  %v11763_v42 = vld [vmem:[%s15399_s8 + $0x3c0] ss:$12 sps:$4 sm:$0xff]   ;;  %v11768_v34 = vld [vmem:[%s15399_s8 + $0x3dc] ss:$12 sps:$4 sm:$0xff]  }
 0x808   : > { %v5151_v8 = vadd.f32 %v5064_v2, %v13884_v18  ;;  %v11729_v18 = vld [vmem:[%s15399_s8 + $0x2a4] ss:$12 sps:$4 sm:$0xff]  }
 0x809   : > { %v5176_v9 = vadd.f32 %v5159_v3, %v5150_v5  ;;  %v11765_v5 = vld [vmem:[%s15399_s8 + $0x3c4] ss:$12 sps:$4 sm:$0xff]  }
 0x80a   : > { %v5177_v10 = vadd.f32 %v5163_v27, %v5151_v8  ;;  %v11760_v27 = vld [vmem:[%s15399_s8 + $0x3a8] ss:$12 sps:$4 sm:$0xff]  }
 0x80b   : > { %v5180_v12 = vmax.f32 %v5176_v9, 0.0 }
 0x80c   : > { %v5181_v17 = vmax.f32 %v5177_v10, 0.0  ;;  %v11766_v10 = vld [vmem:[%s15399_s8 + $0x3d8] ss:$12 sps:$4 sm:$0xff]  }
 0x80d   : > { %v5184_v21 = vpack.c.bf16 %v5180_v12, %v5180_v12 }
 0x80e   : > { %v5185_v23 = vpack.c.bf16 %v5181_v17, %v5181_v17  ;;  %v11769_v17 = vld [vmem:[%s15399_s8 + $0x3f0] ss:$12 sps:$4 sm:$0xff]  }
 0x80f   : > { %v14094_v14 = vand.u32 %v14088_v22, %v5184_v21  ;;  %v11771_v21 = vld [vmem:[%s15399_s8 + $0x3f4] ss:$12 sps:$4 sm:$0xff]  }
 0x810   : > { %v14091_v30 = vand.u32 %v14088_v22, %v5185_v23  ;;  %v11774_v23 = vld [vmem:[%s15399_s8 + $0x40c] ss:$12 sps:$4 sm:$0xff]  }
 0x812   : > { %5209 = vmatprep.subr.bf16.mxu0 %v14091_v30 }
 0x813   : > { %5210 = vmatpush1.bf16.msra.mxu0 %v14094_v14 }
 0x814   : > { %5412 = vmatprep.subr.bf16.mxu0 %v14091_v30 }
 0x816   : > { %9885 = vmatmul.mubr.msk.bf16.vlgmr.msra.gmra.mrb[48].mxu0 %vm5189_vm11, %v14101_v33 }
 0x817   : > { %5413 = vmatpush1.bf16.msra.mxu0 %v14094_v14  ;;  %5444 = vmatprep.mubr.bf16.mxu0 %v12209_v4 }
 0x818   : > { %6063 = vmatprep.subr.bf16.mxu0 %v11729_v18  ;;  %v11777_v18 = vld [vmem:[%s15399_s8 + $0x424] ss:$12 sps:$4 sm:$0xff]  }
 0x81e   : > { %9888 = vmatmul.mubr.msk.bf16.vlgmr.msra.gmra.mrb[52].mxu0 %vm5189_vm11, %v14114_v24 }
 0x81f   : > { %6064 = vmatpush1.bf16.msra.mxu0 %v11727_v25  ;;  %v11779_v25 = vld [vmem:[%s15399_s8 + $0x438] ss:$12 sps:$4 sm:$0xff]  }
 0x820   : > { %6065 = vmatprep.subr.bf16.mxu0 %v11732_v26  ;;  %v11785_v26 = vld [vmem:[%s15399_s8 + $0x454] ss:$12 sps:$4 sm:$0xff]  }
 0x823   : > { %6066 = vmatpush1.bf16.msra.mxu0 %v11730_v61  ;;  %v11783_v61 = vld [vmem:[%s15399_s8 + $0x450] ss:$12 sps:$4 sm:$0xff]  }
 0x824   : > { %6067 = vmatprep.subr.bf16.mxu0 %v11735_v13  ;;  %v11789_v13 = vld [vmem:[%s15399_s8 + $0x46c] ss:$12 sps:$4 sm:$0xff]  }
 0x825   : > { %v5143_v15 = vpop.f32.mrb[44].mxu0 }
 0x826   : > { %v5145_v29 = vpop.f32.mrb[45].mxu0 }
 0x827   : > { %v5147_v31 = vpop.f32.mrb[46].mxu0  ;;  %6068 = vmatpush1.bf16.msra.mxu0 %v11733_v1  ;;  %v11787_v1 = vld [vmem:[%s15399_s8 + $0x468] ss:$12 sps:$4 sm:$0xff]  }
 0x828   : > { %v5148_v54 = vpop.f32.mrb[47].mxu0  ;;  %6069 = vmatprep.subr.bf16.mxu0 %v11738_v28  ;;  %v11793_v28 = vld [vmem:[%s15399_s8 + $0x484] ss:$12 sps:$4 sm:$0xff]  }
 0x829   : > { %v11795_v31 = vld [vmem:[%s15399_s8 + $0x498] ss:$12 sps:$4 sm:$0xff]   ;;  %v11799_v54 = vld [vmem:[%s15399_s8 + $0x4b0] ss:$12 sps:$4 sm:$0xff]  }
 0x82b   : > { %6070 = vmatpush1.bf16.msra.mxu0 %v11736_v43  ;;  %v11801_v43 = vld [vmem:[%s15399_s8 + $0x4b4] ss:$12 sps:$4 sm:$0xff]  }
 0x82c   : > { %6071 = vmatprep.subr.bf16.mxu0 %v11741_v32  ;;  %v11805_v32 = vld [vmem:[%s15399_s8 + $0x4cc] ss:$12 sps:$4 sm:$0xff]  }
 0x82f   : > { %6072 = vmatpush1.bf16.msra.mxu0 %v11739_v44  ;;  %v11803_v44 = vld [vmem:[%s15399_s8 + $0x4c8] ss:$12 sps:$4 sm:$0xff]  }
 0x830   : > { %6073 = vmatprep.subr.bf16.mxu0 %v11744_v45  ;;  %v11809_v45 = vld [vmem:[%s15399_s8 + $0x4e4] ss:$12 sps:$4 sm:$0xff]  }
 0x833   : > { %6074 = vmatpush1.bf16.msra.mxu0 %v11742_v46  ;;  %v11807_v46 = vld [vmem:[%s15399_s8 + $0x4e0] ss:$12 sps:$4 sm:$0xff]  }
 0x834   : > { %6075 = vmatprep.subr.bf16.mxu0 %v11747_v16  ;;  %v11813_v16 = vld [vmem:[%s15399_s8 + $0x4fc] ss:$12 sps:$4 sm:$0xff]  }
 0x837   : > { %6076 = vmatpush1.bf16.msra.mxu0 %v11745_v20  ;;  %v11811_v20 = vld [vmem:[%s15399_s8 + $0x4f8] ss:$12 sps:$4 sm:$0xff]  }
 0x838   : > { %6077 = vmatprep.subr.bf16.mxu0 %v11750_v19  ;;  %v11815_v19 = vld [vmem:[%s15399_s8 + $0x510] ss:$12 sps:$4 sm:$0xff]  }
 0x83b   : > { %6078 = vmatpush1.bf16.msra.mxu0 %v11748_v47  ;;  %v11817_v47 = vld [vmem:[%s15399_s8 + $0x514] ss:$12 sps:$4 sm:$0xff]  }
 0x83c   : > { %6079 = vmatprep.subr.bf16.mxu0 %v11753_v53  ;;  %v11821_v53 = vld [vmem:[%s15399_s8 + $0x52c] ss:$12 sps:$4 sm:$0xff]  }
 0x83f   : > { %6080 = vmatpush1.bf16.msra.mxu0 %v11751_v49  ;;  %v11819_v49 = vld [vmem:[%s15399_s8 + $0x528] ss:$12 sps:$4 sm:$0xff]  }
 0x840   : > { %6081 = vmatprep.subr.bf16.mxu0 %v11756_v51  ;;  %v11823_v51 = vld [vmem:[%s15399_s8 + $0x368] ss:$12 sps:$4 sm:$0xff]  }
 0x843   : > { %6082 = vmatpush1.bf16.msra.mxu0 %v11754_v63 }
 0x844   : > { %v5102_v56 = vpop.f32.mrb[48].mxu1  ;;  %6083 = vmatprep.subr.bf16.mxu0 %v11759_v52 }
 0x845   : > { %v5144_v58 = vadd.f32 %v5143_v15, %v5102_v56  ;;  %v5104_v60 = vpop.f32.mrb[49].mxu1  ;;  %v11791_v15 = vld [vmem:[%s15399_s8 + $0x480] ss:$12 sps:$4 sm:$0xff]  }
 0x846   : > { %v5146_v62 = vadd.f32 %v5145_v29, %v5104_v60  ;;  %v5106_v3 = vpop.f32.mrb[50].mxu1  ;;  %v11797_v29 = vld [vmem:[%s15399_s8 + $0x49c] ss:$12 sps:$4 sm:$0xff]  }
 0x847   : > { %v5152_v40 = vadd.f32 %v5144_v58, %v13913_v48  ;;  %v5107_v2 = vpop.f32.mrb[51].mxu1  ;;  %6084 = vmatpush1.bf16.msra.mxu0 %v11757_v55 }
 0x848   : > { %v5153_v6 = vadd.f32 %v5146_v62, %v13918_v50  ;;  %6085 = vmatprep.subr.bf16.mxu0 %v11762_v57  ;;  %v11778_v62 = vld [vmem:[%s15399_s8 + $0x428] ss:$12 sps:$4 sm:$0xff]   ;;  %v11786_v2 = vld [vmem:[%s15399_s8 + $0x458] ss:$12 sps:$4 sm:$0xff]  }
 0x849   : > { %v5178_v7 = vadd.f32 %v5167_v59, %v5152_v40  ;;  %v11782_v40 = vld [vmem:[%s15399_s8 + $0x440] ss:$12 sps:$4 sm:$0xff]  }
 0x84a   : > { %v5179_v36 = vadd.f32 %v5171_v39, %v5153_v6  ;;  %v11794_v6 = vld [vmem:[%s15399_s8 + $0x488] ss:$12 sps:$4 sm:$0xff]  }
 0x84b   : > { %v5182_v8 = vmax.f32 %v5178_v7, 0.0  ;;  %6086 = vmatpush1.bf16.msra.mxu0 %v11760_v27  ;;  %v11790_v27 = vld [vmem:[%s15399_s8 + $0x470] ss:$12 sps:$4 sm:$0xff]   ;;  %v11802_v7 = vld [vmem:[%s15399_s8 + $0x4b8] ss:$12 sps:$4 sm:$0xff]  }
 0x84c   : > { %v5183_v48 = vmax.f32 %v5179_v36, 0.0  ;;  %6087 = vmatprep.subr.bf16.mxu0 %v11765_v5  ;;  %v11798_v5 = vld [vmem:[%s15399_s8 + $0x4a0] ss:$12 sps:$4 sm:$0xff]   ;;  %v11806_v36 = vld [vmem:[%s15399_s8 + $0x4d0] ss:$12 sps:$4 sm:$0xff]  }
 0x84d   : > { %v5186_v50 = vpack.c.bf16 %v5182_v8, %v5182_v8  ;;  %v11810_v8 = vld [vmem:[%s15399_s8 + $0x4e8] ss:$12 sps:$4 sm:$0xff]  }
 0x84e   : > { %v5187_v9 = vpack.c.bf16 %v5183_v48, %v5183_v48  ;;  %v11818_v48 = vld [vmem:[%s15399_s8 + $0x518] ss:$12 sps:$4 sm:$0xff]  }
 0x84f   : > { %6088 = vmatpush1.bf16.msra.mxu0 %v11763_v42  ;;  %v14210_v12 = vand.u32 %v14088_v22, %v5186_v50  ;;  %v11814_v42 = vld [vmem:[%s15399_s8 + $0x500] ss:$12 sps:$4 sm:$0xff]   ;;  %v11826_v50 = vld [vmem:[%s15399_s8 + $0x184] ss:$12 sps:$4 sm:$0xff]  }
 0x850   : > { %v14207_v11 = vand.u32 %v14088_v22, %v5187_v9  ;;  %6089 = vmatprep.subr.bf16.mxu0 %v11768_v34  ;;  %v11772_v22 = vld [vmem:[%s15399_s8 + $0x408] ss:$12 sps:$4 sm:$0xff]   ;;  %v11822_v34 = vld [vmem:[%s15399_s8 + $0x530] ss:$12 sps:$4 sm:$0xff]  }
 0x852   : > { %5250 = vmatprep.subr.bf16.mxu1 %v14207_v11 }
 0x853   : > { %5251 = vmatpush1.bf16.msra.mxu1 %v14210_v12  ;;  %6090 = vmatpush1.bf16.msra.mxu0 %v11766_v10 }
 0x854   : > { %5453 = vmatprep.subr.bf16.mxu1 %v14207_v11  ;;  %6091 = vmatprep.subr.bf16.mxu0 %v11771_v21 }
 0x856   : > { %9886 = vmatmul.mubr.msk.bf16.vlgmr.msra.gmra.mrb[52].mxu1 %vm5189_vm11, %v14101_v33  ;;  %v11775_v33 = vld [vmem:[%s15399_s8 + $0x420] ss:$12 sps:$4 sm:$0xff]  }
 0x857   : > { %5454 = vmatpush1.bf16.msra.mxu1 %v14210_v12  ;;  %5485 = vmatprep.mubr.bf16.mxu1 %v12209_v4 }
 0x858   : > { %6092 = vmatpush1.bf16.msra.mxu0 %v11769_v17  ;;  %6104 = vmatprep.subr.bf16.mxu1 %v11777_v18 }
 0x859   : > { %6093 = vmatprep.subr.bf16.mxu0 %v11774_v23 }
 0x85c   : > { %6094 = vmatpush1.bf16.msra.mxu0 %v11772_v22 }
 0x85d   : > { %6185 = vmatprep.subr.bf16.mxu0 %v12209_v4 }
 0x85e   : > { %9889 = vmatmul.mubr.msk.bf16.vlgmr.msra.gmra.mrb[56].mxu1 %vm5189_vm11, %v14114_v24  ;;  %v11781_v24 = vld [vmem:[%s15399_s8 + $0x43c] ss:$12 sps:$4 sm:$0xff]  }
 0x85f   : > { %6105 = vmatpush1.bf16.msra.mxu1 %v11775_v33 }
 0x860   : > { %6106 = vmatprep.subr.bf16.mxu1 %v11781_v24  ;;  %v11824_v24 = vld [vmem:[%s15399_s8 + $0x180] ss:$12 sps:$4 sm:$0xff]  }
 0x863   : > { %6107 = vmatpush1.bf16.msra.mxu1 %v11779_v25  ;;  %v11827_v25 = vld [vmem:[%s15399_s8 + $0x2a8] ss:$12 sps:$4 sm:$0xff]  }
 0x864   : > { %6108 = vmatprep.subr.bf16.mxu1 %v11785_v26 }
 0x867   : > { %6109 = vmatpush1.bf16.msra.mxu1 %v11783_v61 }
 0x868   : > { %6110 = vmatprep.subr.bf16.mxu1 %v11789_v13  ;;  %v11828_v13 = vld [vmem:[%s15399_s8 + $0x380] ss:$12 sps:$4 sm:$0xff]  }
 0x86b   : > { %6111 = vmatpush1.bf16.msra.mxu1 %v11787_v1  ;;  %v11831_v1 = vld [vmem:[%s15399_s8 + $0x19c] ss:$12 sps:$4 sm:$0xff]  }
 0x86c   : > { %6112 = vmatprep.subr.bf16.mxu1 %v11793_v28 }
 0x86f   : > { %6113 = vmatpush1.bf16.msra.mxu1 %v11791_v15  ;;  %v11829_v15 = vld [vmem:[%s15399_s8 + $0x198] ss:$12 sps:$4 sm:$0xff]  }
 0x870   : > { %6114 = vmatprep.subr.bf16.mxu1 %v11797_v29  ;;  %v11832_v29 = vld [vmem:[%s15399_s8 + $0x2c0] ss:$12 sps:$4 sm:$0xff]  }
 0x873   : > { %6115 = vmatpush1.bf16.msra.mxu1 %v11795_v31  ;;  %v11833_v31 = vld [vmem:[%s15399_s8 + $0x398] ss:$12 sps:$4 sm:$0xff]  }
 0x874   : > { %6116 = vmatprep.subr.bf16.mxu1 %v11801_v43  ;;  %v11836_v43 = vld [vmem:[%s15399_s8 + $0x1b4] ss:$12 sps:$4 sm:$0xff]  }
 0x877   : > { %6117 = vmatpush1.bf16.msra.mxu1 %v11799_v54  ;;  %v11834_v54 = vld [vmem:[%s15399_s8 + $0x1b0] ss:$12 sps:$4 sm:$0xff]  }
 0x878   : > { %6118 = vmatprep.subr.bf16.mxu1 %v11805_v32  ;;  %v11837_v32 = vld [vmem:[%s15399_s8 + $0x2d8] ss:$12 sps:$4 sm:$0xff]  }
 0x87b   : > { %6119 = vmatpush1.bf16.msra.mxu1 %v11803_v44  ;;  %v11838_v44 = vld [vmem:[%s15399_s8 + $0x3b0] ss:$12 sps:$4 sm:$0xff]  }
 0x87c   : > { %6120 = vmatprep.subr.bf16.mxu1 %v11809_v45  ;;  %v11841_v45 = vld [vmem:[%s15399_s8 + $0x1cc] ss:$12 sps:$4 sm:$0xff]  }
 0x87f   : > { %6121 = vmatpush1.bf16.msra.mxu1 %v11807_v46  ;;  %v11839_v46 = vld [vmem:[%s15399_s8 + $0x1c8] ss:$12 sps:$4 sm:$0xff]  }
 0x880   : > { %6122 = vmatprep.subr.bf16.mxu1 %v11813_v16  ;;  %v11842_v16 = vld [vmem:[%s15399_s8 + $0x2f0] ss:$12 sps:$4 sm:$0xff]  }
 0x883   : > { %6123 = vmatpush1.bf16.msra.mxu1 %v11811_v20  ;;  %v11843_v20 = vld [vmem:[%s15399_s8 + $0x3c8] ss:$12 sps:$4 sm:$0xff]  }
 0x884   : > { %6124 = vmatprep.subr.bf16.mxu1 %v11817_v47  ;;  %v11844_v47 = vld [vmem:[%s15399_s8 + $0x1e0] ss:$12 sps:$4 sm:$0xff]  }
 0x887   : > { %6125 = vmatpush1.bf16.msra.mxu1 %v11815_v19  ;;  %v11846_v19 = vld [vmem:[%s15399_s8 + $0x1e4] ss:$12 sps:$4 sm:$0xff]  }
 0x888   : > { %6126 = vmatprep.subr.bf16.mxu1 %v11821_v53  ;;  %v11847_v53 = vld [vmem:[%s15399_s8 + $0x308] ss:$12 sps:$4 sm:$0xff]  }
 0x88b   : > { %6127 = vmatpush1.bf16.msra.mxu1 %v11819_v49  ;;  %v11848_v49 = vld [vmem:[%s15399_s8 + $0x3e0] ss:$12 sps:$4 sm:$0xff]  }
 0x88c   : > { %10582 = vmatprep.subr.bf16.mxu1 %v11823_v51  ;;  %v11851_v51 = vld [vmem:[%s15399_s8 + $0x1fc] ss:$12 sps:$4 sm:$0xff]  }
 0x8e9   : > { %v14309_v63 = vpop.f32.mrb[48].mxu0 }
 0x8ea   : > { %v14311_v52 = vpop.f32.mrb[49].mxu0 }
 0x8eb   : > { %v5247_v55 = vpop.f32.mrb[50].mxu0 }
 0x8ec   : > { %v5248_v56 = vpop.f32.mrb[51].mxu0  ;;  %v11849_v55 = vld [vmem:[%s15399_s8 + $0x1f8] ss:$12 sps:$4 sm:$0xff]  }
 0x8ed   : > { %v11852_v56 = vld [vmem:[%s15399_s8 + $0x320] ss:$12 sps:$4 sm:$0xff]  }
 0x8f1   : > { %v5446_v57 = vpop.f32.mrb[52].mxu0 }
 0x8f2   : > { %v14313_v58 = vpack.c.bf16 %v5446_v57, %v5446_v57  ;;  %v5448_v59 = vpop.f32.mrb[53].mxu0  ;;  %v11853_v57 = vld [vmem:[%s15399_s8 + $0x3f8] ss:$12 sps:$4 sm:$0xff]  }
 0x8f3   : > { %v14315_v60 = vpack.c.bf16 %v5448_v59, %v5448_v59  ;;  %v5450_v39 = vpop.f32.mrb[54].mxu0  ;;  %v11856_v59 = vld [vmem:[%s15399_s8 + $0x214] ss:$12 sps:$4 sm:$0xff]  }
 0x8f4   : > { %v5451_v3 = vpop.f32.mrb[55].mxu0  ;;  %v11858_v39 = vld [vmem:[%s15399_s8 + $0x410] ss:$12 sps:$4 sm:$0xff]  }
 0x8f5   : > { %6095 = vmatprep.mubr.bf16.mxu0 %v14315_v60  ;;  %v11861_v3 = vld [vmem:[%s15399_s8 + $0x22c] ss:$12 sps:$4 sm:$0xff]  }
 0x8f6   : > { %6096 = vmatmul.mubr.bf16.vlgmr.msra.gmra.mrb[56].mxu0 %v14313_v58 }
 0x8f7   : > { %6186 = vmatpush1.bf16.msra.mxu0 %v11778_v62  ;;  %v11857_v62 = vld [vmem:[%s15399_s8 + $0x338] ss:$12 sps:$4 sm:$0xff]  }
 0x8f8   : > { %6187 = vmatprep.subr.bf16.mxu0 %v12209_v4 }
 0x8fb   : > { %6188 = vmatpush1.bf16.msra.mxu0 %v11782_v40  ;;  %v11859_v40 = vld [vmem:[%s15399_s8 + $0x228] ss:$12 sps:$4 sm:$0xff]  }
 0x8fc   : > { %6189 = vmatprep.subr.bf16.mxu0 %v12209_v4 }
 0x8ff   : > { %6190 = vmatpush1.bf16.msra.mxu0 %v11786_v2  ;;  %v11862_v2 = vld [vmem:[%s15399_s8 + $0x350] ss:$12 sps:$4 sm:$0xff]  }
 0x900   : > { %6191 = vmatprep.subr.bf16.mxu0 %v12209_v4 }
 0x903   : > { %6192 = vmatpush1.bf16.msra.mxu0 %v11790_v27  ;;  %v11865_v27 = vld [vmem:[%s15399_s8 + $0x4] ss:$12 sps:$4 sm:$0xff]  }
 0x904   : > { %6193 = vmatprep.subr.bf16.mxu0 %v12209_v4 }
 0x907   : > { %6194 = vmatpush1.bf16.msra.mxu0 %v11794_v6  ;;  %v11868_v6 = vld [vmem:[%s15399_s8 + $0x244] ss:$12 sps:$4 sm:$0xff]  }
 0x908   : > { %6195 = vmatprep.subr.bf16.mxu0 %v12209_v4 }
 0x90b   : > { %6196 = vmatpush1.bf16.msra.mxu0 %v11798_v5  ;;  %v11863_v5 = vld [vmem:[%s15399_s8] ss:$12 sps:$4 sm:$0xff]  }
 0x90c   : > { %6197 = vmatprep.subr.bf16.mxu0 %v12209_v4 }
 0x90f   : > { %6198 = vmatpush1.bf16.msra.mxu0 %v11802_v7  ;;  %v11866_v7 = vld [vmem:[%s15399_s8 + $0x240] ss:$12 sps:$4 sm:$0xff]  }
 0x910   : > { %6199 = vmatprep.subr.bf16.mxu0 %v12209_v4 }
 0x913   : > { %6200 = vmatpush1.bf16.msra.mxu0 %v11806_v36  ;;  %v11871_v36 = vld [vmem:[%s15399_s8 + $0x1c] ss:$12 sps:$4 sm:$0xff]  }
 0x914   : > { %6201 = vmatprep.subr.bf16.mxu0 %v12209_v4 }
 0x917   : > { %6202 = vmatpush1.bf16.msra.mxu0 %v11810_v8  ;;  %v14485_v8 = vpack.c.bf16 %v14311_v52, %v14311_v52  ;;  %v11872_v52 = vld [vmem:[%s15399_s8 + $0x258] ss:$12 sps:$4 sm:$0xff]  }
 0x918   : > { %6203 = vmatprep.subr.bf16.mxu0 %v12209_v4 }
 0x91b   : > { %6204 = vmatpush1.bf16.msra.mxu0 %v11814_v42  ;;  %v11874_v42 = vld [vmem:[%s15399_s8 + $0x25c] ss:$12 sps:$4 sm:$0xff]  }
 0x91c   : > { %6205 = vmatprep.subr.bf16.mxu0 %v12209_v4 }
 0x91f   : > { %6206 = vmatpush1.bf16.msra.mxu0 %v11818_v48  ;;  %v11869_v48 = vld [vmem:[%s15399_s8 + $0x18] ss:$12 sps:$4 sm:$0xff]  }
 0x920   : > { %6207 = vmatprep.subr.bf16.mxu0 %v12209_v4 }
 0x923   : > { %6208 = vmatpush1.bf16.msra.mxu0 %v11822_v34  ;;  %v11877_v34 = vld [vmem:[%s15399_s8 + $0x34] ss:$12 sps:$4 sm:$0xff]  }
 0x924   : > { %6717 = vmatprep.subr.bf16.mxu0 %v11826_v50  ;;  %v11875_v50 = vld [vmem:[%s15399_s8 + $0x30] ss:$12 sps:$4 sm:$0xff]  }
 0x929   : > { %v14369_v9 = vpop.f32.mrb[52].mxu1 }
 0x92a   : > { %v5286_v10 = vpop.f32.mrb[53].mxu1 }
 0x92b   : > { %v5288_v17 = vpop.f32.mrb[54].mxu1  ;;  %v14385_v28 = vpack.c.bf16 %v5286_v10, %v5286_v10  ;;  %v11878_v10 = vld [vmem:[%s15399_s8 + $0x270] ss:$12 sps:$4 sm:$0xff]  }
 0x92c   : > { %v5289_v21 = vpop.f32.mrb[55].mxu1  ;;  %v11883_v17 = vld [vmem:[%s15399_s8 + $0x4c] ss:$12 sps:$4 sm:$0xff]  }
 0x92d   : > { %v11886_v21 = vld [vmem:[%s15399_s8 + $0x28c] ss:$12 sps:$4 sm:$0xff]  }
 0x931   : > { %v5487_v22 = vpop.f32.mrb[56].mxu1 }
 0x932   : > { %v5489_v23 = vpop.f32.mrb[57].mxu1  ;;  %v5496_v26 = vpack.c.bf16 %v5487_v22, %v5487_v22  ;;  %v11881_v22 = vld [vmem:[%s15399_s8 + $0x48] ss:$12 sps:$4 sm:$0xff]  }
 0x933   : > { %v5497_v33 = vpack.c.bf16 %v5489_v23, %v5489_v23  ;;  %v5491_v18 = vpop.f32.mrb[58].mxu1  ;;  %v11884_v23 = vld [vmem:[%s15399_s8 + $0x288] ss:$12 sps:$4 sm:$0xff]  }
 0x934   : > { %v5492_v61 = vpop.f32.mrb[59].mxu1  ;;  %v11887_v18 = vld [vmem:[%s15399_s8 + $0x60] ss:$12 sps:$4 sm:$0xff]  }
 0x935   : > { %10086 = vmatprep.mubr.msk.bf16.mxu1 %vm6059_vm12, %v5497_v33  ;;  %10087 = vmatprep.mubr.msk.bf16.mxu0 %vm6059_vm12, %v5497_v33  ;;  %v11889_v33 = vld [vmem:[%s15399_s8 + $0x64] ss:$12 sps:$4 sm:$0xff]  }
 0x936   : > { %6137 = vmatmul.mubr.bf16.vlgmr.msra.gmra.mrb[60].mxu1 %v5496_v26  ;;  %6218 = vmatmul.mubr.bf16.vlgmr.msra.gmra.mrb[60].mxu0 %v5496_v26  ;;  %v11893_v26 = vld [vmem:[%s15399_s8 + $0x7c] ss:$12 sps:$4 sm:$0xff]   ;;  %v11891_v61 = vld [vmem:[%s15399_s8 + $0x78] ss:$12 sps:$4 sm:$0xff]  }
 0x937   : > { %10583 = vmatpush3.bf16.msra.mxu1 %v11827_v25  ;;  %6718 = vmatpush1.bf16.msra.mxu0 %v11824_v24  ;;  %v11890_v24 = vld [vmem:[%s15399_s8 + $0x188] ss:$12 sps:$4 sm:$0xff]   ;;  %v14533_v25 = vpack.c.bf16 %v14369_v9, %v14369_v9  ;;  %v11894_v9 = vld [vmem:[%s15399_s8 + $0x1a0] ss:$12 sps:$4 sm:$0xff]  }
 0x938   : > { %10172 = vmatprep.mubr.msk.bf16.mxu0 %vm6059_vm12, %v14385_v28  ;;  %10584 = vmatprep.subr.bf16.mxu1 %v11828_v13  ;;  %v11897_v13 = vld [vmem:[%s15399_s8 + $0x94] ss:$12 sps:$4 sm:$0xff]  }
 0x939   : > { %6719 = vmatprep.subr.bf16.mxu0 %v11831_v1  ;;  %6177 = vmatprep.mubr.bf16.mxu1 %v14315_v60  ;;  %v11854_v60 = vld [vmem:[%s15399_s8 + $0x210] ss:$12 sps:$4 sm:$0xff]  }
 0x93a   : > { %v11895_v1 = vld [vmem:[%s15399_s8 + $0x90] ss:$12 sps:$4 sm:$0xff]  }
 0x93b   : > { %10585 = vmatpush3.bf16.msra.mxu1 %v11832_v29  ;;  %6720 = vmatpush1.bf16.msra.mxu0 %v11829_v15  ;;  %v11901_v15 = vld [vmem:[%s15399_s8 + $0xac] ss:$12 sps:$4 sm:$0xff]   ;;  %v11899_v29 = vld [vmem:[%s15399_s8 + $0xa8] ss:$12 sps:$4 sm:$0xff]  }
 0x93c   : > { %10586 = vmatprep.subr.bf16.mxu1 %v11833_v31  ;;  %6721 = vmatprep.subr.bf16.mxu0 %v11836_v43  ;;  %v11902_v31 = vld [vmem:[%s15399_s8 + $0x1d0] ss:$12 sps:$4 sm:$0xff]  }
 0x93d   : > { %v11905_v43 = vld [vmem:[%s15399_s8 + $0xc4] ss:$12 sps:$4 sm:$0xff]  }
 0x93f   : > { %10587 = vmatpush3.bf16.msra.mxu1 %v11837_v32  ;;  %6722 = vmatpush1.bf16.msra.mxu0 %v11834_v54  ;;  %v11903_v54 = vld [vmem:[%s15399_s8 + $0xc0] ss:$12 sps:$4 sm:$0xff]   ;;  %v11906_v32 = vld [vmem:[%s15399_s8 + $0x1e8] ss:$12 sps:$4 sm:$0xff]  }
 0x940   : > { %10588 = vmatprep.subr.bf16.mxu1 %v11838_v44  ;;  %6723 = vmatprep.subr.bf16.mxu0 %v11841_v45  ;;  %v11909_v44 = vld [vmem:[%s15399_s8 + $0xdc] ss:$12 sps:$4 sm:$0xff]   ;;  %v11907_v45 = vld [vmem:[%s15399_s8 + $0xd8] ss:$12 sps:$4 sm:$0xff]  }
 0x943   : > { %10589 = vmatpush3.bf16.msra.mxu1 %v11842_v16  ;;  %6724 = vmatpush1.bf16.msra.mxu0 %v11839_v46  ;;  %v11910_v46 = vld [vmem:[%s15399_s8 + $0x200] ss:$12 sps:$4 sm:$0xff]  }
 0x944   : > { %10590 = vmatprep.subr.bf16.mxu1 %v11843_v20  ;;  %6725 = vmatprep.subr.bf16.mxu0 %v11846_v19  ;;  %v11913_v16 = vld [vmem:[%s15399_s8 + $0xf4] ss:$12 sps:$4 sm:$0xff]   ;;  %v11911_v20 = vld [vmem:[%s15399_s8 + $0xf0] ss:$12 sps:$4 sm:$0xff]   ;;  %v11914_v19 = vld [vmem:[%s15399_s8 + $0x218] ss:$12 sps:$4 sm:$0xff]  }
 0x947   : > { %10591 = vmatpush3.bf16.msra.mxu1 %v11847_v53  ;;  %6726 = vmatpush1.bf16.msra.mxu0 %v11844_v47  ;;  %v11917_v47 = vld [vmem:[%s15399_s8 + $0x10c] ss:$12 sps:$4 sm:$0xff]   ;;  %v11915_v53 = vld [vmem:[%s15399_s8 + $0x108] ss:$12 sps:$4 sm:$0xff]  }
 0x948   : > { %10592 = vmatprep.subr.bf16.mxu1 %v11848_v49  ;;  %6727 = vmatprep.subr.bf16.mxu0 %v11851_v51  ;;  %v11918_v49 = vld [vmem:[%s15399_s8 + $0x230] ss:$12 sps:$4 sm:$0xff]  }
 0x949   : > { %v11921_v51 = vld [vmem:[%s15399_s8 + $0x124] ss:$12 sps:$4 sm:$0xff]  }
 0x94b   : > { %10593 = vmatpush3.bf16.msra.mxu1 %v11852_v56  ;;  %6728 = vmatpush1.bf16.msra.mxu0 %v11849_v55  ;;  %v11919_v55 = vld [vmem:[%s15399_s8 + $0x120] ss:$12 sps:$4 sm:$0xff]   ;;  %v11922_v56 = vld [vmem:[%s15399_s8 + $0x248] ss:$12 sps:$4 sm:$0xff]  }
 0x94c   : > { %10594 = vmatprep.subr.bf16.mxu1 %v11853_v57  ;;  %6729 = vmatprep.subr.bf16.mxu0 %v11856_v59  ;;  %v11925_v57 = vld [vmem:[%s15399_s8 + $0x13c] ss:$12 sps:$4 sm:$0xff]   ;;  %v11923_v59 = vld [vmem:[%s15399_s8 + $0x138] ss:$12 sps:$4 sm:$0xff]  }
 0x94f   : > { %10595 = vmatpush3.bf16.msra.mxu1 %v11857_v62  ;;  %6730 = vmatpush1.bf16.msra.mxu0 %v11854_v60  ;;  %v11926_v60 = vld [vmem:[%s15399_s8 + $0x260] ss:$12 sps:$4 sm:$0xff]  }
 0x950   : > { %10596 = vmatprep.subr.bf16.mxu1 %v11858_v39  ;;  %6731 = vmatprep.subr.bf16.mxu0 %v11861_v3  ;;  %v11929_v62 = vld [vmem:[%s15399_s8 + $0x154] ss:$12 sps:$4 sm:$0xff]   ;;  %v11927_v39 = vld [vmem:[%s15399_s8 + $0x150] ss:$12 sps:$4 sm:$0xff]   ;;  %v11930_v3 = vld [vmem:[%s15399_s8 + $0x278] ss:$12 sps:$4 sm:$0xff]  }
 0x953   : > { %10597 = vmatpush3.bf16.msra.mxu1 %v11862_v2  ;;  %6732 = vmatpush1.bf16.msra.mxu0 %v11859_v40  ;;  %v11933_v40 = vld [vmem:[%s15399_s8 + $0x16c] ss:$12 sps:$4 sm:$0xff]   ;;  %v11931_v2 = vld [vmem:[%s15399_s8 + $0x168] ss:$12 sps:$4 sm:$0xff]  }
 0x954   : > { %6676 = vmatprep.subr.bf16.mxu1 %v11865_v27  ;;  %6733 = vmatprep.subr.bf16.mxu0 %v11868_v6  ;;  %v11934_v27 = vld [vmem:[%s15399_s8 + $0x290] ss:$12 sps:$4 sm:$0xff]   ;;  %v11935_v6 = vld [vmem:[%s15399_s8 + $0xc8] ss:$12 sps:$4 sm:$0xff]  }
 0x956   : > { %6178 = vmatmul.mubr.bf16.vlgmr.msra.gmra.mrb[64].mxu1 %v14313_v58  ;;  %v11880_v58 = vld [vmem:[%s15399_s8 + $0x274] ss:$12 sps:$4 sm:$0xff]  }
 0x957   : > { %6677 = vmatpush1.bf16.msra.mxu1 %v11863_v5  ;;  %6708 = vmatprep.mubr.bf16.mxu1 %v14485_v8  ;;  %v11936_v5 = vld [vmem:[%s15399_s8 + $0x8] ss:$12 sps:$4 sm:$0xff]  }
 0x958   : > { %6734 = vmatpush1.bf16.msra.mxu0 %v11866_v7  ;;  %6678 = vmatprep.subr.bf16.mxu1 %v11871_v36  ;;  %v5291_v7 = vpack.c.bf16 %v14309_v63, %v14309_v63  ;;  %v11937_v36 = vld [vmem:[%s15399_s8 + $0xe0] ss:$12 sps:$4 sm:$0xff]   ;;  %v11939_v63 = vld [vmem:[%s15399_s8 + $0xf8] ss:$12 sps:$4 sm:$0xff]  }
 0x959   : > { %6735 = vmatprep.subr.bf16.mxu0 %v11874_v42  ;;  %v11938_v42 = vld [vmem:[%s15399_s8 + $0x20] ss:$12 sps:$4 sm:$0xff]  }
 0x95b   : > { %6679 = vmatpush1.bf16.msra.mxu1 %v11869_v48  ;;  %v11940_v48 = vld [vmem:[%s15399_s8 + $0x38] ss:$12 sps:$4 sm:$0xff]  }
 0x95c   : > { %6736 = vmatpush1.bf16.msra.mxu0 %v11872_v52  ;;  %6680 = vmatprep.subr.bf16.mxu1 %v11877_v34  ;;  %v11941_v52 = vld [vmem:[%s15399_s8 + $0x110] ss:$12 sps:$4 sm:$0xff]   ;;  %v11943_v34 = vld [vmem:[%s15399_s8 + $0x128] ss:$12 sps:$4 sm:$0xff]  }
 0x95d   : > { %6737 = vmatprep.subr.bf16.mxu0 %v11880_v58  ;;  %v11944_v58 = vld [vmem:[%s15399_s8 + $0x68] ss:$12 sps:$4 sm:$0xff]  }
 0x95f   : > { %6681 = vmatpush1.bf16.msra.mxu1 %v11875_v50  ;;  %v11945_v50 = vld [vmem:[%s15399_s8 + $0x140] ss:$12 sps:$4 sm:$0xff]  }
 0x960   : > { %6738 = vmatpush1.bf16.msra.mxu0 %v11878_v10  ;;  %6682 = vmatprep.subr.bf16.mxu1 %v11883_v17  ;;  %v11946_v10 = vld [vmem:[%s15399_s8 + $0x80] ss:$12 sps:$4 sm:$0xff]   ;;  %v11947_v17 = vld [vmem:[%s15399_s8 + $0x158] ss:$12 sps:$4 sm:$0xff]  }
 0x961   : > { %6739 = vmatprep.subr.bf16.mxu0 %v11886_v21  ;;  %v11948_v21 = vld [vmem:[%s15399_s8 + $0x98] ss:$12 sps:$4 sm:$0xff]  }
 0x963   : > { %6683 = vmatpush1.bf16.msra.mxu1 %v11881_v22  ;;  %v11949_v22 = vld [vmem:[%s15399_s8 + $0x170] ss:$12 sps:$4 sm:$0xff]  }
 0x964   : > { %6740 = vmatpush1.bf16.msra.mxu0 %v11884_v23  ;;  %6684 = vmatprep.subr.bf16.mxu1 %v11889_v33  ;;  %v11950_v23 = vld [vmem:[%s15399_s8 + $0xb0] ss:$12 sps:$4 sm:$0xff]   ;;  %v10174_v33 = vld [vmem:[%s15398_s7 + $0x4] sm:$0x3] }
 0x965   : > { %6798 = vmatprep.subr.bf16.mxu0 %v12209_v4 }
 0x967   : > { %6750 = vmatmul.mubr.bf16.vlgmr.msra.gmra.mrb[64].mxu0 %v14533_v25  ;;  %6685 = vmatpush1.bf16.msra.mxu1 %v11887_v18  ;;  %v11953_v18 = vld [vmem:[%s15399_s8 + $0x544] ss:$12 sps:$4 sm:$0xff]  }
 0x968   : > { %6799 = vmatpush1.bf16.msra.mxu0 %v11890_v24  ;;  %10173 = vmatprep.mubr.msk.bf16.mxu0 %vm6059_vm12, %v14385_v28  ;;  %v11898_v28 = vld [vmem:[%s15399_s8 + $0x1b8] ss:$12 sps:$4 sm:$0xff]  }
 0x969   : > { %6686 = vmatprep.subr.bf16.mxu1 %v11893_v26  ;;  %6800 = vmatprep.subr.bf16.mxu0 %v12209_v4 }
 0x96b   : > { %6687 = vmatpush1.bf16.msra.mxu1 %v11891_v61  ;;  %v11957_v61 = vld [vmem:[%s15399_s8 + $0x570] ss:$12 sps:$4 sm:$0xff]  }
 0x96c   : > { %6801 = vmatpush1.bf16.msra.mxu0 %v11894_v9  ;;  %6688 = vmatprep.subr.bf16.mxu1 %v11897_v13  ;;  %v11962_v13 = vld [vmem:[%s15399_s8 + $0x58c] ss:$12 sps:$4 sm:$0xff]  }
 0x96d   : > { %6802 = vmatprep.subr.bf16.mxu0 %v12209_v4 }
 0x96f   : > { %6689 = vmatpush1.bf16.msra.mxu1 %v11895_v1  ;;  %v11960_v1 = vld [vmem:[%s15399_s8 + $0x588] ss:$12 sps:$4 sm:$0xff]  }
 0x970   : > { %6803 = vmatpush1.bf16.msra.mxu0 %v11898_v28  ;;  %6690 = vmatprep.subr.bf16.mxu1 %v11901_v15  ;;  %v11965_v28 = vld [vmem:[%s15399_s8 + $0x5a4] ss:$12 sps:$4 sm:$0xff]   ;;  %v11963_v15 = vld [vmem:[%s15399_s8 + $0x5a0] ss:$12 sps:$4 sm:$0xff]  }
 0x971   : > { %6804 = vmatprep.subr.bf16.mxu0 %v12209_v4 }
 0x973   : > { %6691 = vmatpush1.bf16.msra.mxu1 %v11899_v29  ;;  %v11968_v29 = vld [vmem:[%s15399_s8 + $0x5bc] ss:$12 sps:$4 sm:$0xff]  }
 0x974   : > { %6805 = vmatpush1.bf16.msra.mxu0 %v11902_v31  ;;  %6692 = vmatprep.subr.bf16.mxu1 %v11905_v43  ;;  %v11966_v31 = vld [vmem:[%s15399_s8 + $0x5b8] ss:$12 sps:$4 sm:$0xff]   ;;  %v11971_v43 = vld [vmem:[%s15399_s8 + $0x5d4] ss:$12 sps:$4 sm:$0xff]  }
 0x975   : > { %6806 = vmatprep.subr.bf16.mxu0 %v12209_v4 }
 0x977   : > { %6693 = vmatpush1.bf16.msra.mxu1 %v11903_v54  ;;  %v11974_v54 = vld [vmem:[%s15399_s8 + $0x6c4] ss:$12 sps:$4 sm:$0xff]  }
 0x978   : > { %6807 = vmatpush1.bf16.msra.mxu0 %v11906_v32  ;;  %6694 = vmatprep.subr.bf16.mxu1 %v11909_v44  ;;  %v11969_v32 = vld [vmem:[%s15399_s8 + $0x5d0] ss:$12 sps:$4 sm:$0xff]   ;;  %v11972_v44 = vld [vmem:[%s15399_s8 + $0x6c0] ss:$12 sps:$4 sm:$0xff]  }
 0x979   : > { %6808 = vmatprep.subr.bf16.mxu0 %v12209_v4 }
 0x97b   : > { %6695 = vmatpush1.bf16.msra.mxu1 %v11907_v45  ;;  %v11977_v45 = vld [vmem:[%s15399_s8 + $0x5ec] ss:$12 sps:$4 sm:$0xff]  }
 0x97c   : > { %6809 = vmatpush1.bf16.msra.mxu0 %v11910_v46  ;;  %6696 = vmatprep.subr.bf16.mxu1 %v11913_v16  ;;  %v11980_v46 = vld [vmem:[%s15399_s8 + $0x6dc] ss:$12 sps:$4 sm:$0xff]  }
 0x97d   : > { %6810 = vmatprep.subr.bf16.mxu0 %v12209_v4  ;;  %v11975_v16 = vld [vmem:[%s15399_s8 + $0x5e8] ss:$12 sps:$4 sm:$0xff]  }
 0x97f   : > { %6697 = vmatpush1.bf16.msra.mxu1 %v11911_v20  ;;  %v11978_v20 = vld [vmem:[%s15399_s8 + $0x6d8] ss:$12 sps:$4 sm:$0xff]  }
 0x980   : > { %6811 = vmatpush1.bf16.msra.mxu0 %v11914_v19  ;;  %6698 = vmatprep.subr.bf16.mxu1 %v11917_v47  ;;  %v11983_v19 = vld [vmem:[%s15399_s8 + $0x604] ss:$12 sps:$4 sm:$0xff]   ;;  %v11986_v47 = vld [vmem:[%s15399_s8 + $0x6f4] ss:$12 sps:$4 sm:$0xff]  }
 0x981   : > { %6812 = vmatprep.subr.bf16.mxu0 %v12209_v4 }
 0x983   : > { %6699 = vmatpush1.bf16.msra.mxu1 %v11915_v53  ;;  %v11981_v53 = vld [vmem:[%s15399_s8 + $0x600] ss:$12 sps:$4 sm:$0xff]  }
 0x984   : > { %6813 = vmatpush1.bf16.msra.mxu0 %v11918_v49  ;;  %6700 = vmatprep.subr.bf16.mxu1 %v11921_v51  ;;  %v11984_v49 = vld [vmem:[%s15399_s8 + $0x6f0] ss:$12 sps:$4 sm:$0xff]  }
 0x985   : > { %6814 = vmatprep.subr.bf16.mxu0 %v12209_v4  ;;  %v11989_v51 = vld [vmem:[%s15399_s8 + $0x61c] ss:$12 sps:$4 sm:$0xff]  }
 0x987   : > { %6701 = vmatpush1.bf16.msra.mxu1 %v11919_v55  ;;  %v11992_v55 = vld [vmem:[%s15399_s8 + $0x70c] ss:$12 sps:$4 sm:$0xff]  }
 0x988   : > { %6815 = vmatpush1.bf16.msra.mxu0 %v11922_v56  ;;  %6702 = vmatprep.subr.bf16.mxu1 %v11925_v57  ;;  %v11987_v56 = vld [vmem:[%s15399_s8 + $0x618] ss:$12 sps:$4 sm:$0xff]   ;;  %v11990_v57 = vld [vmem:[%s15399_s8 + $0x708] ss:$12 sps:$4 sm:$0xff]  }
 0x989   : > { %6816 = vmatprep.subr.bf16.mxu0 %v12209_v4 }
 0x98b   : > { %6703 = vmatpush1.bf16.msra.mxu1 %v11923_v59  ;;  %v11995_v59 = vld [vmem:[%s15399_s8 + $0x634] ss:$12 sps:$4 sm:$0xff]  }
 0x98c   : > { %6817 = vmatpush1.bf16.msra.mxu0 %v11926_v60  ;;  %6704 = vmatprep.subr.bf16.mxu1 %v11929_v62  ;;  %v11998_v60 = vld [vmem:[%s15399_s8 + $0x724] ss:$12 sps:$4 sm:$0xff]  }
 0x98d   : > { %6818 = vmatprep.subr.bf16.mxu0 %v12209_v4  ;;  %v11993_v62 = vld [vmem:[%s15399_s8 + $0x630] ss:$12 sps:$4 sm:$0xff]  }
 0x98f   : > { %6705 = vmatpush1.bf16.msra.mxu1 %v11927_v39  ;;  %v11996_v39 = vld [vmem:[%s15399_s8 + $0x720] ss:$12 sps:$4 sm:$0xff]  }
 0x990   : > { %6819 = vmatpush1.bf16.msra.mxu0 %v11930_v3  ;;  %6706 = vmatprep.subr.bf16.mxu1 %v11933_v40  ;;  %v12001_v3 = vld [vmem:[%s15399_s8 + $0x64c] ss:$12 sps:$4 sm:$0xff]   ;;  %v12004_v40 = vld [vmem:[%s15399_s8 + $0x73c] ss:$12 sps:$4 sm:$0xff]  }
 0x991   : > { %6820 = vmatprep.subr.bf16.mxu0 %v12209_v4 }
 0x993   : > { %6707 = vmatpush1.bf16.msra.mxu1 %v11931_v2  ;;  %v11999_v2 = vld [vmem:[%s15399_s8 + $0x648] ss:$12 sps:$4 sm:$0xff]  }
 0x994   : > { %6821 = vmatpush1.bf16.msra.mxu0 %v11934_v27  ;;  %10604 = vmatprep.subr.bf16.mxu1 %v11935_v6  ;;  %v12002_v27 = vld [vmem:[%s15399_s8 + $0x738] ss:$12 sps:$4 sm:$0xff]  }
 0x995   : > { %7534 = vmatprep.subr.bf16.mxu0 %v11974_v54  ;;  %v12007_v6 = vld [vmem:[%s15399_s8 + $0x664] ss:$12 sps:$4 sm:$0xff]  }
 0x996   : > { %6709 = vmatmul.mubr.bf16.vlgmr.msra.gmra.mrb[68].mxu1 %v5291_v7 }
 0x997   : > { %6831 = vmatmul.mubr.bf16.vlgmr.msra.gmra.mrb[68].mxu0 %v14533_v25  ;;  %10605 = vmatpush3.bf16.msra.mxu1 %v11936_v5  ;;  %v12010_v5 = vld [vmem:[%s15399_s8 + $0x754] ss:$12 sps:$4 sm:$0xff]  }
 0x998   : > { %6790 = vmatprep.mubr.bf16.mxu1 %v14485_v8  ;;  %10606 = vmatprep.subr.bf16.mxu1 %v11937_v36  ;;  %v11942_v8 = vld [vmem:[%s15399_s8 + $0x50] ss:$12 sps:$4 sm:$0xff]  }
 0x999   : > { %7535 = vmatpush1.bf16.msra.mxu0 %v11972_v44  ;;  %v12008_v36 = vld [vmem:[%s15399_s8 + $0x750] ss:$12 sps:$4 sm:$0xff]  }
 0x99a   : > { %7536 = vmatprep.subr.bf16.mxu0 %v11980_v46 }
 0x99b   : > { %10607 = vmatpush3.bf16.msra.mxu1 %v11938_v42  ;;  %v12013_v42 = vld [vmem:[%s15399_s8 + $0x67c] ss:$12 sps:$4 sm:$0xff]  }
 0x99c   : > { %10608 = vmatprep.subr.bf16.mxu1 %v11939_v63  ;;  %v12016_v63 = vld [vmem:[%s15399_s8 + $0x76c] ss:$12 sps:$4 sm:$0xff]  }
 0x99d   : > { %7537 = vmatpush1.bf16.msra.mxu0 %v11978_v20 }
 0x99e   : > { %7538 = vmatprep.subr.bf16.mxu0 %v11986_v47 }
 0x99f   : > { %10609 = vmatpush3.bf16.msra.mxu1 %v11940_v48 }
 0x9a0   : > { %10610 = vmatprep.subr.bf16.mxu1 %v11941_v52 }
 0x9a1   : > { %7539 = vmatpush1.bf16.msra.mxu0 %v11984_v49 }
 0x9a2   : > { %7540 = vmatprep.subr.bf16.mxu0 %v11992_v55 }
 0x9a3   : > { %10611 = vmatpush3.bf16.msra.mxu1 %v11942_v8  ;;  %v12011_v8 = vld [vmem:[%s15399_s8 + $0x678] ss:$12 sps:$4 sm:$0xff]  }
 0x9a4   : > { %10612 = vmatprep.subr.bf16.mxu1 %v11943_v34  ;;  %v12014_v34 = vld [vmem:[%s15399_s8 + $0x768] ss:$12 sps:$4 sm:$0xff]  }
 0x9a5   : > { %7541 = vmatpush1.bf16.msra.mxu0 %v11990_v57 }
 0x9a6   : > { %7542 = vmatprep.subr.bf16.mxu0 %v11998_v60 }
 0x9a7   : > { %10613 = vmatpush3.bf16.msra.mxu1 %v11944_v58 }
 0x9a8   : > { %10614 = vmatprep.subr.bf16.mxu1 %v11945_v50 }
 0x9a9   : > { %7543 = vmatpush1.bf16.msra.mxu0 %v11996_v39 }
 0x9aa   : > { %7544 = vmatprep.subr.bf16.mxu0 %v12004_v40 }
 0x9ab   : > { %10615 = vmatpush3.bf16.msra.mxu1 %v11946_v10 }
 0x9ac   : > { %10616 = vmatprep.subr.bf16.mxu1 %v11947_v17 }
 0x9ad   : > { %7545 = vmatpush1.bf16.msra.mxu0 %v12002_v27 }
 0x9ae   : > { %7546 = vmatprep.subr.bf16.mxu0 %v12010_v5 }
 0x9af   : > { %10617 = vmatpush3.bf16.msra.mxu1 %v11948_v21 }
 0x9b0   : > { %10618 = vmatprep.subr.bf16.mxu1 %v11949_v22 }
 0x9b1   : > { %7547 = vmatpush1.bf16.msra.mxu0 %v12008_v36 }
 0x9b2   : > { %7548 = vmatprep.subr.bf16.mxu0 %v12016_v63 }
 0x9b3   : > { %10619 = vmatpush3.bf16.msra.mxu1 %v11950_v23 }
 0x9b4   : > { %6843 = vmatprep.subr.bf16.mxu1 %v14091_v30  ;;  %v11951_v30 = vld [vmem:[%s15399_s8 + $0x540] ss:$12 sps:$4 sm:$0xff]  }
 0x9b5   : > { %7549 = vmatpush1.bf16.msra.mxu0 %v12014_v34  ;;  %v12036_v34 = vld [vmem:[%s15399_s8 + $0x6e0] ss:$12 sps:$4 sm:$0xff]  }
 0x9b6   : > { %6791 = vmatmul.mubr.bf16.vlgmr.msra.gmra.mrb[72].mxu1 %v5291_v7  ;;  %v12005_v7 = vld [vmem:[%s15399_s8 + $0x660] ss:$12 sps:$4 sm:$0xff]  }
 0x9b7   : > { %6844 = vmatpush1.bf16.msra.mxu1 %v14094_v14  ;;  %6875 = vmatprep.mubr.bf16.mxu1 %v12209_v4  ;;  %v11956_v14 = vld [vmem:[%s15399_s8 + $0x55c] ss:$12 sps:$4 sm:$0xff]  }
 0x9b8   : > { %6884 = vmatprep.subr.bf16.mxu1 %v14207_v11  ;;  %v11954_v11 = vld [vmem:[%s15399_s8 + $0x558] ss:$12 sps:$4 sm:$0xff]  }
 0x9be   : > { %10175 = vmatmul.mubr.msk.bf16.vlgmr.msra.gmra.mrb[76].mxu1 %vm5189_vm11, %v10174_v33 }
 0x9bf   : > { %6885 = vmatpush1.bf16.msra.mxu1 %v14210_v12  ;;  %6916 = vmatprep.mubr.bf16.mxu1 %v12209_v4  ;;  %v11959_v12 = vld [vmem:[%s15399_s8 + $0x574] ss:$12 sps:$4 sm:$0xff]  }
 0x9c0   : > { %7493 = vmatprep.subr.bf16.mxu1 %v11953_v18  ;;  %v12019_v18 = vld [vmem:[%s15399_s8 + $0x694] ss:$12 sps:$4 sm:$0xff]  }
 0x9c6   : > { %10176 = vmatmul.mubr.msk.bf16.vlgmr.msra.gmra.mrb[80].mxu1 %vm5189_vm11, %v10174_v33 }
 0x9c7   : > { %7494 = vmatpush1.bf16.msra.mxu1 %v11951_v30  ;;  %v12022_v30 = vld [vmem:[%s15399_s8 + $0x784] ss:$12 sps:$4 sm:$0xff]  }
 0x9c8   : > { %7495 = vmatprep.subr.bf16.mxu1 %v11956_v14  ;;  %v12017_v14 = vld [vmem:[%s15399_s8 + $0x690] ss:$12 sps:$4 sm:$0xff]   ;;  %7550 = vmatprep.subr.bf16.mxu0 %v12022_v30  ;;  %v12041_v30 = vld [vmem:[%s15399_s8 + $0x560] ss:$12 sps:$4 sm:$0xff]  }
 0x9c9   : > { %v14727_v24 = vpop.f32.mrb[56].mxu0 }
 0x9ca   : > { %v14729_v25 = vpop.f32.mrb[57].mxu0 }
 0x9cb   : > { %v6101_v26 = vpop.f32.mrb[58].mxu0  ;;  %7496 = vmatpush1.bf16.msra.mxu1 %v11954_v11  ;;  %v12020_v11 = vld [vmem:[%s15399_s8 + $0x780] ss:$12 sps:$4 sm:$0xff]  }
 0x9cc   : > { %v6102_v9 = vpop.f32.mrb[59].mxu0  ;;  %7497 = vmatprep.subr.bf16.mxu1 %v11959_v12  ;;  %7551 = vmatpush1.bf16.msra.mxu0 %v12020_v11  ;;  %v12025_v12 = vld [vmem:[%s15399_s8 + $0x6ac] ss:$12 sps:$4 sm:$0xff]  }
 0x9cd   : > { %v12026_v26 = vld [vmem:[%s15399_s8 + $0x798] ss:$12 sps:$4 sm:$0xff]   ;;  %v12029_v9 = vld [vmem:[%s15399_s8 + $0x7b0] ss:$12 sps:$4 sm:$0xff]  }
 0x9ce   : > { %v12043_v11 = vld [vmem:[%s15399_s8 + $0x638] ss:$12 sps:$4 sm:$0xff]  }
 0x9cf   : > { %7498 = vmatpush1.bf16.msra.mxu1 %v11957_v61  ;;  %v12031_v61 = vld [vmem:[%s15399_s8 + $0x7b4] ss:$12 sps:$4 sm:$0xff]  }
 0x9d0   : > { %7499 = vmatprep.subr.bf16.mxu1 %v11962_v13  ;;  %v12035_v13 = vld [vmem:[%s15399_s8 + $0x7cc] ss:$12 sps:$4 sm:$0xff]  }
 0x9d3   : > { %7500 = vmatpush1.bf16.msra.mxu1 %v11960_v1  ;;  %v12033_v1 = vld [vmem:[%s15399_s8 + $0x7c8] ss:$12 sps:$4 sm:$0xff]  }
 0x9d4   : > { %7501 = vmatprep.subr.bf16.mxu1 %v11965_v28  ;;  %v12037_v28 = vld [vmem:[%s15399_s8 + $0x608] ss:$12 sps:$4 sm:$0xff]  }
 0x9d7   : > { %7502 = vmatpush1.bf16.msra.mxu1 %v11963_v15 }
 0x9d8   : > { %7503 = vmatprep.subr.bf16.mxu1 %v11968_v29 }
 0x9db   : > { %7504 = vmatpush1.bf16.msra.mxu1 %v11966_v31 }
 0x9dc   : > { %7505 = vmatprep.subr.bf16.mxu1 %v11971_v43 }
 0x9df   : > { %7506 = vmatpush1.bf16.msra.mxu1 %v11969_v32 }
 0x9e0   : > { %7507 = vmatprep.subr.bf16.mxu1 %v11977_v45 }
 0x9e3   : > { %7508 = vmatpush1.bf16.msra.mxu1 %v11975_v16 }
 0x9e4   : > { %7509 = vmatprep.subr.bf16.mxu1 %v11983_v19 }
 0x9e7   : > { %7510 = vmatpush1.bf16.msra.mxu1 %v11981_v53 }
 0x9e8   : > { %7511 = vmatprep.subr.bf16.mxu1 %v11989_v51 }
 0x9eb   : > { %7512 = vmatpush1.bf16.msra.mxu1 %v11987_v56 }
 0x9ec   : > { %7513 = vmatprep.subr.bf16.mxu1 %v11995_v59 }
 0x9ef   : > { %7514 = vmatpush1.bf16.msra.mxu1 %v11993_v62 }
 0x9f0   : > { %7515 = vmatprep.subr.bf16.mxu1 %v12001_v3 }
 0x9f3   : > { %7516 = vmatpush1.bf16.msra.mxu1 %v11999_v2 }
 0x9f4   : > { %7517 = vmatprep.subr.bf16.mxu1 %v12007_v6 }
 0x9f7   : > { %7518 = vmatpush1.bf16.msra.mxu1 %v12005_v7 }
 0x9f8   : > { %7519 = vmatprep.subr.bf16.mxu1 %v12013_v42 }
 0x9fb   : > { %7520 = vmatpush1.bf16.msra.mxu1 %v12011_v8 }
 0x9fc   : > { %7521 = vmatprep.subr.bf16.mxu1 %v12019_v18  ;;  %v12040_v18 = vld [vmem:[%s15399_s8 + $0x620] ss:$12 sps:$4 sm:$0xff]  }
 0x9ff   : > { %7522 = vmatpush1.bf16.msra.mxu1 %v12017_v14  ;;  %v12042_v14 = vld [vmem:[%s15399_s8 + $0x710] ss:$12 sps:$4 sm:$0xff]  }
 0xa00   : > { %7523 = vmatprep.subr.bf16.mxu1 %v12025_v12  ;;  %v12044_v12 = vld [vmem:[%s15399_s8 + $0x578] ss:$12 sps:$4 sm:$0xff]  }
 0xa09   : > { %v6138_v48 = vpop.f32.mrb[60].mxu1  ;;  %v6219_v52 = vpop.f32.mrb[60].mxu0 }
 0xa0a   : > { %v6139_v58 = vadd.f32 %v6138_v48, %v14727_v24  ;;  %v6140_v50 = vpop.f32.mrb[61].mxu1  ;;  %v6221_v10 = vpop.f32.mrb[61].mxu0  ;;  %v12028_v24 = vld [vmem:[%s15399_s8 + $0x79c] ss:$12 sps:$4 sm:$0xff]  }
 0xa0b   : > { %v6141_v17 = vadd.f32 %v6140_v50, %v14729_v25  ;;  %v6142_v21 = vpop.f32.mrb[62].mxu1  ;;  %v6222_v22 = vpop.f32.mrb[62].mxu0  ;;  %v12023_v25 = vld [vmem:[%s15399_s8 + $0x6a8] ss:$12 sps:$4 sm:$0xff]   ;;  %7552 = vmatprep.subr.bf16.mxu0 %v12028_v24 }
 0xa0c   : > { %v6143_v23 = vpop.f32.mrb[63].mxu1  ;;  %v6223_v33 = vpop.f32.mrb[63].mxu0  ;;  %7524 = vmatpush1.bf16.msra.mxu1 %v12023_v25  ;;  %7553 = vmatpush1.bf16.msra.mxu0 %v12026_v26  ;;  %v12032_v48 = vld [vmem:[%s15399_s8 + $0x6c8] ss:$12 sps:$4 sm:$0xff]   ;;  %v12046_v25 = vld [vmem:[%s15399_s8 + $0x650] ss:$12 sps:$4 sm:$0xff]  }
 0xa0d   : > { %7615 = vmatprep.subr.bf16.mxu1 %v12209_v4  ;;  %7554 = vmatprep.subr.bf16.mxu0 %v12031_v61  ;;  %v12038_v22 = vld [vmem:[%s15399_s8 + $0x548] ss:$12 sps:$4 sm:$0xff]   ;;  %v12039_v23 = vld [vmem:[%s15399_s8 + $0x6f8] ss:$12 sps:$4 sm:$0xff]   ;;  %v12047_v26 = vld [vmem:[%s15399_s8 + $0x590] ss:$12 sps:$4 sm:$0xff]  }
 0xa0e   : > { %v12045_v24 = vld [vmem:[%s15399_s8 + $0x728] ss:$12 sps:$4 sm:$0xff]   ;;  %v12048_v61 = vld [vmem:[%s15399_s8 + $0x740] ss:$12 sps:$4 sm:$0xff]  }
 0xa10   : > { %7555 = vmatpush1.bf16.msra.mxu0 %v12029_v9  ;;  %v12049_v9 = vld [vmem:[%s15399_s8 + $0x668] ss:$12 sps:$4 sm:$0xff]  }
 0xa11   : > { %7556 = vmatprep.subr.bf16.mxu0 %v12035_v13  ;;  %v12050_v13 = vld [vmem:[%s15399_s8 + $0x5a8] ss:$12 sps:$4 sm:$0xff]  }
 0xa14   : > { %7557 = vmatpush1.bf16.msra.mxu0 %v12033_v1  ;;  %v12051_v1 = vld [vmem:[%s15399_s8 + $0x758] ss:$12 sps:$4 sm:$0xff]  }
 0xa15   : > { %10626 = vmatprep.subr.bf16.mxu0 %v12037_v28  ;;  %v12052_v28 = vld [vmem:[%s15399_s8 + $0x680] ss:$12 sps:$4 sm:$0xff]  }
 0xa29   : > { %v10598_v15 = vpop.f32.mrb[64].mxu1 }
 0xa2a   : > { %v10599_v29 = vpop.f32.mrb[65].mxu1 }
 0xa2b   : > { %v10600_v31 = vadd.f32 %v10599_v29, %v10598_v15  ;;  %v10601_v43 = vpop.f32.mrb[66].mxu1  ;;  %v12053_v15 = vld [vmem:[%s15399_s8 + $0x5c0] ss:$12 sps:$4 sm:$0xff]   ;;  %v12054_v29 = vld [vmem:[%s15399_s8 + $0x770] ss:$12 sps:$4 sm:$0xff]  }
 0xa2c   : > { %v10602_v54 = vpop.f32.mrb[67].mxu1  ;;  %v12056_v43 = vld [vmem:[%s15399_s8 + $0x5d8] ss:$12 sps:$4 sm:$0xff]  }
 0xa2d   : > { %v6220_v32 = vadd.f32 %v10600_v31, %v6219_v52  ;;  %v12055_v31 = vld [vmem:[%s15399_s8 + $0x698] ss:$12 sps:$4 sm:$0xff]   ;;  %v12057_v54 = vld [vmem:[%s15399_s8 + $0x788] ss:$12 sps:$4 sm:$0xff]  }
 0xa3a   : > { %v6751_v44 = vpop.f32.mrb[64].mxu0 }
 0xa3b   : > { %v6753_v45 = vpop.f32.mrb[65].mxu0 }
 0xa3c   : > { %v6755_v46 = vpop.f32.mrb[66].mxu0 }
 0xa3d   : > { %v6756_v16 = vpop.f32.mrb[67].mxu0  ;;  %v12061_v46 = vld [vmem:[%s15399_s8 + $0x7b8] ss:$12 sps:$4 sm:$0xff]  }
 0xa3e   : > { %v12062_v16 = vld [vmem:[%s15399_s8 + $0x7d0] ss:$12 sps:$4 sm:$0xff]  }
 0xa69   : > { %v6710_v20 = vpop.f32.mrb[68].mxu1 }
 0xa6a   : > { %v6711_v19 = vadd.f32 %v6710_v20, %v6139_v58  ;;  %v6832_v47 = vpop.f32.mrb[68].mxu0  ;;  %v6712_v53 = vpop.f32.mrb[69].mxu1 }
 0xa6b   : > { %v6713_v49 = vadd.f32 %v6712_v53, %v6141_v17  ;;  %v6834_v51 = vpop.f32.mrb[69].mxu0  ;;  %v6714_v55 = vpop.f32.mrb[70].mxu1 }
 0xa6c   : > { %v14890_v56 = vadd.f32 %v6751_v44, %v6711_v19  ;;  %v6835_v57 = vpop.f32.mrb[70].mxu0  ;;  %v6715_v59 = vpop.f32.mrb[71].mxu1  ;;  %v12059_v44 = vld [vmem:[%s15399_s8 + $0x5f0] ss:$12 sps:$4 sm:$0xff]  }
 0xa6d   : > { %v14892_v60 = vadd.f32 %v6753_v45, %v6713_v49  ;;  %v6836_v62 = vpop.f32.mrb[71].mxu0  ;;  %v12060_v45 = vld [vmem:[%s15399_s8 + $0x7a0] ss:$12 sps:$4 sm:$0xff]  }
 0xa6e   : > { %v7658_v49 = vld [vmem:[%s15400_s9] sm:$0x7] }
 0xa6f   : > { %v7663_v57 = vrot.slane %v7658_v49, %v12869_v37 }
 0xa89   : > { %v10620_v39 = vpop.f32.mrb[72].mxu1 }
 0xa8a   : > { %v10621_v3 = vpop.f32.mrb[73].mxu1 }
 0xa8b   : > { %v10622_v40 = vadd.f32 %v10621_v3, %v10620_v39  ;;  %v10623_v2 = vpop.f32.mrb[74].mxu1  ;;  %v7667_v39 = vrot.slane %v7658_v49, %v12878_v41  ;;  %v7684_v41 = vld [vmem:[%s15401_s10] sm:$0x1] }
 0xa8c   : > { %v10624_v27 = vpop.f32.mrb[75].mxu1 }
 0xa8d   : > { %v6793_v6 = vadd.f32 %v10622_v40, %v6220_v32  ;;  %v12058_v32 = vld [vmem:[%s15399_s8 + $0x6b0] ss:$12 sps:$4 sm:$0xff]  }
 0xa8f   : > { %v14894_v5 = vadd.f32 %v6832_v47, %v6793_v6 }
 0xa91   : > { %v6877_v7 = vpop.f32.mrb[76].mxu1 }
 0xa92   : > { %v6879_v36 = vpop.f32.mrb[77].mxu1  ;;  %v14899_v52 = vpack.c.bf16 %v6877_v7, %v6877_v7 }
 0xa93   : > { %v6926_v42 = vpack.c.bf16 %v6879_v36, %v6879_v36  ;;  %v6881_v63 = vpop.f32.mrb[78].mxu1 }
 0xa94   : > { %v6882_v8 = vpop.f32.mrb[79].mxu1 }
 0xa95   : > { %7525 = vmatprep.mubr.bf16.mxu1 %v6926_v42 }
 0xa96   : > { %7526 = vmatmul.mubr.bf16.vlgmr.msra.gmra.mrb[84].mxu1 %v14899_v52 }
 0xa97   : > { %7616 = vmatpush1.bf16.msra.mxu1 %v12032_v48 }
 0xa98   : > { %7617 = vmatprep.subr.bf16.mxu1 %v12209_v4 }
 0xa99   : > { %v6918_v58 = vpop.f32.mrb[80].mxu1 }
 0xa9a   : > { %v14906_v50 = vpack.c.bf16 %v6918_v58, %v6918_v58  ;;  %v6920_v10 = vpop.f32.mrb[81].mxu1 }
 0xa9b   : > { %v6928_v17 = vpack.c.bf16 %v6920_v10, %v6920_v10  ;;  %7618 = vmatpush1.bf16.msra.mxu1 %v12036_v34  ;;  %v6922_v21 = vpop.f32.mrb[82].mxu1 }
 0xa9c   : > { %7619 = vmatprep.subr.bf16.mxu1 %v12209_v4  ;;  %v6923_v33 = vpop.f32.mrb[83].mxu1 }
 0xa9d   : > { %10373 = vmatprep.mubr.msk.bf16.mxu0 %vm6059_vm12, %v6928_v17  ;;  %10374 = vmatprep.mubr.msk.bf16.mxu1 %vm6059_vm12, %v6928_v17  ;;  %v7671_v17 = vrot.slane %v7658_v49, %v12872_v38  ;;  %v12063_v38 = vld [vmem:[%s15402_s11 + $0x140] sm:$0xff]  }
 0xa9e   : > { %7567 = vmatmul.mubr.bf16.vlgmr.msra.gmra.mrb[72].mxu0 %v14906_v50 }
 0xa9f   : > { %10627 = vmatpush3.bf16.msra.mxu0 %v12038_v22  ;;  %7620 = vmatpush1.bf16.msra.mxu1 %v12039_v23 }
 0xaa0   : > { %7607 = vmatprep.mubr.bf16.mxu0 %v6926_v42  ;;  %10628 = vmatprep.subr.bf16.mxu0 %v12040_v18 }
 0xaa1   : > { %7621 = vmatprep.subr.bf16.mxu1 %v12209_v4 }
 0xaa3   : > { %10629 = vmatpush3.bf16.msra.mxu0 %v12041_v30  ;;  %7622 = vmatpush1.bf16.msra.mxu1 %v12042_v14 }
 0xaa4   : > { %10630 = vmatprep.subr.bf16.mxu0 %v12043_v11  ;;  %7623 = vmatprep.subr.bf16.mxu1 %v12209_v4 }
 0xaa7   : > { %10631 = vmatpush3.bf16.msra.mxu0 %v12044_v12  ;;  %7624 = vmatpush1.bf16.msra.mxu1 %v12045_v24  ;;  %v10377_v12 = vld [vmem:[%s15401_s10 + $0x1] sm:$0x1] }
 0xaa8   : > { %10632 = vmatprep.subr.bf16.mxu0 %v12046_v25  ;;  %7625 = vmatprep.subr.bf16.mxu1 %v12209_v4  ;;  %v12067_v24 = vld [vmem:[%s15402_s11 + $0xc0] sm:$0xff]   ;;  %v12065_v25 = vld [vmem:[%s15402_s11 + $0x150] sm:$0xff]  }
 0xaab   : > { %10633 = vmatpush3.bf16.msra.mxu0 %v12047_v26  ;;  %7626 = vmatpush1.bf16.msra.mxu1 %v12048_v61  ;;  %v12069_v26 = vld [vmem:[%s15402_s11 + $0x108] sm:$0xff]  }
 0xaac   : > { %10634 = vmatprep.subr.bf16.mxu0 %v12049_v9  ;;  %7627 = vmatprep.subr.bf16.mxu1 %v12209_v4  ;;  %v12070_v61 = vld [vmem:[%s15402_s11 + $0xc8] sm:$0xff]   ;;  %v12068_v9 = vld [vmem:[%s15402_s11 + $0x158] sm:$0xff]  }
 0xaaf   : > { %10635 = vmatpush3.bf16.msra.mxu0 %v12050_v13  ;;  %7628 = vmatpush1.bf16.msra.mxu1 %v12051_v1  ;;  %v12072_v13 = vld [vmem:[%s15402_s11 + $0x110] sm:$0xff]  }
 0xab0   : > { %10636 = vmatprep.subr.bf16.mxu0 %v12052_v28  ;;  %7629 = vmatprep.subr.bf16.mxu1 %v12209_v4  ;;  %v12073_v1 = vld [vmem:[%s15402_s11 + $0xd0] sm:$0xff]   ;;  %v12071_v28 = vld [vmem:[%s15402_s11 + $0x160] sm:$0xff]  }
 0xab3   : > { %10637 = vmatpush3.bf16.msra.mxu0 %v12053_v15  ;;  %7630 = vmatpush1.bf16.msra.mxu1 %v12054_v29  ;;  %v12075_v15 = vld [vmem:[%s15402_s11 + $0x118] sm:$0xff]   ;;  %v12074_v29 = vld [vmem:[%s15402_s11 + $0x168] sm:$0xff]  }
 0xab4   : > { %10638 = vmatprep.subr.bf16.mxu0 %v12055_v31  ;;  %7631 = vmatprep.subr.bf16.mxu1 %v12209_v4  ;;  %v12076_v31 = vld [vmem:[%s15402_s11 + $0xd8] sm:$0xff]  }
 0xab7   : > { %10639 = vmatpush3.bf16.msra.mxu0 %v12056_v43  ;;  %7632 = vmatpush1.bf16.msra.mxu1 %v12057_v54  ;;  %v12077_v43 = vld [vmem:[%s15402_s11 + $0x170] sm:$0xff]   ;;  %v12078_v54 = vld [vmem:[%s15402_s11 + $0x120] sm:$0xff]  }
 0xab8   : > { %10640 = vmatprep.subr.bf16.mxu0 %v12058_v32  ;;  %7633 = vmatprep.subr.bf16.mxu1 %v12209_v4  ;;  %v12079_v32 = vld [vmem:[%s15402_s11 + $0xe0] sm:$0xff]  }
 0xabb   : > { %10641 = vmatpush3.bf16.msra.mxu0 %v12059_v44  ;;  %7634 = vmatpush1.bf16.msra.mxu1 %v12060_v45  ;;  %v12080_v44 = vld [vmem:[%s15402_s11 + $0x178] sm:$0xff]   ;;  %v12081_v45 = vld [vmem:[%s15402_s11 + $0x128] sm:$0xff]  }
 0xabc   : > { %7635 = vmatprep.subr.bf16.mxu1 %v12209_v4 }
 0xabe   : > { %7608 = vmatmul.mubr.bf16.vlgmr.msra.gmra.mrb[76].mxu0 %v14899_v52 }
 0xabf   : > { %7636 = vmatpush1.bf16.msra.mxu1 %v12061_v46  ;;  %7730 = vmatprep.mubr.bf16.mxu0 %v12209_v4  ;;  %v12082_v46 = vld [vmem:[%s15402_s11 + $0xe8] sm:$0xff]  }
 0xac0   : > { %7637 = vmatprep.subr.bf16.mxu1 %v12209_v4 }
 0xac3   : > { %7638 = vmatpush1.bf16.msra.mxu1 %v12062_v16  ;;  %v12084_v16 = vld [vmem:[%s15402_s11 + $0x130] sm:$0xff]  }
 0xac4   : > { %10811 = vmatprep.subr.bf16.mxu1 %v12207_v0 }
 0xac6   : > { %7648 = vmatmul.mubr.bf16.vlgmr.msra.gmra.mrb[88].mxu1 %v14906_v50 }
 0xac7   : > { %10813 = vmatprep.mubr.msk.bf16.mxu1 %vm12208_vm0, %v12207_v0 }
 0xb69   : > { %v7527_v20 = vpop.f32.mrb[84].mxu1 }
 0xb6a   : > { %v7529_v19 = vpop.f32.mrb[85].mxu1 }
 0xb6b   : > { %v7531_v47 = vpop.f32.mrb[86].mxu1 }
 0xb6c   : > { %v7532_v53 = vpop.f32.mrb[87].mxu1  ;;  %v12088_v47 = vld [vmem:[%s15402_s11 + $0xf8] sm:$0xff]  }
 0xb6d   : > { %v12090_v53 = vld [vmem:[%s15402_s11 + $0x40] sm:$0xff]  }
 0xb71   : > { %v7568_v51 = vpop.f32.mrb[72].mxu0 }
 0xb72   : > { %v7569_v55 = vadd.f32 %v7568_v51, %v7527_v20  ;;  %v7570_v59 = vpop.f32.mrb[73].mxu0  ;;  %v12085_v20 = vld [vmem:[%s15402_s11 + $0xf0] sm:$0xff]  }
 0xb73   : > { %v7571_v62 = vadd.f32 %v7570_v59, %v7529_v19  ;;  %v7572_v3 = vpop.f32.mrb[74].mxu0  ;;  %v12087_v19 = vld [vmem:[%s15402_s11 + $0x138] sm:$0xff]  }
 0xb74   : > { %v7655_v40 = vadd.f32 %v7569_v55, %v14890_v56  ;;  %v7573_v2 = vpop.f32.mrb[75].mxu0 }
 0xb75   : > { %v7656_v27 = vadd.f32 %v7571_v62, %v14892_v60 }
 0xb76   : > { %v7675_v6 = vadd.f32 %v7663_v57, %v7655_v40 }
 0xb77   : > { %v7676_v7 = vadd.f32 %v7667_v39, %v7656_v27  ;;  %v12083_v39 = vld [vmem:[%s15402_s11 + $0x80] sm:$0xff]  }
 0xb78   : > { %v7678_v36 = vmax.f32 %v7675_v6, 0.0 }
 0xb79   : > { %v7679_v42 = vmax.f32 %v7676_v7, 0.0 }
 0xb7a   : > { %v7681_v63 = vpack.c.bf16 %v7678_v36, %v7678_v36 }
 0xb7b   : > { %v7682_v48 = vpack.c.bf16 %v7679_v42, %v7679_v42  ;;  %v12086_v42 = vld [vmem:[%s15402_s11 + $0x88] sm:$0xff]  }
 0xb7c   : > { %v15013_v37 = vand.u32 %v7681_v63, %v12460_v35 }
 0xb7d   : > { %v15010_v52 = vand.u32 %v7682_v48, %v12460_v35  ;;  %v12089_v48 = vld [vmem:[%s15402_s11 + $0x90] sm:$0xff]  }
 0xb7f   : > { %7698 = vmatprep.subr.bf16.mxu0 %v15010_v52 }
 0xb80   : > { %7699 = vmatpush1.bf16.msra.mxu0 %v15013_v37 }
 0xb81   : > { %10805 = vmatprep.subr.bf16.mxu0 %v12207_v0 }
 0xb83   : > { %10375 = vmatmul.mubr.msk.bf16.vlgmr.msra.gmra.mrb[80].mxu0 %vm7685_vm13, %v7684_v41 }
 0xb84   : > { %10807 = vmatprep.mubr.msk.bf16.mxu0 %vm12208_vm0, %v12207_v0 }
 0xb91   : > { %v10642_v56 = vpop.f32.mrb[76].mxu0 }
 0xb92   : > { %v10643_v60 = vpop.f32.mrb[77].mxu0 }
 0xb93   : > { %v10644_v8 = vadd.f32 %v10643_v60, %v10642_v56  ;;  %v10645_v34 = vpop.f32.mrb[78].mxu0 }
 0xb94   : > { %v10646_v58 = vpop.f32.mrb[79].mxu0 }
 0xb99   : > { %v7649_v50 = vpop.f32.mrb[88].mxu1 }
 0xb9a   : > { %v7650_v10 = vadd.f32 %v10644_v8, %v7649_v50  ;;  %v7651_v21 = vpop.f32.mrb[89].mxu1  ;;  %v12091_v8 = vld [vmem:[%s15402_s11] sm:$0xff]   ;;  %v12093_v50 = vld [vmem:[%s15402_s11 + $0x48] sm:$0xff]  }
 0xb9b   : > { %v7652_v22 = vpop.f32.mrb[90].mxu1  ;;  %v12094_v21 = vld [vmem:[%s15402_s11 + $0x8] sm:$0xff]  }
 0xb9c   : > { %v7657_v23 = vadd.f32 %v7650_v10, %v14894_v5  ;;  %v7653_v33 = vpop.f32.mrb[91].mxu1  ;;  %v12064_v5 = vld [vmem:[%s15402_s11 + $0x148] sm:$0xff]   ;;  %v12096_v22 = vld [vmem:[%s15402_s11 + $0x50] sm:$0xff]  }
 0xb9d   : > { %v12097_v33 = vld [vmem:[%s15402_s11 + $0x10] sm:$0xff]  }
 0xb9e   : > { %v7677_v18 = vadd.f32 %v7671_v17, %v7657_v23  ;;  %v12092_v17 = vld [vmem:[%s15402_s11 + $0x98] sm:$0xff]   ;;  %v12095_v23 = vld [vmem:[%s15402_s11 + $0xa0] sm:$0xff]  }
 0xba0   : > { %v7680_v30 = vmax.f32 %v7677_v18, 0.0  ;;  %v12099_v18 = vld [vmem:[%s15402_s11 + $0x58] sm:$0xff]  }
 0xba2   : > { %v7683_v14 = vpack.c.bf16 %v7680_v30, %v7680_v30  ;;  %v12098_v30 = vld [vmem:[%s15402_s11 + $0xa8] sm:$0xff]  }
 0xba4   : > { %v15027_v11 = vand.u32 %v7683_v14, %v12460_v35  ;;  %v12066_v35 = vld [vmem:[%s15402_s11 + $0x100] sm:$0xff]   ;;  %v12100_v14 = vld [vmem:[%s15402_s11 + $0x18] sm:$0xff]  }
 0xba6   : > { %10806 = vmatpush3.bf16.msra.mxu0 %v15027_v11  ;;  %10812 = vmatpush3.bf16.msra.mxu1 %v15027_v11 }
 0xba7   : > { %7835 = vmatprep.subr.bf16.mxu0 %v15010_v52  ;;  %10817 = vmatprep.subr.bf16.mxu1 %v12207_v0 }
 0xba9   : > { %10808 = vmatmul.mubr.msk.bf16.vlgmr.msra.gmra.mrb[84].mxu0 %vm7685_vm13, %v7684_v41  ;;  %10814 = vmatmul.mubr.msk.bf16.vlgmr.msra.gmra.mrb[92].mxu1 %vm7685_vm13, %v10377_v12 }
 0xbaa   : > { %7836 = vmatpush1.bf16.msra.mxu0 %v15013_v37  ;;  %7867 = vmatprep.mubr.bf16.mxu0 %v12209_v4 }
 0xbab   : > { %10818 = vmatpush3.bf16.msra.mxu1 %v12063_v38  ;;  %10652 = vmatprep.subr.bf16.mxu0 %v12066_v35  ;;  %v12101_v38 = vld [vmem:[%s15402_s11 + $0xb0] sm:$0xff]   ;;  %v12103_v35 = vld [vmem:[%s15402_s11 + $0x20] sm:$0xff]  }
 0xbac   : > { %10819 = vmatprep.subr.bf16.mxu1 %v12207_v0  ;;  %10833 = vmatprep.mubr.msk.bf16.mxu1 %vm12208_vm0, %v12207_v0 }
 0xbaf   : > { %10820 = vmatpush3.bf16.msra.mxu1 %v12064_v5  ;;  %v12105_v5 = vld [vmem:[%s15402_s11 + $0x68] sm:$0xff]  }
 0xbb0   : > { %10821 = vmatprep.subr.bf16.mxu1 %v12207_v0 }
 0xbb1   : > { %10378 = vmatmul.mubr.msk.bf16.vlgmr.msra.gmra.mrb[88].mxu0 %vm7685_vm13, %v10377_v12  ;;  %v12102_v12 = vld [vmem:[%s15402_s11 + $0x60] sm:$0xff]  }
 0xbb2   : > { %10653 = vmatpush3.bf16.msra.mxu0 %v12067_v24  ;;  %v12104_v24 = vld [vmem:[%s15402_s11 + $0xb8] sm:$0xff]  }
 0xbb3   : > { %10822 = vmatpush3.bf16.msra.mxu1 %v12065_v25  ;;  %10654 = vmatprep.subr.bf16.mxu0 %v12069_v26  ;;  %v12106_v25 = vld [vmem:[%s15402_s11 + $0x28] sm:$0xff]   ;;  %v12107_v26 = vld [vmem:[%s15402_s11 + $0x70] sm:$0xff]  }
 0xbb4   : > { %10823 = vmatprep.subr.bf16.mxu1 %v12207_v0 }
 0xbb6   : > { %10655 = vmatpush3.bf16.msra.mxu0 %v12070_v61 }
 0xbb7   : > { %10824 = vmatpush3.bf16.msra.mxu1 %v12068_v9  ;;  %10656 = vmatprep.subr.bf16.mxu0 %v12072_v13  ;;  %v12108_v9 = vld [vmem:[%s15402_s11 + $0x30] sm:$0xff]   ;;  %v12109_v13 = vld [vmem:[%s15402_s11 + $0x78] sm:$0xff]  }
 0xbb8   : > { %10825 = vmatprep.subr.bf16.mxu1 %v12207_v0 }
 0xbba   : > { %10657 = vmatpush3.bf16.msra.mxu0 %v12073_v1  ;;  %v12110_v1 = vld [vmem:[%s15402_s11 + $0x38] sm:$0xff]  }
 0xbbb   : > { %10826 = vmatpush3.bf16.msra.mxu1 %v12071_v28  ;;  %10658 = vmatprep.subr.bf16.mxu0 %v12075_v15  ;;  %v10476_v28 = vld [vmem:[%s15401_s10 + $0x2] sm:$0x1] }
 0xbbc   : > { %10827 = vmatprep.subr.bf16.mxu1 %v12207_v0 }
 0xbbe   : > { %10659 = vmatpush3.bf16.msra.mxu0 %v12076_v31  ;;  %v12117_v31 = vld [vmem:[%s15402_s11 + $0x208] sm:$0xff]  }
 0xbbf   : > { %10828 = vmatpush3.bf16.msra.mxu1 %v12074_v29  ;;  %10660 = vmatprep.subr.bf16.mxu0 %v12078_v54  ;;  %v12113_v29 = vld [vmem:[%s15402_s11 + $0x1c8] sm:$0xff]   ;;  %v12118_v54 = vld [vmem:[%s15402_s11 + $0x190] sm:$0xff]  }
 0xbc0   : > { %10829 = vmatprep.subr.bf16.mxu1 %v12207_v0 }
 0xbc2   : > { %10661 = vmatpush3.bf16.msra.mxu0 %v12079_v32  ;;  %v12120_v32 = vld [vmem:[%s15402_s11 + $0x210] sm:$0xff]  }
 0xbc3   : > { %10830 = vmatpush3.bf16.msra.mxu1 %v12077_v43  ;;  %10662 = vmatprep.subr.bf16.mxu0 %v12081_v45  ;;  %v12116_v43 = vld [vmem:[%s15402_s11 + $0x1d0] sm:$0xff]   ;;  %v12121_v45 = vld [vmem:[%s15402_s11 + $0x198] sm:$0xff]  }
 0xbc4   : > { %10831 = vmatprep.subr.bf16.mxu1 %v12207_v0 }
 0xbc6   : > { %10663 = vmatpush3.bf16.msra.mxu0 %v12082_v46  ;;  %v12123_v46 = vld [vmem:[%s15402_s11 + $0x218] sm:$0xff]  }
 0xbc7   : > { %10832 = vmatpush3.bf16.msra.mxu1 %v12080_v44  ;;  %10664 = vmatprep.subr.bf16.mxu0 %v12084_v16  ;;  %v12119_v44 = vld [vmem:[%s15402_s11 + $0x1d8] sm:$0xff]   ;;  %v12122_v16 = vld [vmem:[%s15402_s11 + $0x1e0] sm:$0xff]  }
 0xbc8   : > { %10837 = vmatprep.subr.bf16.mxu1 %v12207_v0 }
 0xbca   : > { %10665 = vmatpush3.bf16.msra.mxu0 %v12085_v20  ;;  %v12124_v20 = vld [vmem:[%s15402_s11 + $0x1a0] sm:$0xff]  }
 0xbcb   : > { %10666 = vmatprep.subr.bf16.mxu0 %v12087_v19  ;;  %v12126_v19 = vld [vmem:[%s15402_s11 + $0x220] sm:$0xff]  }
 0xbce   : > { %10667 = vmatpush3.bf16.msra.mxu0 %v12088_v47  ;;  %v12125_v47 = vld [vmem:[%s15402_s11 + $0x1e8] sm:$0xff]  }
 0xbcf   : > { %10683 = vmatprep.subr.bf16.mxu0 %v12090_v53  ;;  %v12127_v53 = vld [vmem:[%s15402_s11 + $0x1a8] sm:$0xff]  }
 0xc56   : > { %v15126_v49 = vpop.f32.mrb[80].mxu0 }
 0xc57   : > { %v7734_v51 = vpop.f32.mrb[81].mxu0  ;;  %v7779_v15 = vpack.c.bf16 %v15126_v49, %v15126_v49  ;;  %v12129_v49 = vld [vmem:[%s15402_s11 + $0x228] sm:$0xff]  }
 0xc58   : > { %v7736_v55 = vpop.f32.mrb[82].mxu0  ;;  %v7780_v10 = vpack.c.bf16 %v7734_v51, %v7734_v51  ;;  %v12128_v51 = vld [vmem:[%s15402_s11 + $0x1f0] sm:$0xff]  }
 0xc59   : > { %v7737_v57 = vpop.f32.mrb[83].mxu0  ;;  %v12130_v55 = vld [vmem:[%s15402_s11 + $0x1b0] sm:$0xff]  }
 0xc5a   : > { %v12132_v57 = vld [vmem:[%s15402_s11 + $0x230] sm:$0xff]  }
 0xc7c   : > { %v7910_v59 = vpop.f32.mrb[92].mxu1  ;;  %v15128_v62 = vpop.f32.mrb[84].mxu0 }
 0xc7d   : > { %v7918_v3 = vpack.c.bf16 %v7910_v59, %v7910_v59  ;;  %v10809_v40 = vpop.f32.mrb[85].mxu0  ;;  %v10815_v2 = vpop.f32.mrb[93].mxu1  ;;  %v7781_v61 = vpack.c.bf16 %v15128_v62, %v15128_v62  ;;  %v12131_v59 = vld [vmem:[%s15402_s11 + $0x1f8] sm:$0xff]  }
 0xc7e   : > { %v7776_v27 = vpop.f32.mrb[86].mxu0  ;;  %v7913_v6 = vpop.f32.mrb[94].mxu1  ;;  %v12133_v62 = vld [vmem:[%s15402_s11 + $0x1b8] sm:$0xff]  }
 0xc7f   : > { %10834 = vmatmul.mubr.bf16.vlgmr.msra.gmra.mrb[96].mxu1 %v7918_v3  ;;  %v10810_v7 = vpop.f32.mrb[87].mxu0  ;;  %v10816_v36 = vpop.f32.mrb[95].mxu1 }
 0xc80   : > { %10838 = vmatpush3.bf16.msra.mxu1 %v12083_v39  ;;  %10853 = vmatprep.mubr.msk.bf16.mxu1 %vm12208_vm0, %v12207_v0  ;;  %v12134_v39 = vld [vmem:[%s15402_s11 + $0x238] sm:$0xff]  }
 0xc81   : > { %10839 = vmatprep.subr.bf16.mxu1 %v12207_v0 }
 0xc84   : > { %10840 = vmatpush3.bf16.msra.mxu1 %v12086_v42  ;;  %v7869_v63 = vpop.f32.mrb[88].mxu0 }
 0xc85   : > { %v7871_v41 = vpop.f32.mrb[89].mxu0  ;;  %10841 = vmatprep.subr.bf16.mxu1 %v12207_v0  ;;  %v7916_v34 = vpack.c.bf16 %v7869_v63, %v7869_v63 }
 0xc86   : > { %v7917_v56 = vpack.c.bf16 %v7871_v41, %v7871_v41  ;;  %v7873_v60 = vpop.f32.mrb[90].mxu0 }
 0xc87   : > { %v7874_v58 = vpop.f32.mrb[91].mxu0 }
 0xc88   : > { %10842 = vmatpush3.bf16.msra.mxu1 %v12089_v48  ;;  %8144 = vmatprep.mubr.bf16.mxu0 %v7917_v56 }
 0xc89   : > { %8145 = vmatmul.mubr.bf16.vlgmr.msra.gmra.mrb[92].mxu0 %v7916_v34  ;;  %10843 = vmatprep.subr.bf16.mxu1 %v12207_v0 }
 0xc8a   : > { %10684 = vmatpush3.bf16.msra.mxu0 %v12091_v8  ;;  %8368 = vmatprep.mubr.bf16.mxu0 %v7780_v10 }
 0xc8b   : > { %10685 = vmatprep.subr.bf16.mxu0 %v12093_v50 }
 0xc8c   : > { %10844 = vmatpush3.bf16.msra.mxu1 %v12092_v17 }
 0xc8d   : > { %10845 = vmatprep.subr.bf16.mxu1 %v12207_v0 }
 0xc8e   : > { %10686 = vmatpush3.bf16.msra.mxu0 %v12094_v21 }
 0xc8f   : > { %10687 = vmatprep.subr.bf16.mxu0 %v12096_v22 }
 0xc90   : > { %10846 = vmatpush3.bf16.msra.mxu1 %v12095_v23 }
 0xc91   : > { %10847 = vmatprep.subr.bf16.mxu1 %v12207_v0 }
 0xc92   : > { %10688 = vmatpush3.bf16.msra.mxu0 %v12097_v33 }
 0xc93   : > { %10689 = vmatprep.subr.bf16.mxu0 %v12099_v18 }
 0xc94   : > { %10848 = vmatpush3.bf16.msra.mxu1 %v12098_v30 }
 0xc95   : > { %10849 = vmatprep.subr.bf16.mxu1 %v12207_v0 }
 0xc96   : > { %10690 = vmatpush3.bf16.msra.mxu0 %v12100_v14 }
 0xc97   : > { %10691 = vmatprep.subr.bf16.mxu0 %v12102_v12 }
 0xc98   : > { %10850 = vmatpush3.bf16.msra.mxu1 %v12101_v38 }
 0xc99   : > { %10851 = vmatprep.subr.bf16.mxu1 %v12207_v0 }
 0xc9a   : > { %10692 = vmatpush3.bf16.msra.mxu0 %v12103_v35 }
 0xc9b   : > { %10693 = vmatprep.subr.bf16.mxu0 %v12105_v5 }
 0xc9c   : > { %10852 = vmatpush3.bf16.msra.mxu1 %v12104_v24  ;;  %v12135_v24 = vld [vmem:[%s15404_s13] sm:$0xff]  }
 0xc9d   : > { %10857 = vmatprep.subr.bf16.mxu1 %v12207_v0 }
 0xc9e   : > { %10694 = vmatpush3.bf16.msra.mxu0 %v12106_v25 }
 0xc9f   : > { %10854 = vmatmul.mubr.bf16.vlgmr.msra.gmra.mrb[100].mxu1 %v7781_v61  ;;  %10695 = vmatprep.subr.bf16.mxu0 %v12107_v26  ;;  %v12136_v61 = vld [vmem:[%s15404_s13 + $0x8] sm:$0xff]  }
 0xca0   : > { %10858 = vmatpush3.bf16.msra.mxu1 %v15027_v11  ;;  %10859 = vmatprep.mubr.msk.bf16.mxu1 %vm12208_vm0, %v12207_v0  ;;  %v12111_v11 = vld [vmem:[%s15402_s11 + $0x1c0] sm:$0xff]  }
 0xca1   : > { %10863 = vmatprep.subr.bf16.mxu1 %v12207_v0 }
 0xca2   : > { %10696 = vmatpush3.bf16.msra.mxu0 %v12108_v9  ;;  %v12137_v9 = vld [vmem:[%s15404_s13 + $0x10] sm:$0xff]  }
 0xca3   : > { %10697 = vmatprep.subr.bf16.mxu0 %v12109_v13  ;;  %v12138_v13 = vld [vmem:[%s15404_s13 + $0x18] sm:$0xff]  }
 0xca6   : > { %10698 = vmatpush3.bf16.msra.mxu0 %v12110_v1 }
 0xca7   : > { %8421 = vmatprep.subr.bf16.mxu0 %v15010_v52  ;;  %10860 = vmatmul.mubr.msk.bf16.vlgmr.msra.gmra.mrb[104].mxu1 %vm7685_vm13, %v10476_v28  ;;  %v12112_v52 = vld [vmem:[%s15402_s11 + $0x180] sm:$0xff]  }
 0xca8   : > { %10879 = vmatprep.mubr.msk.bf16.mxu1 %vm12208_vm0, %v12207_v0 }
 0xca9   : > { %8369 = vmatmul.mubr.bf16.vlgmr.msra.gmra.mrb[96].mxu0 %v7779_v15 }
 0xcaa   : > { %8422 = vmatpush1.bf16.msra.mxu0 %v15013_v37  ;;  %8453 = vmatprep.mubr.bf16.mxu0 %v12209_v4  ;;  %v12114_v37 = vld [vmem:[%s15402_s11 + $0x200] sm:$0xff]   ;;  %v12115_v4 = vld [vmem:[%s15402_s11 + $0x188] sm:$0xff]  }
 0xcab   : > { %10716 = vmatprep.subr.bf16.mxu0 %v12111_v11  ;;  %10864 = vmatpush3.bf16.msra.mxu1 %v12114_v37 }
 0xcac   : > { %10865 = vmatprep.subr.bf16.mxu1 %v12207_v0 }
 0xcaf   : > { %10866 = vmatpush3.bf16.msra.mxu1 %v12117_v31 }
 0xcb0   : > { %10867 = vmatprep.subr.bf16.mxu1 %v12207_v0 }
 0xcb1   : > { %10477 = vmatmul.mubr.msk.bf16.vlgmr.msra.gmra.mrb[100].mxu0 %vm7685_vm13, %v10476_v28 }
 0xcb2   : > { %10717 = vmatpush3.bf16.msra.mxu0 %v12112_v52 }
 0xcb3   : > { %10718 = vmatprep.subr.bf16.mxu0 %v12113_v29  ;;  %10868 = vmatpush3.bf16.msra.mxu1 %v12120_v32 }
 0xcb4   : > { %10869 = vmatprep.subr.bf16.mxu1 %v12207_v0 }
 0xcb6   : > { %10719 = vmatpush3.bf16.msra.mxu0 %v12115_v4 }
 0xcb7   : > { %10720 = vmatprep.subr.bf16.mxu0 %v12116_v43  ;;  %10870 = vmatpush3.bf16.msra.mxu1 %v12123_v46 }
 0xcb8   : > { %10871 = vmatprep.subr.bf16.mxu1 %v12207_v0 }
 0xcba   : > { %10721 = vmatpush3.bf16.msra.mxu0 %v12118_v54  ;;  %v8779_v54 = vld [vmem:[%s15403_s12] sm:$0x1] }
 0xcbb   : > { %10722 = vmatprep.subr.bf16.mxu0 %v12119_v44  ;;  %10872 = vmatpush3.bf16.msra.mxu1 %v12126_v19  ;;  %v8791_v19 = vld [vmem:[%s15405_s14] sm:$0x1] }
 0xcbc   : > { %10873 = vmatprep.subr.bf16.mxu1 %v12207_v0 }
 0xcbe   : > { %10723 = vmatpush3.bf16.msra.mxu0 %v12121_v45 }
 0xcbf   : > { %10724 = vmatprep.subr.bf16.mxu0 %v12122_v16  ;;  %10874 = vmatpush3.bf16.msra.mxu1 %v12129_v49  ;;  %v12139_v16 = vld [vmem:[%s15406_s15] sm:$0xff]  }
 0xcc0   : > { %10875 = vmatprep.subr.bf16.mxu1 %v12207_v0 }
 0xcc2   : > { %10725 = vmatpush3.bf16.msra.mxu0 %v12124_v20  ;;  %v12140_v20 = vld [vmem:[%s15406_s15 + $0x8] sm:$0xff]  }
 0xcc3   : > { %10726 = vmatprep.subr.bf16.mxu0 %v12125_v47  ;;  %10876 = vmatpush3.bf16.msra.mxu1 %v12132_v57 }
 0xcc4   : > { %10877 = vmatprep.subr.bf16.mxu1 %v12207_v0 }
 0xcc6   : > { %10727 = vmatpush3.bf16.msra.mxu0 %v12127_v53 }
 0xcc7   : > { %10728 = vmatprep.subr.bf16.mxu0 %v12128_v51  ;;  %10878 = vmatpush3.bf16.msra.mxu1 %v12134_v39 }
 0xcc8   : > { %10895 = vmatprep.subr.bf16.mxu1 %v12207_v0 }
 0xcca   : > { %10729 = vmatpush3.bf16.msra.mxu0 %v12130_v55 }
 0xccb   : > { %10730 = vmatprep.subr.bf16.mxu0 %v12131_v59 }
 0xcce   : > { %10731 = vmatpush3.bf16.msra.mxu0 %v12133_v62 }
 0xccf   : > { %10883 = vmatprep.subr.bf16.mxu0 %v12207_v0 }
 0xd52   : > { %v8186_v3 = vpop.f32.mrb[96].mxu1 }
 0xd53   : > { %v10835_v40 = vpop.f32.mrb[97].mxu1 }
 0xd54   : > { %v8189_v2 = vpop.f32.mrb[98].mxu1 }
 0xd55   : > { %v10836_v27 = vpop.f32.mrb[99].mxu1 }
 0xd5c   : > { %v10668_v6 = vpop.f32.mrb[92].mxu0 }
 0xd5d   : > { %v10669_v7 = vpop.f32.mrb[93].mxu0 }
 0xd5e   : > { %v10670_v36 = vadd.f32 %v10669_v7, %v10668_v6  ;;  %v10671_v42 = vpop.f32.mrb[94].mxu0 }
 0xd5f   : > { %v10672_v63 = vpop.f32.mrb[95].mxu0 }
 0xd60   : > { %v8187_v48 = vadd.f32 %v10670_v36, %v8186_v3 }
 0xd72   : > { %v8410_v41 = vpop.f32.mrb[100].mxu1 }
 0xd73   : > { %v10855_v56 = vpop.f32.mrb[101].mxu1 }
 0xd74   : > { %v8413_v60 = vpop.f32.mrb[102].mxu1 }
 0xd75   : > { %v10856_v8 = vpop.f32.mrb[103].mxu1 }
 0xd7a   : > { %v8496_v34 = vpop.f32.mrb[104].mxu1 }
 0xd7b   : > { %v8504_v58 = vpack.c.bf16 %v8496_v34, %v8496_v34  ;;  %v10861_v50 = vpop.f32.mrb[105].mxu1 }
 0xd7c   : > { %v10699_v10 = vpop.f32.mrb[96].mxu0  ;;  %v8499_v17 = vpop.f32.mrb[106].mxu1 }
 0xd7d   : > { %v10700_v21 = vpop.f32.mrb[97].mxu0  ;;  %10880 = vmatmul.mubr.bf16.vlgmr.msra.gmra.mrb[108].mxu1 %v8504_v58  ;;  %v10862_v22 = vpop.f32.mrb[107].mxu1 }
 0xd7e   : > { %v10701_v23 = vadd.f32 %v10700_v21, %v10699_v10  ;;  %v10702_v33 = vpop.f32.mrb[98].mxu0  ;;  %10899 = vmatprep.mubr.msk.bf16.mxu1 %vm12208_vm0, %v12207_v0  ;;  %10896 = vmatpush3.bf16.msra.mxu1 %v12139_v16 }
 0xd7f   : > { %v10703_v18 = vpop.f32.mrb[99].mxu0  ;;  %10897 = vmatprep.subr.bf16.mxu1 %v12207_v0 }
 0xd80   : > { %v8371_v30 = vadd.f32 %v10701_v23, %v8187_v48 }
 0xd82   : > { %v8411_v14 = vadd.f32 %v8410_v41, %v8371_v30  ;;  %10898 = vmatpush3.bf16.msra.mxu1 %v12140_v20 }
 0xd84   : > { %v8455_v12 = vpop.f32.mrb[100].mxu0 }
 0xd85   : > { %v8457_v38 = vpop.f32.mrb[101].mxu0  ;;  %v8502_v25 = vpack.c.bf16 %v8455_v12, %v8455_v12 }
 0xd86   : > { %v8503_v35 = vpack.c.bf16 %v8457_v38, %v8457_v38  ;;  %v8459_v5 = vpop.f32.mrb[102].mxu0 }
 0xd87   : > { %v8460_v26 = vpop.f32.mrb[103].mxu0 }
 0xd88   : > { %8730 = vmatprep.mubr.bf16.mxu0 %v8503_v35 }
 0xd89   : > { %8731 = vmatmul.mubr.bf16.vlgmr.msra.gmra.mrb[104].mxu0 %v8502_v25 }
 0xd8a   : > { %10884 = vmatpush3.bf16.msra.mxu0 %v12135_v24  ;;  %10891 = vmatprep.mubr.msk.bf16.mxu0 %vm12208_vm0, %v12207_v0 }
 0xd8b   : > { %10885 = vmatprep.subr.bf16.mxu0 %v12207_v0 }
 0xd8e   : > { %10886 = vmatpush3.bf16.msra.mxu0 %v12136_v61 }
 0xd8f   : > { %10887 = vmatprep.subr.bf16.mxu0 %v12207_v0 }
 0xd92   : > { %10888 = vmatpush3.bf16.msra.mxu0 %v12137_v9 }
 0xd93   : > { %10889 = vmatprep.subr.bf16.mxu0 %v12207_v0  ;;  %v8865_v0 = vld [vmem:[%s15407_s16] sm:$0x1] }
 0xd96   : > { %10890 = vmatpush3.bf16.msra.mxu0 %v12138_v13 }
 0xe50   : > { %v8772_v1 = vpop.f32.mrb[108].mxu1 }
 0xe51   : > { %v10881_v28 = vpop.f32.mrb[109].mxu1 }
 0xe52   : > { %v8775_v15 = vpop.f32.mrb[110].mxu1 }
 0xe53   : > { %v10882_v11 = vpop.f32.mrb[111].mxu1 }
 0xe5c   : > { %v10732_v52 = vpop.f32.mrb[104].mxu0 }
 0xe5d   : > { %v10733_v29 = vpop.f32.mrb[105].mxu0 }
 0xe5e   : > { %v10734_v37 = vadd.f32 %v10733_v29, %v10732_v52  ;;  %v10735_v4 = vpop.f32.mrb[106].mxu0 }
 0xe5f   : > { %v10736_v31 = vpop.f32.mrb[107].mxu0 }
 0xe60   : > { %v8773_v43 = vadd.f32 %v10734_v37, %v8772_v1 }
 0xe62   : > { %v8778_v32 = vadd.f32 %v8773_v43, %v8411_v14 }
 0xe64   : > { %v8780_v44 = vadd.f32 %v8779_v54, %v8778_v32 }
 0xe66   : > { %v8781_v45 = vmax.f32 %v8780_v44, 0.0 }
 0xe68   : > { %v8782_v46 = vpack.c.bf16 %v8781_v45, %v8781_v45 }
 0xe6a   : > { %10892 = vmatmul.mubr.msk.bf16.vlgmr.msra.gmra.mrb[108].mxu0 %vm6059_vm12, %v8782_v46 }
 0xf3d   : > { %v8853_v47 = vpop.f32.mrb[108].mxu0 }
 0xf3e   : > { %v8854_v53 = vadd.f32 %v8853_v47, %v8791_v19  ;;  %v10893_v49 = vpop.f32.mrb[109].mxu0 }
 0xf3f   : > { %v8856_v51 = vpop.f32.mrb[110].mxu0 }
 0xf40   : > { %v8859_v55 = vmax.f32 %v8854_v53, 0.0  ;;  %v10894_v57 = vpop.f32.mrb[111].mxu0 }
 0xf42   : > { %v8860_v59 = vpack.c.bf16 %v8859_v55, %v8859_v55 }
 0xf44   : > { %10900 = vmatmul.mubr.msk.bf16.vlgmr.msra.gmra.mrb[112].mxu1 %vm8878_vm14, %v8860_v59 }
0x1017   : > { %v8916_v62 = vpop.f32.mrb[112].mxu1 }
0x1018   : > { %v8917_v39 = vadd.f32 %v8916_v62, %v8865_v0  ;;  %v10901_v3 = vpop.f32.mrb[113].mxu1 }
0x1019   : > { %v8919_v40 = vpop.f32.mrb[114].mxu1 }
0x101a   : > { %8922 = vst [vmem:[%s540_s23] sm:$0x1] %v8917_v39  ;;  %v10902_v2 = vpop.f32.mrb[115].mxu1 }
0x101b   : > { %12156 = shalt.err (!%p12153_p3)
}
0x101c   : > { %s12157_s29 = scalar_lea.hbm %s15349_s27, 16  ;;  %s12161_s24 = scalar_lea.hbm %s15431_s17, 32 }
0x101d   : > { %p12158_p4 = scmp.ne.s32.totalorder %s15349_s27, %s12157_s29  ;;  %p12162_p9 = scmp.lt.u32.totalorder %s15349_s27, %s15431_s17 }
0x101e   : > { %p12163_p10 = scmp.lt.u32.totalorder %s12161_s24, %s12157_s29  ;;  %p12165_p12 = scmp.lt.u32.totalorder %s12157_s29, %s15349_s27 }
0x101f   : > { %p12159_p7 = pnand %p12158_p4, %p12340_p5 }
0x1020   : > { %p12164_p11 = por %p12163_p10, %p12162_p9 }
0x1021   : > { %p12160_p8 = pneg %p12159_p7 }
0x1022   : > { %p12166_p13 = por %p12165_p12, %p12164_p11 }
0x1024   : > { %p12167_p0 = pnand %p12166_p13, %p12160_p8 }
0x1026   : > { %12170 = shalt.err (!%p12167_p0)
}
0x1027   : > { %10936 = dma.vmem_to_hbm [thread:$0]  (%p12340_p5), %s15351_s19, 16, %s15349_s27, %s8924_s18  }
0x1028 PF: > { %s15432_s28 = sld [smem:[#allocation7_spill]]  ;;  %s15433_s30 = sld [smem:[#allocation5_spill]] }
0x102e   : > { %p10942_p1 = scmp.ge.s32.totalorder %s15432_s28, 2  ;;  %s8948_s22 = sand.u32 1, %s15433_s30  }
0x102f   : > { %s8949_s23 = scalar_lea.sflag [#allocation3], %s8948_s22 }
0x1030   : > { %p10939_p2 = pnand %p10942_p1, %p12344_p6 }
0x1032   : > { %12188 = dma.done.wait (!%p10939_p2), %s8949_s23, 16  }
0x1033   : > { %12190 = vsyncadd (!%p10939_p2), %s8949_s23, 4294967280  ;;  %s15435_s27 = sld [smem:[#allocation8_spill]]  ;;  %s15436_s29 = sld [smem:[#allocation6_spill]] }
0x1034   : > { %s15437_s26 = sld [smem:[#allocation9_spill]]  ;;  %s15438_s24 = smov %s12197_s25 }
0x1039   : > { %p27_p3 = scmp.ge.s32.totalorder %s15435_s27, 4   ;;  %s15439_s25 = smov %s15436_s29 }
0x103b   :  { %29 = sbr.rel (!%p27_p3) target bundleno = 7 (0x7), region = 143 }
0x1042   :  { %8953 = vsyncpa [#allocation3], 1 }
0x1043   :  { %8955 = vsyncpa [#allocation3 + $0x1], 1 }

</bundles_post_ra>
